<compile_context>
chip_gen: v7x
topology: tpu7x:2x2x1
jax: 0.10.0
libtpu: 0.0.40
codegen_flags: <defaults>
</compile_context>

<pallas_src>
import math

import jax
import jax.numpy as jnp
from jax.experimental import pallas as pl
from jax.experimental.pallas import tpu as pltpu

EPS = 1e-5                      # nn.BatchNorm2d default eps
_VMEM_LIMIT = 32 * 1024 * 1024  # conservative scoped-VMEM limit (fits v5e..v7x)


def _vmem_spec():
    return pl.BlockSpec(memory_space=pltpu.MemorySpace.VMEM)


# ==========================================================================
# Tile-size heuristics
# ==========================================================================
def _img_bytes(h, w, ic, oc_store):
    """Rough per-image VMEM working set (bytes) for one upconv grid step."""
    pad = (h + 2) * (w + 2) * ic * 2              # halo scratch (bf16)
    x_in = h * w * ic * 2 * 2                     # input block, double buffered
    out = (2 * h) * (2 * w) * oc_store * 2 * 2    # output block (bf16), x2 buf
    patch = h * w * 4 * ic * 2                    # one phase patch (bf16)
    acc = h * w * oc_store * 4 * 2                # two phase f32 accumulators
    return pad + x_in + out + patch + acc


def _pick_b_tile(n, rows_per_img, bytes_per_img, vmem_budget=24 * 1024 * 1024):
    """Images per grid step: fill the MXU M dim (target >= 128 patch rows)
    while bounding the per-step VMEM working set and keeping the parallel
    grid length >= 2 whenever n >= 2 (v7x has 2 TensorCores)."""
    divisors = [d for d in range(1, n + 1) if n % d == 0]
    allowed = [d for d in divisors
               if d * bytes_per_img <= vmem_budget and (n // d >= 2 or n == 1)]
    if not allowed:
        return 1
    for d in allowed:
        if d * rows_per_img >= 128:
            return d
    return allowed[-1]


# ==========================================================================
# Layer 0: noise2feat  ConvTranspose2d(Z, C, k=4, s=1, p=0) on a 1x1 input
#          == a single (N, Z) x (Z, 16*C) matmul on the MXU, fused with the
#          per-channel BN statistics (sum, sumsq) over all N*16 pixels.
# ==========================================================================
def make_noise2feat_kernel(oc):
    def kernel(z_ref, w_ref, o_ref, sum_ref, sq_ref):
        # z_ref: (N, Z) bf16, w_ref: (Z, 16*OC) bf16
        acc = jnp.dot(z_ref[...], w_ref[...],
                      preferred_element_type=jnp.float32)     # (N, 16*OC) f32
        o_ref[...] = acc.astype(o_ref.dtype)                  # raw conv (bf16)
        tot = jnp.zeros((1, oc), jnp.float32)
        tot2 = jnp.zeros((1, oc), jnp.float32)
        for p in range(16):                                    # 16 pixels (4x4)
            chunk = acc[:, p * oc:(p + 1) * oc]                # (N, OC)
            tot = tot + jnp.sum(chunk, axis=0, keepdims=True)
            tot2 = tot2 + jnp.sum(chunk * chunk, axis=0, keepdims=True)
        sum_ref[...] = tot
        sq_ref[...] = tot2
    return kernel


def noise2feat(noise, w0):
    """noise: (N, Z) f32, w0: (Z, OC, 4, 4).
    Returns raw conv output (N, 4, 4, OC) bf16 NHWC and per-channel stats."""
    n, z = noise.shape
    oc = w0.shape[1]
    # (Z, kh, kw, OC) -> (Z, 16*OC), oc fastest, so the output reshapes to NHWC.
    wmat = jnp.transpose(w0, (0, 2, 3, 1)).reshape(z, 16 * oc)
    out, psum, psq = pl.pallas_call(
        make_noise2feat_kernel(oc),
        out_shape=(
            jax.ShapeDtypeStruct((n, 16 * oc), jnp.bfloat16),
            jax.ShapeDtypeStruct((1, oc), jnp.float32),
            jax.ShapeDtypeStruct((1, oc), jnp.float32),
        ),
        in_specs=[_vmem_spec(), _vmem_spec()],
        out_specs=(_vmem_spec(), _vmem_spec(), _vmem_spec()),
        compiler_params=pltpu.CompilerParams(vmem_limit_bytes=_VMEM_LIMIT),
    )(noise.astype(jnp.bfloat16), wmat.astype(jnp.bfloat16))
    return out.reshape(n, 4, 4, oc), psum[0], psq[0]


# ==========================================================================
# Stride-2 ConvTranspose2d (k=4, p=1) via phase decomposition.
#   out[n, 2y+po, 2x+pw, oc] =
#       sum_{dy,dx in {0,1}} a_pad[n, y+po+dy, x+pw+dx, :] . Wp[(po,pw),(dy,dx)]
#   with Wp[(po,pw),(dy,dx)] = W_t[:, :, 3-2*dy-po, 3-2*dx-pw]
#   where a = max(x_raw*scale + shift, 0) is the (consumer-fused) BN+ReLU of
#   the previous layer's raw conv output.
# ==========================================================================
def _phase_weights(w_t):
    """w_t: (IC, OC, 4, 4) -> (4 phases, 4*IC, OC)."""
    ic, oc = w_t.shape[0], w_t.shape[1]
    wk = jnp.transpose(w_t, (2, 3, 0, 1))              # (kh, kw, IC, OC)
    phases = []
    for po in range(2):
        for pw in range(2):
            taps = [wk[3 - 2 * dy - po, 3 - 2 * dx - pw]
                    for dy in (0, 1) for dx in (0, 1)]  # 4 x (IC, OC)
            phases.append(jnp.stack(taps, axis=0).reshape(4 * ic, oc))
    return jnp.stack(phases, axis=0)                    # (4, 4*IC, OC)


def _activate_into_pad(x_ref, scale_ref, shift_ref, xpad_ref, h, w):
    """Fused BN+ReLU prologue + in-VMEM halo (zero) padding."""
    xpad_ref[...] = jnp.zeros_like(xpad_ref)
    act = jnp.maximum(
        x_ref[...].astype(jnp.float32) * scale_ref[...] + shift_ref[...], 0.0)
    xpad_ref[:, 1:h + 1, 1:w + 1, :] = act.astype(xpad_ref.dtype)


def _load_views(xpad_ref, h, w):
    """The 9 unique shifted views, hoisted out of the 4-phase loop."""
    return [[xpad_ref[:, r:r + h, c:c + w, :] for c in range(3)]
            for r in range(3)]


def _phase_matmul(views, w_ref, b, h, w, ic, po, pw):
    """One output phase: single MXU matmul with contraction 4*IC."""
    patch = jnp.concatenate(
        [views[po + dy][pw + dx] for dy in (0, 1) for dx in (0, 1)],
        axis=-1).reshape(b * h * w, 4 * ic)
    return jnp.dot(patch, w_ref[po * 2 + pw],
                   preferred_element_type=jnp.float32)   # (B*H*W, OC) f32


def make_upconv_bn_kernel(b, h, w, ic, oc):
    """Hidden upsample layer: fused BN+ReLU prologue + conv + per-tile
    partial BN statistics of the raw conv output."""
    def kernel(x_ref, scale_ref, shift_ref, w_ref, o_ref, sum_ref, sq_ref,
               xpad_ref):
        _activate_into_pad(x_ref, scale_ref, shift_ref, xpad_ref, h, w)
        views = _load_views(xpad_ref, h, w)
        tot = jnp.zeros((1, oc), jnp.float32)
        tot2 = jnp.zeros((1, oc), jnp.float32)
        for po in range(2):
            row = []
            for pw in range(2):
                acc = _phase_matmul(views, w_ref, b, h, w, ic, po, pw)
                tot = tot + jnp.sum(acc, axis=0, keepdims=True)
                tot2 = tot2 + jnp.sum(acc * acc, axis=0, keepdims=True)
                row.append(acc.reshape(b, h, w, oc))
            # Lane-dense store: one full 2*OC-wide store per po.
            o_ref[:, :, po, :, :] = jnp.concatenate(row, axis=-1).astype(o_ref.dtype)
        sum_ref[0] = tot
        sq_ref[0] = tot2
    return kernel


def make_upconv_tanh_kernel(b, h, w, ic, ocp):
    """Output layer: fused BN+ReLU prologue + conv + bias + tanh,
    OC padded to `ocp` (lane-dense stores)."""
    def kernel(x_ref, scale_ref, shift_ref, w_ref, bias_ref, o_ref, xpad_ref):
        _activate_into_pad(x_ref, scale_ref, shift_ref, xpad_ref, h, w)
        views = _load_views(xpad_ref, h, w)
        for po in range(2):
            row = []
            for pw in range(2):
                acc = _phase_matmul(views, w_ref, b, h, w, ic, po, pw)
                y = jnp.tanh(acc + bias_ref[...])        # f32 epilogue (v5e-safe)
                row.append(y.reshape(b, h, w, ocp))
            o_ref[:, :, po, :, :] = jnp.concatenate(row, axis=-1).astype(o_ref.dtype)
    return kernel


def upconv_bn_stats(x_raw, scale, shift, w_t):
    """x_raw: (N, H, W, IC) bf16 raw previous conv output (pre-BN).
    Applies BN+ReLU inside the kernel, then the stride-2 transposed conv.
    Returns raw conv output (N, H, 2, W, 2*OC) bf16 and per-channel
    (sum, sumsq, count) over all N*2H*2W output pixels."""
    n, h, w, ic = x_raw.shape
    oc = w_t.shape[1]
    wp = _phase_weights(w_t).astype(jnp.bfloat16)                 # (4, 4*IC, OC)
    b_tile = _pick_b_tile(n, h * w, _img_bytes(h, w, ic, oc))
    n_tiles = n // b_tile
    conv, psum, psq = pl.pallas_call(
        make_upconv_bn_kernel(b_tile, h, w, ic, oc),
        grid=(n_tiles,),
        in_specs=[
            pl.BlockSpec((b_tile, h, w, ic), lambda i: (i, 0, 0, 0)),
            pl.BlockSpec((1, ic), lambda i: (0, 0)),
            pl.BlockSpec((1, ic), lambda i: (0, 0)),
            pl.BlockSpec((4, 4 * ic, oc), lambda i: (0, 0, 0)),
        ],
        out_specs=(
            pl.BlockSpec((b_tile, h, 2, w, 2 * oc), lambda i: (i, 0, 0, 0, 0)),
            pl.BlockSpec((1, 1, oc), lambda i: (i, 0, 0)),
            pl.BlockSpec((1, 1, oc), lambda i: (i, 0, 0)),
        ),
        out_shape=(
            jax.ShapeDtypeStruct((n, h, 2, w, 2 * oc), jnp.bfloat16),
            jax.ShapeDtypeStruct((n_tiles, 1, oc), jnp.float32),
            jax.ShapeDtypeStruct((n_tiles, 1, oc), jnp.float32),
        ),
        scratch_shapes=[pltpu.VMEM((b_tile, h + 2, w + 2, ic), jnp.bfloat16)],
        compiler_params=pltpu.CompilerParams(
            dimension_semantics=("parallel",), vmem_limit_bytes=_VMEM_LIMIT),
    )(x_raw.astype(jnp.bfloat16),
      scale.reshape(1, ic).astype(jnp.float32),
      shift.reshape(1, ic).astype(jnp.float32),
      wp)
    count = n * 4 * h * w
    return conv, psum.sum(axis=(0, 1)), psq.sum(axis=(0, 1)), count


def upconv_bias_tanh(x_raw, scale, shift, w_t, bias):
    """Output layer.  x_raw: (N, H, W, IC) bf16 raw previous conv output,
    w_t: (IC, OC, 4, 4), bias: (OC,).  Returns (N, 2H, 2W, OC) bf16."""
    n, h, w, ic = x_raw.shape
    oc = w_t.shape[1]
    ocp = ((oc + 127) // 128) * 128       # lane-dense stores (OC=3 -> 128)
    w_pad = jnp.pad(w_t, ((0, 0), (0, ocp - oc), (0, 0), (0, 0)))
    b_pad = jnp.pad(bias, (0, ocp - oc)).reshape(1, ocp).astype(jnp.float32)
    wp = _phase_weights(w_pad).astype(jnp.bfloat16)               # (4, 4*IC, OCP)
    b_tile = _pick_b_tile(n, h * w, _img_bytes(h, w, ic, ocp))
    n_tiles = n // b_tile
    out = pl.pallas_call(
        make_upconv_tanh_kernel(b_tile, h, w, ic, ocp),
        grid=(n_tiles,),
        in_specs=[
            pl.BlockSpec((b_tile, h, w, ic), lambda i: (i, 0, 0, 0)),
            pl.BlockSpec((1, ic), lambda i: (0, 0)),
            pl.BlockSpec((1, ic), lambda i: (0, 0)),
            pl.BlockSpec((4, 4 * ic, ocp), lambda i: (0, 0, 0)),
            pl.BlockSpec((1, ocp), lambda i: (0, 0)),
        ],
        out_specs=pl.BlockSpec((b_tile, h, 2, w, 2 * ocp),
                               lambda i: (i, 0, 0, 0, 0)),
        out_shape=jax.ShapeDtypeStruct((n, h, 2, w, 2 * ocp), jnp.bfloat16),
        scratch_shapes=[pltpu.VMEM((b_tile, h + 2, w + 2, ic), jnp.bfloat16)],
        compiler_params=pltpu.CompilerParams(
            dimension_semantics=("parallel",), vmem_limit_bytes=_VMEM_LIMIT),
    )(x_raw.astype(jnp.bfloat16),
      scale.reshape(1, ic).astype(jnp.float32),
      shift.reshape(1, ic).astype(jnp.float32),
      wp, b_pad)
    # (N, H, 2, W, 2, OCP) -> (N, 2H, 2W, OCP) is a contiguous (free) reshape.
    return out.reshape(n, 2 * h, 2 * w, ocp)[..., :oc]


def _bn_scale_shift(psum, psq, count, gamma, beta):
    # Tiny (OC,) XLA math: fold gamma*rsqrt(var+eps) once per channel.
    mean = psum / count
    var = jnp.maximum(psq / count - mean * mean, 0.0)
    scale = gamma * jax.lax.rsqrt(var + EPS)
    shift = beta - mean * scale
    return scale, shift


# ==========================================================================
# DCGAN generator forward
# ==========================================================================
def dcgan_generator_forward(noise, params):
    """noise: (N, Z) or (N, Z, 1, 1).  Returns fake image in NCHW (f32)."""
    if noise.ndim == 4:
        noise = noise.reshape(noise.shape[0], noise.shape[1])
    elif noise.ndim != 2:
        raise ValueError("noise must be (n, c) or (n, c, 1, 1)")
    n = noise.shape[0]

    # Layer 0: ConvTranspose2d(Z, C, 4, 1, 0) (1x1 -> 4x4) + in-kernel BN stats.
    x_raw, psum, psq = noise2feat(noise, params["w0"])      # (N, 4, 4, C) bf16
    scale, shift = _bn_scale_shift(psum, psq, float(n * 16),
                                   params["g0"], params["b0"])

    # Hidden upsampling blocks: [BN+ReLU of previous raw conv, fused in-kernel]
    # + ConvTranspose2d(C, C//2, 4, 2, 1) + per-channel stats.
    for w_t, gamma, beta in params["ups"]:
        h, w = x_raw.shape[1], x_raw.shape[2]
        oc = w_t.shape[1]
        conv, s1, s2, cnt = upconv_bn_stats(x_raw, scale, shift, w_t)
        scale, shift = _bn_scale_shift(s1, s2, float(cnt), gamma, beta)
        x_raw = conv.reshape(n, 2 * h, 2 * w, oc)           # contiguous, bf16

    # Output layer: fused BN+ReLU + ConvTranspose2d(C, out_ch, 4, 2, 1) + Tanh.
    img = upconv_bias_tanh(x_raw, scale, shift, params["w_out"], params["b_out"])
    # TODO(synk): fuse the NHWC->NCHW transpose into the output BlockSpec.
    return jnp.transpose(img.astype(jnp.float32), (0, 3, 1, 2))


# ==========================================================================
# Deterministic parameter init (mirrors DCGANGenerator.init_weights)
# ==========================================================================
def init_params(key, noise_size, base_channels, out_channels,
                output_scale, input_scale):
    num_up = int(math.log2(output_scale // input_scale))
    keys = iter(jax.random.split(key, 4 * num_up + 8))

    params = {}
    params["w0"] = 0.02 * jax.random.normal(
        next(keys), (noise_size, base_channels, 4, 4), jnp.float32)
    params["g0"] = jax.random.normal(next(keys), (base_channels,), jnp.float32)
    params["b0"] = jnp.zeros((base_channels,), jnp.float32)

    ups = []
    c = base_channels
    for _ in range(num_up - 1):
        w = 0.02 * jax.random.normal(next(keys), (c, c // 2, 4, 4), jnp.float32)
        g = jax.random.normal(next(keys), (c // 2,), jnp.float32)
        b = jnp.zeros((c // 2,), jnp.float32)
        ups.append((w, g, b))
        c //= 2
    params["ups"] = ups

    params["w_out"] = 0.02 * jax.random.normal(
        next(keys), (c, out_channels, 4, 4), jnp.float32)
    params["b_out"] = jnp.zeros((out_channels,), jnp.float32)
    return params


# ==========================================================================
# Pure-JAX reference (NCHW) for validation (bf16 matmul operands, f32
# accumulation; BN / bias / tanh in f32).
# ==========================================================================
def _ref_conv_transpose(x_nchw, w_t, stride, pad):
    k = w_t.shape[2]
    w_conv = jnp.transpose(w_t, (1, 0, 2, 3))[:, :, ::-1, ::-1]
    return jax.lax.conv_general_dilated(
        x_nchw.astype(jnp.bfloat16), w_conv.astype(jnp.bfloat16),
        window_strides=(1, 1),
        padding=[(k - 1 - pad, k - 1 - pad)] * 2,
        lhs_dilation=(stride, stride),
        dimension_numbers=("NCHW", "OIHW", "NCHW"),
        preferred_element_type=jnp.float32)


def _ref_bn_relu(x, gamma, beta):
    mean = jnp.mean(x, axis=(0, 2, 3), keepdims=True)
    var = jnp.mean((x - mean) ** 2, axis=(0, 2, 3), keepdims=True)
    y = (x - mean) * jax.lax.rsqrt(var + EPS)
    y = y * gamma[None, :, None, None] + beta[None, :, None, None]
    return jnp.maximum(y, 0.0)


def _ref_forward(noise, params):
    x = noise[:, :, None, None] if noise.ndim == 2 else noise
    x = _ref_conv_transpose(x, params["w0"], 1, 0)
    x = _ref_bn_relu(x, params["g0"], params["b0"])
    for w, g, b in params["ups"]:
        x = _ref_conv_transpose(x, w, 2, 1)
        x = _ref_bn_relu(x, g, b)
    x = _ref_conv_transpose(x, params["w_out"], 2, 1)
    x = x + params["b_out"][None, :, None, None]
    return jnp.tanh(x)


# ==========================================================================
if __name__ == "__main__":
    # Small config consistent with the module:
    #   output_scale=16, input_scale=4 -> num_upsamples=2 (one hidden upsample)
    batch = 2
    noise_size = 16
    base_channels = 32
    out_channels = 3
    output_scale = 16
    input_scale = 4

    key = jax.random.PRNGKey(0)
    k_param, k_noise = jax.random.split(key)
    params = init_params(k_param, noise_size, base_channels, out_channels,
                         output_scale, input_scale)
    noise = jax.random.normal(k_noise, (batch, noise_size), jnp.float32)

    fwd = jax.jit(dcgan_generator_forward)
    fake_img = jax.block_until_ready(fwd(noise, params))
    assert fake_img.shape == (batch, out_channels, output_scale, output_scale), (
        fake_img.shape)

    ref = jax.block_until_ready(_ref_forward(noise, params))
    max_err = float(jnp.max(jnp.abs(fake_img - ref)))
    # bf16 intermediates + bf16 final store (tanh output in [-1, 1]) -> ~1e-2.
    assert jnp.allclose(fake_img, ref, rtol=1e-2, atol=1e-2), max_err

    print("KERNEL_OK")
</pallas_src>

<mosaic_0001>
module attributes {stable_mosaic.version = 11 : i64} {
  func.func @kernel(%arg0: memref<2x16xbf16, #tpu.memory_space<vmem>>, %arg1: memref<16x512xbf16, #tpu.memory_space<vmem>>, %arg2: memref<2x512xbf16, #tpu.memory_space<vmem>>, %arg3: memref<1x32xf32, #tpu.memory_space<vmem>>, %arg4: memref<1x32xf32, #tpu.memory_space<vmem>>) attributes {dimension_semantics = [], scalar_prefetch = 0 : i64, scratch_operands = 0 : i64, tpu.core_type = #tpu.core_type<tc>} {
    %c0 = arith.constant 0 : index
    %c0_0 = arith.constant 0 : index
    %0 = vector.load %arg0[%c0, %c0_0] : memref<2x16xbf16, #tpu.memory_space<vmem>>, vector<2x16xbf16>
    %c0_1 = arith.constant 0 : index
    %c0_2 = arith.constant 0 : index
    %1 = vector.load %arg1[%c0_1, %c0_2] : memref<16x512xbf16, #tpu.memory_space<vmem>>, vector<16x512xbf16>
    %cst = arith.constant dense<0.000000e+00> : vector<2x512xf32>
    %2 = tpu.matmul %0, %1, %cst {dimension_numbers = #tpu.dot_dimension_numbers<[1], [0], [0], [1], [0, 0, 1, 1], [], []>} : vector<2x16xbf16>, vector<16x512xbf16>, vector<2x512xf32> -> vector<2x512xf32>
    %3 = arith.truncf %2 : vector<2x512xf32> to vector<2x512xbf16>
    %c0_3 = arith.constant 0 : index
    %c0_4 = arith.constant 0 : index
    %4 = vector.load %arg2[%c0_3, %c0_4] : memref<2x512xbf16, #tpu.memory_space<vmem>>, vector<2x512xbf16>
    tpu.vector_store %arg2[%c0_3, %c0_4], %3 {strides = array<i32>} : memref<2x512xbf16, #tpu.memory_space<vmem>>, vector<2x512xbf16>,
    %cst_5 = arith.constant 0.000000e+00 : f32
    %5 = vector.broadcast %cst_5 : f32 to vector<1x32xf32>
    %cst_6 = arith.constant 0.000000e+00 : f32
    %6 = vector.broadcast %cst_6 : f32 to vector<1x32xf32>
    %7 = vector.extract_strided_slice %2 {offsets = [0, 0], sizes = [2, 32], strides = [1, 1]} : vector<2x512xf32> to vector<2x32xf32>
    %cst_7 = arith.constant dense<0.000000e+00> : vector<32xf32>
    %8 = vector.multi_reduction <add>, %7, %cst_7 [0] : vector<2x32xf32> to vector<32xf32>
    %9 = vector.shape_cast %8 : vector<32xf32> to vector<1x32xf32>
    %10 = arith.addf %5, %9 : vector<1x32xf32>
    %11 = arith.mulf %7, %7 : vector<2x32xf32>
    %cst_8 = arith.constant dense<0.000000e+00> : vector<32xf32>
    %12 = vector.multi_reduction <add>, %11, %cst_8 [0] : vector<2x32xf32> to vector<32xf32>
    %13 = vector.shape_cast %12 : vector<32xf32> to vector<1x32xf32>
    %14 = arith.addf %6, %13 : vector<1x32xf32>
    %15 = vector.extract_strided_slice %2 {offsets = [0, 32], sizes = [2, 32], strides = [1, 1]} : vector<2x512xf32> to vector<2x32xf32>
    %cst_9 = arith.constant dense<0.000000e+00> : vector<32xf32>
    %16 = vector.multi_reduction <add>, %15, %cst_9 [0] : vector<2x32xf32> to vector<32xf32>
    %17 = vector.shape_cast %16 : vector<32xf32> to vector<1x32xf32>
    %18 = arith.addf %10, %17 : vector<1x32xf32>
    %19 = arith.mulf %15, %15 : vector<2x32xf32>
    %cst_10 = arith.constant dense<0.000000e+00> : vector<32xf32>
    %20 = vector.multi_reduction <add>, %19, %cst_10 [0] : vector<2x32xf32> to vector<32xf32>
    %21 = vector.shape_cast %20 : vector<32xf32> to vector<1x32xf32>
    %22 = arith.addf %14, %21 : vector<1x32xf32>
    %23 = vector.extract_strided_slice %2 {offsets = [0, 64], sizes = [2, 32], strides = [1, 1]} : vector<2x512xf32> to vector<2x32xf32>
    %cst_11 = arith.constant dense<0.000000e+00> : vector<32xf32>
    %24 = vector.multi_reduction <add>, %23, %cst_11 [0] : vector<2x32xf32> to vector<32xf32>
    %25 = vector.shape_cast %24 : vector<32xf32> to vector<1x32xf32>
    %26 = arith.addf %18, %25 : vector<1x32xf32>
    %27 = arith.mulf %23, %23 : vector<2x32xf32>
    %cst_12 = arith.constant dense<0.000000e+00> : vector<32xf32>
    %28 = vector.multi_reduction <add>, %27, %cst_12 [0] : vector<2x32xf32> to vector<32xf32>
    %29 = vector.shape_cast %28 : vector<32xf32> to vector<1x32xf32>
    %30 = arith.addf %22, %29 : vector<1x32xf32>
    %31 = vector.extract_strided_slice %2 {offsets = [0, 96], sizes = [2, 32], strides = [1, 1]} : vector<2x512xf32> to vector<2x32xf32>
    %cst_13 = arith.constant dense<0.000000e+00> : vector<32xf32>
    %32 = vector.multi_reduction <add>, %31, %cst_13 [0] : vector<2x32xf32> to vector<32xf32>
    %33 = vector.shape_cast %32 : vector<32xf32> to vector<1x32xf32>
    %34 = arith.addf %26, %33 : vector<1x32xf32>
    %35 = arith.mulf %31, %31 : vector<2x32xf32>
    %cst_14 = arith.constant dense<0.000000e+00> : vector<32xf32>
    %36 = vector.multi_reduction <add>, %35, %cst_14 [0] : vector<2x32xf32> to vector<32xf32>
    %37 = vector.shape_cast %36 : vector<32xf32> to vector<1x32xf32>
    %38 = arith.addf %30, %37 : vector<1x32xf32>
    %39 = vector.extract_strided_slice %2 {offsets = [0, 128], sizes = [2, 32], strides = [1, 1]} : vector<2x512xf32> to vector<2x32xf32>
    %cst_15 = arith.constant dense<0.000000e+00> : vector<32xf32>
    %40 = vector.multi_reduction <add>, %39, %cst_15 [0] : vector<2x32xf32> to vector<32xf32>
    %41 = vector.shape_cast %40 : vector<32xf32> to vector<1x32xf32>
    %42 = arith.addf %34, %41 : vector<1x32xf32>
    %43 = arith.mulf %39, %39 : vector<2x32xf32>
    %cst_16 = arith.constant dense<0.000000e+00> : vector<32xf32>
    %44 = vector.multi_reduction <add>, %43, %cst_16 [0] : vector<2x32xf32> to vector<32xf32>
    %45 = vector.shape_cast %44 : vector<32xf32> to vector<1x32xf32>
    %46 = arith.addf %38, %45 : vector<1x32xf32>
    %47 = vector.extract_strided_slice %2 {offsets = [0, 160], sizes = [2, 32], strides = [1, 1]} : vector<2x512xf32> to vector<2x32xf32>
    %cst_17 = arith.constant dense<0.000000e+00> : vector<32xf32>
    %48 = vector.multi_reduction <add>, %47, %cst_17 [0] : vector<2x32xf32> to vector<32xf32>
    %49 = vector.shape_cast %48 : vector<32xf32> to vector<1x32xf32>
    %50 = arith.addf %42, %49 : vector<1x32xf32>
    %51 = arith.mulf %47, %47 : vector<2x32xf32>
    %cst_18 = arith.constant dense<0.000000e+00> : vector<32xf32>
    %52 = vector.multi_reduction <add>, %51, %cst_18 [0] : vector<2x32xf32> to vector<32xf32>
    %53 = vector.shape_cast %52 : vector<32xf32> to vector<1x32xf32>
    %54 = arith.addf %46, %53 : vector<1x32xf32>
    %55 = vector.extract_strided_slice %2 {offsets = [0, 192], sizes = [2, 32], strides = [1, 1]} : vector<2x512xf32> to vector<2x32xf32>
    %cst_19 = arith.constant dense<0.000000e+00> : vector<32xf32>
    %56 = vector.multi_reduction <add>, %55, %cst_19 [0] : vector<2x32xf32> to vector<32xf32>
    %57 = vector.shape_cast %56 : vector<32xf32> to vector<1x32xf32>
    %58 = arith.addf %50, %57 : vector<1x32xf32>
    %59 = arith.mulf %55, %55 : vector<2x32xf32>
    %cst_20 = arith.constant dense<0.000000e+00> : vector<32xf32>
    %60 = vector.multi_reduction <add>, %59, %cst_20 [0] : vector<2x32xf32> to vector<32xf32>
    %61 = vector.shape_cast %60 : vector<32xf32> to vector<1x32xf32>
    %62 = arith.addf %54, %61 : vector<1x32xf32>
    %63 = vector.extract_strided_slice %2 {offsets = [0, 224], sizes = [2, 32], strides = [1, 1]} : vector<2x512xf32> to vector<2x32xf32>
    %cst_21 = arith.constant dense<0.000000e+00> : vector<32xf32>
    %64 = vector.multi_reduction <add>, %63, %cst_21 [0] : vector<2x32xf32> to vector<32xf32>
    %65 = vector.shape_cast %64 : vector<32xf32> to vector<1x32xf32>
    %66 = arith.addf %58, %65 : vector<1x32xf32>
    %67 = arith.mulf %63, %63 : vector<2x32xf32>
    %cst_22 = arith.constant dense<0.000000e+00> : vector<32xf32>
    %68 = vector.multi_reduction <add>, %67, %cst_22 [0] : vector<2x32xf32> to vector<32xf32>
    %69 = vector.shape_cast %68 : vector<32xf32> to vector<1x32xf32>
    %70 = arith.addf %62, %69 : vector<1x32xf32>
    %71 = vector.extract_strided_slice %2 {offsets = [0, 256], sizes = [2, 32], strides = [1, 1]} : vector<2x512xf32> to vector<2x32xf32>
    %cst_23 = arith.constant dense<0.000000e+00> : vector<32xf32>
    %72 = vector.multi_reduction <add>, %71, %cst_23 [0] : vector<2x32xf32> to vector<32xf32>
    %73 = vector.shape_cast %72 : vector<32xf32> to vector<1x32xf32>
    %74 = arith.addf %66, %73 : vector<1x32xf32>
    %75 = arith.mulf %71, %71 : vector<2x32xf32>
    %cst_24 = arith.constant dense<0.000000e+00> : vector<32xf32>
    %76 = vector.multi_reduction <add>, %75, %cst_24 [0] : vector<2x32xf32> to vector<32xf32>
    %77 = vector.shape_cast %76 : vector<32xf32> to vector<1x32xf32>
    %78 = arith.addf %70, %77 : vector<1x32xf32>
    %79 = vector.extract_strided_slice %2 {offsets = [0, 288], sizes = [2, 32], strides = [1, 1]} : vector<2x512xf32> to vector<2x32xf32>
    %cst_25 = arith.constant dense<0.000000e+00> : vector<32xf32>
    %80 = vector.multi_reduction <add>, %79, %cst_25 [0] : vector<2x32xf32> to vector<32xf32>
    %81 = vector.shape_cast %80 : vector<32xf32> to vector<1x32xf32>
    %82 = arith.addf %74, %81 : vector<1x32xf32>
    %83 = arith.mulf %79, %79 : vector<2x32xf32>
    %cst_26 = arith.constant dense<0.000000e+00> : vector<32xf32>
    %84 = vector.multi_reduction <add>, %83, %cst_26 [0] : vector<2x32xf32> to vector<32xf32>
    %85 = vector.shape_cast %84 : vector<32xf32> to vector<1x32xf32>
    %86 = arith.addf %78, %85 : vector<1x32xf32>
    %87 = vector.extract_strided_slice %2 {offsets = [0, 320], sizes = [2, 32], strides = [1, 1]} : vector<2x512xf32> to vector<2x32xf32>
    %cst_27 = arith.constant dense<0.000000e+00> : vector<32xf32>
    %88 = vector.multi_reduction <add>, %87, %cst_27 [0] : vector<2x32xf32> to vector<32xf32>
    %89 = vector.shape_cast %88 : vector<32xf32> to vector<1x32xf32>
    %90 = arith.addf %82, %89 : vector<1x32xf32>
    %91 = arith.mulf %87, %87 : vector<2x32xf32>
    %cst_28 = arith.constant dense<0.000000e+00> : vector<32xf32>
    %92 = vector.multi_reduction <add>, %91, %cst_28 [0] : vector<2x32xf32> to vector<32xf32>
    %93 = vector.shape_cast %92 : vector<32xf32> to vector<1x32xf32>
    %94 = arith.addf %86, %93 : vector<1x32xf32>
    %95 = vector.extract_strided_slice %2 {offsets = [0, 352], sizes = [2, 32], strides = [1, 1]} : vector<2x512xf32> to vector<2x32xf32>
    %cst_29 = arith.constant dense<0.000000e+00> : vector<32xf32>
    %96 = vector.multi_reduction <add>, %95, %cst_29 [0] : vector<2x32xf32> to vector<32xf32>
    %97 = vector.shape_cast %96 : vector<32xf32> to vector<1x32xf32>
    %98 = arith.addf %90, %97 : vector<1x32xf32>
    %99 = arith.mulf %95, %95 : vector<2x32xf32>
    %cst_30 = arith.constant dense<0.000000e+00> : vector<32xf32>
    %100 = vector.multi_reduction <add>, %99, %cst_30 [0] : vector<2x32xf32> to vector<32xf32>
    %101 = vector.shape_cast %100 : vector<32xf32> to vector<1x32xf32>
    %102 = arith.addf %94, %101 : vector<1x32xf32>
    %103 = vector.extract_strided_slice %2 {offsets = [0, 384], sizes = [2, 32], strides = [1, 1]} : vector<2x512xf32> to vector<2x32xf32>
    %cst_31 = arith.constant dense<0.000000e+00> : vector<32xf32>
    %104 = vector.multi_reduction <add>, %103, %cst_31 [0] : vector<2x32xf32> to vector<32xf32>
    %105 = vector.shape_cast %104 : vector<32xf32> to vector<1x32xf32>
    %106 = arith.addf %98, %105 : vector<1x32xf32>
    %107 = arith.mulf %103, %103 : vector<2x32xf32>
    %cst_32 = arith.constant dense<0.000000e+00> : vector<32xf32>
    %108 = vector.multi_reduction <add>, %107, %cst_32 [0] : vector<2x32xf32> to vector<32xf32>
    %109 = vector.shape_cast %108 : vector<32xf32> to vector<1x32xf32>
    %110 = arith.addf %102, %109 : vector<1x32xf32>
    %111 = vector.extract_strided_slice %2 {offsets = [0, 416], sizes = [2, 32], strides = [1, 1]} : vector<2x512xf32> to vector<2x32xf32>
    %cst_33 = arith.constant dense<0.000000e+00> : vector<32xf32>
    %112 = vector.multi_reduction <add>, %111, %cst_33 [0] : vector<2x32xf32> to vector<32xf32>
    %113 = vector.shape_cast %112 : vector<32xf32> to vector<1x32xf32>
    %114 = arith.addf %106, %113 : vector<1x32xf32>
    %115 = arith.mulf %111, %111 : vector<2x32xf32>
    %cst_34 = arith.constant dense<0.000000e+00> : vector<32xf32>
    %116 = vector.multi_reduction <add>, %115, %cst_34 [0] : vector<2x32xf32> to vector<32xf32>
    %117 = vector.shape_cast %116 : vector<32xf32> to vector<1x32xf32>
    %118 = arith.addf %110, %117 : vector<1x32xf32>
    %119 = vector.extract_strided_slice %2 {offsets = [0, 448], sizes = [2, 32], strides = [1, 1]} : vector<2x512xf32> to vector<2x32xf32>
    %cst_35 = arith.constant dense<0.000000e+00> : vector<32xf32>
    %120 = vector.multi_reduction <add>, %119, %cst_35 [0] : vector<2x32xf32> to vector<32xf32>
    %121 = vector.shape_cast %120 : vector<32xf32> to vector<1x32xf32>
    %122 = arith.addf %114, %121 : vector<1x32xf32>
    %123 = arith.mulf %119, %119 : vector<2x32xf32>
    %cst_36 = arith.constant dense<0.000000e+00> : vector<32xf32>
    %124 = vector.multi_reduction <add>, %123, %cst_36 [0] : vector<2x32xf32> to vector<32xf32>
    %125 = vector.shape_cast %124 : vector<32xf32> to vector<1x32xf32>
    %126 = arith.addf %118, %125 : vector<1x32xf32>
    %127 = vector.extract_strided_slice %2 {offsets = [0, 480], sizes = [2, 32], strides = [1, 1]} : vector<2x512xf32> to vector<2x32xf32>
    %cst_37 = arith.constant dense<0.000000e+00> : vector<32xf32>
    %128 = vector.multi_reduction <add>, %127, %cst_37 [0] : vector<2x32xf32> to vector<32xf32>
    %129 = vector.shape_cast %128 : vector<32xf32> to vector<1x32xf32>
    %130 = arith.addf %122, %129 : vector<1x32xf32>
    %131 = arith.mulf %127, %127 : vector<2x32xf32>
    %cst_38 = arith.constant dense<0.000000e+00> : vector<32xf32>
    %132 = vector.multi_reduction <add>, %131, %cst_38 [0] : vector<2x32xf32> to vector<32xf32>
    %133 = vector.shape_cast %132 : vector<32xf32> to vector<1x32xf32>
    %134 = arith.addf %126, %133 : vector<1x32xf32>
    %c0_39 = arith.constant 0 : index
    %c0_40 = arith.constant 0 : index
    %135 = vector.load %arg3[%c0_39, %c0_40] : memref<1x32xf32, #tpu.memory_space<vmem>>, vector<1x32xf32>
    tpu.vector_store %arg3[%c0_39, %c0_40], %130 {strides = array<i32>} : memref<1x32xf32, #tpu.memory_space<vmem>>, vector<1x32xf32>,
    %c0_41 = arith.constant 0 : index
    %c0_42 = arith.constant 0 : index
    %136 = vector.load %arg4[%c0_41, %c0_42] : memref<1x32xf32, #tpu.memory_space<vmem>>, vector<1x32xf32>
    tpu.vector_store %arg4[%c0_41, %c0_42], %134 {strides = array<i32>} : memref<1x32xf32, #tpu.memory_space<vmem>>, vector<1x32xf32>,
    return
  }
}

module attributes {stable_mosaic.version = 11 : i64} {
  func.func @kernel(%arg0: i32, %arg1: memref<1x4x4x32xbf16, #tpu.memory_space<vmem>>, %arg2: memref<1x32xf32, #tpu.memory_space<vmem>>, %arg3: memref<1x32xf32, #tpu.memory_space<vmem>>, %arg4: memref<4x128x16xbf16, #tpu.memory_space<vmem>>, %arg5: memref<1x4x2x4x32xbf16, #tpu.memory_space<vmem>>, %arg6: memref<1x1x16xf32, #tpu.memory_space<vmem>>, %arg7: memref<1x1x16xf32, #tpu.memory_space<vmem>>, %arg8: memref<1x6x6x32xbf16, #tpu.memory_space<vmem>>) attributes {dimension_semantics = [#tpu.dimension_semantics<parallel>], iteration_bounds = array<i64: 2>, scalar_prefetch = 0 : i64, scratch_operands = 1 : i64, tpu.core_type = #tpu.core_type<tc>, window_params = [{transform_indices = @transform_0, window_bounds = array<i64: 1, 4, 4, 32>}, {pipeline_mode = #tpu.pipeline_mode<synchronous>, transform_indices = @transform_1, window_bounds = array<i64: 1, 32>}, {pipeline_mode = #tpu.pipeline_mode<synchronous>, transform_indices = @transform_2, window_bounds = array<i64: 1, 32>}, {pipeline_mode = #tpu.pipeline_mode<synchronous>, transform_indices = @transform_3, window_bounds = array<i64: 4, 128, 16>}, {transform_indices = @transform_4, window_bounds = array<i64: 1, 4, 2, 4, 32>}, {transform_indices = @transform_5, window_bounds = array<i64: 1, 1, 16>}, {transform_indices = @transform_6, window_bounds = array<i64: 1, 1, 16>}]} {
    %cst = arith.constant 0.000000e+00 : bf16
    %0 = vector.broadcast %cst : bf16 to vector<1x6x6x32xbf16>
    %c0 = arith.constant 0 : index
    %c0_0 = arith.constant 0 : index
    %c0_1 = arith.constant 0 : index
    %c0_2 = arith.constant 0 : index
    %1 = vector.load %arg8[%c0, %c0_0, %c0_1, %c0_2] : memref<1x6x6x32xbf16, #tpu.memory_space<vmem>>, vector<1x6x6x32xbf16>
    tpu.vector_store %arg8[%c0, %c0_0, %c0_1, %c0_2], %0 {strides = array<i32>} : memref<1x6x6x32xbf16, #tpu.memory_space<vmem>>, vector<1x6x6x32xbf16>,
    %c0_3 = arith.constant 0 : index
    %c0_4 = arith.constant 0 : index
    %c0_5 = arith.constant 0 : index
    %c0_6 = arith.constant 0 : index
    %2 = vector.load %arg1[%c0_3, %c0_4, %c0_5, %c0_6] : memref<1x4x4x32xbf16, #tpu.memory_space<vmem>>, vector<1x4x4x32xbf16>
    %3 = arith.extf %2 : vector<1x4x4x32xbf16> to vector<1x4x4x32xf32>
    %c0_7 = arith.constant 0 : index
    %c0_8 = arith.constant 0 : index
    %4 = vector.load %arg2[%c0_7, %c0_8] : memref<1x32xf32, #tpu.memory_space<vmem>>, vector<1x32xf32>
    %5 = vector.shape_cast %4 : vector<1x32xf32> to vector<1x1x1x32xf32>
    %6 = vector.broadcast %5 : vector<1x1x1x32xf32> to vector<1x4x4x32xf32>
    %7 = arith.mulf %3, %6 : vector<1x4x4x32xf32>
    %c0_9 = arith.constant 0 : index
    %c0_10 = arith.constant 0 : index
    %8 = vector.load %arg3[%c0_9, %c0_10] : memref<1x32xf32, #tpu.memory_space<vmem>>, vector<1x32xf32>
    %9 = vector.shape_cast %8 : vector<1x32xf32> to vector<1x1x1x32xf32>
    %10 = vector.broadcast %9 : vector<1x1x1x32xf32> to vector<1x4x4x32xf32>
    %11 = arith.addf %7, %10 : vector<1x4x4x32xf32>
    %cst_11 = arith.constant 0.000000e+00 : f32
    %12 = vector.broadcast %cst_11 : f32 to vector<1x4x4x32xf32>
    %13 = arith.maximumf %11, %12 : vector<1x4x4x32xf32>
    %14 = arith.truncf %13 : vector<1x4x4x32xf32> to vector<1x4x4x32xbf16>
    %c0_12 = arith.constant 0 : index
    %c1 = arith.constant 1 : index
    %c1_13 = arith.constant 1 : index
    %c0_14 = arith.constant 0 : index
    %15 = vector.load %arg8[%c0_12, %c1, %c1_13, %c0_14] : memref<1x6x6x32xbf16, #tpu.memory_space<vmem>>, vector<1x4x4x32xbf16>
    tpu.vector_store %arg8[%c0_12, %c1, %c1_13, %c0_14], %14 {strides = array<i32>} : memref<1x6x6x32xbf16, #tpu.memory_space<vmem>>, vector<1x4x4x32xbf16>,
    %c0_15 = arith.constant 0 : index
    %c0_16 = arith.constant 0 : index
    %c0_17 = arith.constant 0 : index
    %c0_18 = arith.constant 0 : index
    %16 = vector.load %arg8[%c0_15, %c0_16, %c0_17, %c0_18] : memref<1x6x6x32xbf16, #tpu.memory_space<vmem>>, vector<1x4x4x32xbf16>
    %c0_19 = arith.constant 0 : index
    %c0_20 = arith.constant 0 : index
    %c1_21 = arith.constant 1 : index
    %c0_22 = arith.constant 0 : index
    %17 = vector.load %arg8[%c0_19, %c0_20, %c1_21, %c0_22] : memref<1x6x6x32xbf16, #tpu.memory_space<vmem>>, vector<1x4x4x32xbf16>
    %c0_23 = arith.constant 0 : index
    %c0_24 = arith.constant 0 : index
    %c2 = arith.constant 2 : index
    %c0_25 = arith.constant 0 : index
    %18 = vector.load %arg8[%c0_23, %c0_24, %c2, %c0_25] : memref<1x6x6x32xbf16, #tpu.memory_space<vmem>>, vector<1x4x4x32xbf16>
    %c0_26 = arith.constant 0 : index
    %c1_27 = arith.constant 1 : index
    %c0_28 = arith.constant 0 : index
    %c0_29 = arith.constant 0 : index
    %19 = vector.load %arg8[%c0_26, %c1_27, %c0_28, %c0_29] : memref<1x6x6x32xbf16, #tpu.memory_space<vmem>>, vector<1x4x4x32xbf16>
    %c0_30 = arith.constant 0 : index
    %c1_31 = arith.constant 1 : index
    %c1_32 = arith.constant 1 : index
    %c0_33 = arith.constant 0 : index
    %20 = vector.load %arg8[%c0_30, %c1_31, %c1_32, %c0_33] : memref<1x6x6x32xbf16, #tpu.memory_space<vmem>>, vector<1x4x4x32xbf16>
    %c0_34 = arith.constant 0 : index
    %c1_35 = arith.constant 1 : index
    %c2_36 = arith.constant 2 : index
    %c0_37 = arith.constant 0 : index
    %21 = vector.load %arg8[%c0_34, %c1_35, %c2_36, %c0_37] : memref<1x6x6x32xbf16, #tpu.memory_space<vmem>>, vector<1x4x4x32xbf16>
    %c0_38 = arith.constant 0 : index
    %c2_39 = arith.constant 2 : index
    %c0_40 = arith.constant 0 : index
    %c0_41 = arith.constant 0 : index
    %22 = vector.load %arg8[%c0_38, %c2_39, %c0_40, %c0_41] : memref<1x6x6x32xbf16, #tpu.memory_space<vmem>>, vector<1x4x4x32xbf16>
    %c0_42 = arith.constant 0 : index
    %c2_43 = arith.constant 2 : index
    %c1_44 = arith.constant 1 : index
    %c0_45 = arith.constant 0 : index
    %23 = vector.load %arg8[%c0_42, %c2_43, %c1_44, %c0_45] : memref<1x6x6x32xbf16, #tpu.memory_space<vmem>>, vector<1x4x4x32xbf16>
    %c0_46 = arith.constant 0 : index
    %c2_47 = arith.constant 2 : index
    %c2_48 = arith.constant 2 : index
    %c0_49 = arith.constant 0 : index
    %24 = vector.load %arg8[%c0_46, %c2_47, %c2_48, %c0_49] : memref<1x6x6x32xbf16, #tpu.memory_space<vmem>>, vector<1x4x4x32xbf16>
    %cst_50 = arith.constant 0.000000e+00 : f32
    %25 = vector.broadcast %cst_50 : f32 to vector<1x16xf32>
    %cst_51 = arith.constant 0.000000e+00 : f32
    %26 = vector.broadcast %cst_51 : f32 to vector<1x16xf32>
    %27 = tpu.concatenate %16, %17, %19, %20 in 3 : vector<1x4x4x32xbf16>, vector<1x4x4x32xbf16>, vector<1x4x4x32xbf16>, vector<1x4x4x32xbf16> -> vector<1x4x4x128xbf16>
    %28 = vector.shape_cast %27 : vector<1x4x4x128xbf16> to vector<16x128xbf16>
    %c0_52 = arith.constant 0 : index
    %c0_53 = arith.constant 0 : index
    %c0_54 = arith.constant 0 : index
    %29 = vector.load %arg4[%c0_52, %c0_53, %c0_54] : memref<4x128x16xbf16, #tpu.memory_space<vmem>>, vector<1x128x16xbf16>
    %30 = vector.shape_cast %29 : vector<1x128x16xbf16> to vector<128x16xbf16>
    %cst_55 = arith.constant dense<0.000000e+00> : vector<16x16xf32>
    %31 = tpu.matmul %28, %30, %cst_55 {dimension_numbers = #tpu.dot_dimension_numbers<[1], [0], [0], [1], [0, 0, 1, 1], [], []>} : vector<16x128xbf16>, vector<128x16xbf16>, vector<16x16xf32> -> vector<16x16xf32>
    %cst_56 = arith.constant dense<0.000000e+00> : vector<16xf32>
    %32 = vector.multi_reduction <add>, %31, %cst_56 [0] : vector<16x16xf32> to vector<16xf32>
    %33 = vector.shape_cast %32 : vector<16xf32> to vector<1x16xf32>
    %34 = arith.addf %25, %33 : vector<1x16xf32>
    %35 = arith.mulf %31, %31 : vector<16x16xf32>
    %cst_57 = arith.constant dense<0.000000e+00> : vector<16xf32>
    %36 = vector.multi_reduction <add>, %35, %cst_57 [0] : vector<16x16xf32> to vector<16xf32>
    %37 = vector.shape_cast %36 : vector<16xf32> to vector<1x16xf32>
    %38 = arith.addf %26, %37 : vector<1x16xf32>
    %39 = vector.shape_cast %31 : vector<16x16xf32> to vector<1x4x4x16xf32>
    %40 = tpu.concatenate %17, %18, %20, %21 in 3 : vector<1x4x4x32xbf16>, vector<1x4x4x32xbf16>, vector<1x4x4x32xbf16>, vector<1x4x4x32xbf16> -> vector<1x4x4x128xbf16>
    %41 = vector.shape_cast %40 : vector<1x4x4x128xbf16> to vector<16x128xbf16>
    %c1_58 = arith.constant 1 : index
    %c0_59 = arith.constant 0 : index
    %c0_60 = arith.constant 0 : index
    %42 = vector.load %arg4[%c1_58, %c0_59, %c0_60] : memref<4x128x16xbf16, #tpu.memory_space<vmem>>, vector<1x128x16xbf16>
    %43 = vector.shape_cast %42 : vector<1x128x16xbf16> to vector<128x16xbf16>
    %cst_61 = arith.constant dense<0.000000e+00> : vector<16x16xf32>
    %44 = tpu.matmul %41, %43, %cst_61 {dimension_numbers = #tpu.dot_dimension_numbers<[1], [0], [0], [1], [0, 0, 1, 1], [], []>} : vector<16x128xbf16>, vector<128x16xbf16>, vector<16x16xf32> -> vector<16x16xf32>
    %cst_62 = arith.constant dense<0.000000e+00> : vector<16xf32>
    %45 = vector.multi_reduction <add>, %44, %cst_62 [0] : vector<16x16xf32> to vector<16xf32>
    %46 = vector.shape_cast %45 : vector<16xf32> to vector<1x16xf32>
    %47 = arith.addf %34, %46 : vector<1x16xf32>
    %48 = arith.mulf %44, %44 : vector<16x16xf32>
    %cst_63 = arith.constant dense<0.000000e+00> : vector<16xf32>
    %49 = vector.multi_reduction <add>, %48, %cst_63 [0] : vector<16x16xf32> to vector<16xf32>
    %50 = vector.shape_cast %49 : vector<16xf32> to vector<1x16xf32>
    %51 = arith.addf %38, %50 : vector<1x16xf32>
    %52 = vector.shape_cast %44 : vector<16x16xf32> to vector<1x4x4x16xf32>
    %53 = tpu.concatenate %39, %52 in 3 : vector<1x4x4x16xf32>, vector<1x4x4x16xf32> -> vector<1x4x4x32xf32>
    %54 = arith.truncf %53 : vector<1x4x4x32xf32> to vector<1x4x4x32xbf16>
    %c0_64 = arith.constant 0 : index
    %c0_65 = arith.constant 0 : index
    %c0_66 = arith.constant 0 : index
    %c0_67 = arith.constant 0 : index
    %c0_68 = arith.constant 0 : index
    %55 = vector.load %arg5[%c0_64, %c0_65, %c0_66, %c0_67, %c0_68] : memref<1x4x2x4x32xbf16, #tpu.memory_space<vmem>>, vector<1x4x1x4x32xbf16>
    %56 = vector.shape_cast %55 : vector<1x4x1x4x32xbf16> to vector<1x4x4x32xbf16>
    %57 = vector.shape_cast %54 : vector<1x4x4x32xbf16> to vector<1x4x1x4x32xbf16>
    tpu.vector_store %arg5[%c0_64, %c0_65, %c0_66, %c0_67, %c0_68], %57 {strides = array<i32>} : memref<1x4x2x4x32xbf16, #tpu.memory_space<vmem>>, vector<1x4x1x4x32xbf16>,
    %58 = tpu.concatenate %19, %20, %22, %23 in 3 : vector<1x4x4x32xbf16>, vector<1x4x4x32xbf16>, vector<1x4x4x32xbf16>, vector<1x4x4x32xbf16> -> vector<1x4x4x128xbf16>
    %59 = vector.shape_cast %58 : vector<1x4x4x128xbf16> to vector<16x128xbf16>
    %c2_69 = arith.constant 2 : index
    %c0_70 = arith.constant 0 : index
    %c0_71 = arith.constant 0 : index
    %60 = vector.load %arg4[%c2_69, %c0_70, %c0_71] : memref<4x128x16xbf16, #tpu.memory_space<vmem>>, vector<1x128x16xbf16>
    %61 = vector.shape_cast %60 : vector<1x128x16xbf16> to vector<128x16xbf16>
    %cst_72 = arith.constant dense<0.000000e+00> : vector<16x16xf32>
    %62 = tpu.matmul %59, %61, %cst_72 {dimension_numbers = #tpu.dot_dimension_numbers<[1], [0], [0], [1], [0, 0, 1, 1], [], []>} : vector<16x128xbf16>, vector<128x16xbf16>, vector<16x16xf32> -> vector<16x16xf32>
    %cst_73 = arith.constant dense<0.000000e+00> : vector<16xf32>
    %63 = vector.multi_reduction <add>, %62, %cst_73 [0] : vector<16x16xf32> to vector<16xf32>
    %64 = vector.shape_cast %63 : vector<16xf32> to vector<1x16xf32>
    %65 = arith.addf %47, %64 : vector<1x16xf32>
    %66 = arith.mulf %62, %62 : vector<16x16xf32>
    %cst_74 = arith.constant dense<0.000000e+00> : vector<16xf32>
    %67 = vector.multi_reduction <add>, %66, %cst_74 [0] : vector<16x16xf32> to vector<16xf32>
    %68 = vector.shape_cast %67 : vector<16xf32> to vector<1x16xf32>
    %69 = arith.addf %51, %68 : vector<1x16xf32>
    %70 = vector.shape_cast %62 : vector<16x16xf32> to vector<1x4x4x16xf32>
    %71 = tpu.concatenate %20, %21, %23, %24 in 3 : vector<1x4x4x32xbf16>, vector<1x4x4x32xbf16>, vector<1x4x4x32xbf16>, vector<1x4x4x32xbf16> -> vector<1x4x4x128xbf16>
    %72 = vector.shape_cast %71 : vector<1x4x4x128xbf16> to vector<16x128xbf16>
    %c3 = arith.constant 3 : index
    %c0_75 = arith.constant 0 : index
    %c0_76 = arith.constant 0 : index
    %73 = vector.load %arg4[%c3, %c0_75, %c0_76] : memref<4x128x16xbf16, #tpu.memory_space<vmem>>, vector<1x128x16xbf16>
    %74 = vector.shape_cast %73 : vector<1x128x16xbf16> to vector<128x16xbf16>
    %cst_77 = arith.constant dense<0.000000e+00> : vector<16x16xf32>
    %75 = tpu.matmul %72, %74, %cst_77 {dimension_numbers = #tpu.dot_dimension_numbers<[1], [0], [0], [1], [0, 0, 1, 1], [], []>} : vector<16x128xbf16>, vector<128x16xbf16>, vector<16x16xf32> -> vector<16x16xf32>
    %cst_78 = arith.constant dense<0.000000e+00> : vector<16xf32>
    %76 = vector.multi_reduction <add>, %75, %cst_78 [0] : vector<16x16xf32> to vector<16xf32>
    %77 = vector.shape_cast %76 : vector<16xf32> to vector<1x16xf32>
    %78 = arith.addf %65, %77 : vector<1x16xf32>
    %79 = arith.mulf %75, %75 : vector<16x16xf32>
    %cst_79 = arith.constant dense<0.000000e+00> : vector<16xf32>
    %80 = vector.multi_reduction <add>, %79, %cst_79 [0] : vector<16x16xf32> to vector<16xf32>
    %81 = vector.shape_cast %80 : vector<16xf32> to vector<1x16xf32>
    %82 = arith.addf %69, %81 : vector<1x16xf32>
    %83 = vector.shape_cast %75 : vector<16x16xf32> to vector<1x4x4x16xf32>
    %84 = tpu.concatenate %70, %83 in 3 : vector<1x4x4x16xf32>, vector<1x4x4x16xf32> -> vector<1x4x4x32xf32>
    %85 = arith.truncf %84 : vector<1x4x4x32xf32> to vector<1x4x4x32xbf16>
    %c0_80 = arith.constant 0 : index
    %c0_81 = arith.constant 0 : index
    %c1_82 = arith.constant 1 : index
    %c0_83 = arith.constant 0 : index
    %c0_84 = arith.constant 0 : index
    %86 = vector.load %arg5[%c0_80, %c0_81, %c1_82, %c0_83, %c0_84] : memref<1x4x2x4x32xbf16, #tpu.memory_space<vmem>>, vector<1x4x1x4x32xbf16>
    %87 = vector.shape_cast %86 : vector<1x4x1x4x32xbf16> to vector<1x4x4x32xbf16>
    %88 = vector.shape_cast %85 : vector<1x4x4x32xbf16> to vector<1x4x1x4x32xbf16>
    tpu.vector_store %arg5[%c0_80, %c0_81, %c1_82, %c0_83, %c0_84], %88 {strides = array<i32>} : memref<1x4x2x4x32xbf16, #tpu.memory_space<vmem>>, vector<1x4x1x4x32xbf16>,
    %c0_85 = arith.constant 0 : index
    %c0_86 = arith.constant 0 : index
    %c0_87 = arith.constant 0 : index
    %89 = vector.load %arg6[%c0_85, %c0_86, %c0_87] : memref<1x1x16xf32, #tpu.memory_space<vmem>>, vector<1x1x16xf32>
    %90 = vector.shape_cast %89 : vector<1x1x16xf32> to vector<1x16xf32>
    %91 = vector.shape_cast %78 : vector<1x16xf32> to vector<1x1x16xf32>
    tpu.vector_store %arg6[%c0_85, %c0_86, %c0_87], %91 {strides = array<i32>} : memref<1x1x16xf32, #tpu.memory_space<vmem>>, vector<1x1x16xf32>,
    %c0_88 = arith.constant 0 : index
    %c0_89 = arith.constant 0 : index
    %c0_90 = arith.constant 0 : index
    %92 = vector.load %arg7[%c0_88, %c0_89, %c0_90] : memref<1x1x16xf32, #tpu.memory_space<vmem>>, vector<1x1x16xf32>
    %93 = vector.shape_cast %92 : vector<1x1x16xf32> to vector<1x16xf32>
    %94 = vector.shape_cast %82 : vector<1x16xf32> to vector<1x1x16xf32>
    tpu.vector_store %arg7[%c0_88, %c0_89, %c0_90], %94 {strides = array<i32>} : memref<1x1x16xf32, #tpu.memory_space<vmem>>, vector<1x1x16xf32>,
    return
  }
  func.func @transform_0(%arg0: i32) -> (i32, i32, i32, i32) {
    %c0_i32 = arith.constant 0 : i32
    %c0_i32_0 = arith.constant 0 : i32
    %c0_i32_1 = arith.constant 0 : i32
    %c0_i32_2 = arith.constant 0 : i32
    return %arg0, %c0_i32, %c0_i32_0, %c0_i32_1 : i32, i32, i32, i32
  }
  func.func @transform_1(%arg0: i32) -> (i32, i32) {
    %c0_i32 = arith.constant 0 : i32
    %c0_i32_0 = arith.constant 0 : i32
    %c0_i32_1 = arith.constant 0 : i32
    return %c0_i32, %c0_i32_0 : i32, i32
  }
  func.func @transform_2(%arg0: i32) -> (i32, i32) {
    %c0_i32 = arith.constant 0 : i32
    %c0_i32_0 = arith.constant 0 : i32
    %c0_i32_1 = arith.constant 0 : i32
    return %c0_i32, %c0_i32_0 : i32, i32
  }
  func.func @transform_3(%arg0: i32) -> (i32, i32, i32) {
    %c0_i32 = arith.constant 0 : i32
    %c0_i32_0 = arith.constant 0 : i32
    %c0_i32_1 = arith.constant 0 : i32
    %c0_i32_2 = arith.constant 0 : i32
    return %c0_i32, %c0_i32_0, %c0_i32_1 : i32, i32, i32
  }
  func.func @transform_4(%arg0: i32) -> (i32, i32, i32, i32, i32) {
    %c0_i32 = arith.constant 0 : i32
    %c0_i32_0 = arith.constant 0 : i32
    %c0_i32_1 = arith.constant 0 : i32
    %c0_i32_2 = arith.constant 0 : i32
    %c0_i32_3 = arith.constant 0 : i32
    return %arg0, %c0_i32, %c0_i32_0, %c0_i32_1, %c0_i32_2 : i32, i32, i32, i32, i32
  }
  func.func @transform_5(%arg0: i32) -> (i32, i32, i32) {
    %c0_i32 = arith.constant 0 : i32
    %c0_i32_0 = arith.constant 0 : i32
    %c0_i32_1 = arith.constant 0 : i32
    return %arg0, %c0_i32, %c0_i32_0 : i32, i32, i32
  }
  func.func @transform_6(%arg0: i32) -> (i32, i32, i32) {
    %c0_i32 = arith.constant 0 : i32
    %c0_i32_0 = arith.constant 0 : i32
    %c0_i32_1 = arith.constant 0 : i32
    return %arg0, %c0_i32, %c0_i32_0 : i32, i32, i32
  }
}

module attributes {stable_mosaic.version = 11 : i64} {
  func.func @kernel(%arg0: i32, %arg1: memref<1x8x8x16xbf16, #tpu.memory_space<vmem>>, %arg2: memref<1x16xf32, #tpu.memory_space<vmem>>, %arg3: memref<1x16xf32, #tpu.memory_space<vmem>>, %arg4: memref<4x64x128xbf16, #tpu.memory_space<vmem>>, %arg5: memref<1x128xf32, #tpu.memory_space<vmem>>, %arg6: memref<1x8x2x8x256xbf16, #tpu.memory_space<vmem>>, %arg7: memref<1x10x10x16xbf16, #tpu.memory_space<vmem>>) attributes {dimension_semantics = [#tpu.dimension_semantics<parallel>], iteration_bounds = array<i64: 2>, scalar_prefetch = 0 : i64, scratch_operands = 1 : i64, tpu.core_type = #tpu.core_type<tc>, window_params = [{transform_indices = @transform_0, window_bounds = array<i64: 1, 8, 8, 16>}, {pipeline_mode = #tpu.pipeline_mode<synchronous>, transform_indices = @transform_1, window_bounds = array<i64: 1, 16>}, {pipeline_mode = #tpu.pipeline_mode<synchronous>, transform_indices = @transform_2, window_bounds = array<i64: 1, 16>}, {pipeline_mode = #tpu.pipeline_mode<synchronous>, transform_indices = @transform_3, window_bounds = array<i64: 4, 64, 128>}, {pipeline_mode = #tpu.pipeline_mode<synchronous>, transform_indices = @transform_4, window_bounds = array<i64: 1, 128>}, {transform_indices = @transform_5, window_bounds = array<i64: 1, 8, 2, 8, 256>}]} {
    %cst = arith.constant 0.000000e+00 : bf16
    %0 = vector.broadcast %cst : bf16 to vector<1x10x10x16xbf16>
    %c0 = arith.constant 0 : index
    %c0_0 = arith.constant 0 : index
    %c0_1 = arith.constant 0 : index
    %c0_2 = arith.constant 0 : index
    %1 = vector.load %arg7[%c0, %c0_0, %c0_1, %c0_2] : memref<1x10x10x16xbf16, #tpu.memory_space<vmem>>, vector<1x10x10x16xbf16>
    tpu.vector_store %arg7[%c0, %c0_0, %c0_1, %c0_2], %0 {strides = array<i32>} : memref<1x10x10x16xbf16, #tpu.memory_space<vmem>>, vector<1x10x10x16xbf16>,
    %c0_3 = arith.constant 0 : index
    %c0_4 = arith.constant 0 : index
    %c0_5 = arith.constant 0 : index
    %c0_6 = arith.constant 0 : index
    %2 = vector.load %arg1[%c0_3, %c0_4, %c0_5, %c0_6] : memref<1x8x8x16xbf16, #tpu.memory_space<vmem>>, vector<1x8x8x16xbf16>
    %3 = arith.extf %2 : vector<1x8x8x16xbf16> to vector<1x8x8x16xf32>
    %c0_7 = arith.constant 0 : index
    %c0_8 = arith.constant 0 : index
    %4 = vector.load %arg2[%c0_7, %c0_8] : memref<1x16xf32, #tpu.memory_space<vmem>>, vector<1x16xf32>
    %5 = vector.shape_cast %4 : vector<1x16xf32> to vector<1x1x1x16xf32>
    %6 = vector.broadcast %5 : vector<1x1x1x16xf32> to vector<1x8x8x16xf32>
    %7 = arith.mulf %3, %6 : vector<1x8x8x16xf32>
    %c0_9 = arith.constant 0 : index
    %c0_10 = arith.constant 0 : index
    %8 = vector.load %arg3[%c0_9, %c0_10] : memref<1x16xf32, #tpu.memory_space<vmem>>, vector<1x16xf32>
    %9 = vector.shape_cast %8 : vector<1x16xf32> to vector<1x1x1x16xf32>
    %10 = vector.broadcast %9 : vector<1x1x1x16xf32> to vector<1x8x8x16xf32>
    %11 = arith.addf %7, %10 : vector<1x8x8x16xf32>
    %cst_11 = arith.constant 0.000000e+00 : f32
    %12 = vector.broadcast %cst_11 : f32 to vector<1x8x8x16xf32>
    %13 = arith.maximumf %11, %12 : vector<1x8x8x16xf32>
    %14 = arith.truncf %13 : vector<1x8x8x16xf32> to vector<1x8x8x16xbf16>
    %c0_12 = arith.constant 0 : index
    %c1 = arith.constant 1 : index
    %c1_13 = arith.constant 1 : index
    %c0_14 = arith.constant 0 : index
    %15 = vector.load %arg7[%c0_12, %c1, %c1_13, %c0_14] : memref<1x10x10x16xbf16, #tpu.memory_space<vmem>>, vector<1x8x8x16xbf16>
    tpu.vector_store %arg7[%c0_12, %c1, %c1_13, %c0_14], %14 {strides = array<i32>} : memref<1x10x10x16xbf16, #tpu.memory_space<vmem>>, vector<1x8x8x16xbf16>,
    %c0_15 = arith.constant 0 : index
    %c0_16 = arith.constant 0 : index
    %c0_17 = arith.constant 0 : index
    %c0_18 = arith.constant 0 : index
    %16 = vector.load %arg7[%c0_15, %c0_16, %c0_17, %c0_18] : memref<1x10x10x16xbf16, #tpu.memory_space<vmem>>, vector<1x8x8x16xbf16>
    %c0_19 = arith.constant 0 : index
    %c0_20 = arith.constant 0 : index
    %c1_21 = arith.constant 1 : index
    %c0_22 = arith.constant 0 : index
    %17 = vector.load %arg7[%c0_19, %c0_20, %c1_21, %c0_22] : memref<1x10x10x16xbf16, #tpu.memory_space<vmem>>, vector<1x8x8x16xbf16>
    %c0_23 = arith.constant 0 : index
    %c0_24 = arith.constant 0 : index
    %c2 = arith.constant 2 : index
    %c0_25 = arith.constant 0 : index
    %18 = vector.load %arg7[%c0_23, %c0_24, %c2, %c0_25] : memref<1x10x10x16xbf16, #tpu.memory_space<vmem>>, vector<1x8x8x16xbf16>
    %c0_26 = arith.constant 0 : index
    %c1_27 = arith.constant 1 : index
    %c0_28 = arith.constant 0 : index
    %c0_29 = arith.constant 0 : index
    %19 = vector.load %arg7[%c0_26, %c1_27, %c0_28, %c0_29] : memref<1x10x10x16xbf16, #tpu.memory_space<vmem>>, vector<1x8x8x16xbf16>
    %c0_30 = arith.constant 0 : index
    %c1_31 = arith.constant 1 : index
    %c1_32 = arith.constant 1 : index
    %c0_33 = arith.constant 0 : index
    %20 = vector.load %arg7[%c0_30, %c1_31, %c1_32, %c0_33] : memref<1x10x10x16xbf16, #tpu.memory_space<vmem>>, vector<1x8x8x16xbf16>
    %c0_34 = arith.constant 0 : index
    %c1_35 = arith.constant 1 : index
    %c2_36 = arith.constant 2 : index
    %c0_37 = arith.constant 0 : index
    %21 = vector.load %arg7[%c0_34, %c1_35, %c2_36, %c0_37] : memref<1x10x10x16xbf16, #tpu.memory_space<vmem>>, vector<1x8x8x16xbf16>
    %c0_38 = arith.constant 0 : index
    %c2_39 = arith.constant 2 : index
    %c0_40 = arith.constant 0 : index
    %c0_41 = arith.constant 0 : index
    %22 = vector.load %arg7[%c0_38, %c2_39, %c0_40, %c0_41] : memref<1x10x10x16xbf16, #tpu.memory_space<vmem>>, vector<1x8x8x16xbf16>
    %c0_42 = arith.constant 0 : index
    %c2_43 = arith.constant 2 : index
    %c1_44 = arith.constant 1 : index
    %c0_45 = arith.constant 0 : index
    %23 = vector.load %arg7[%c0_42, %c2_43, %c1_44, %c0_45] : memref<1x10x10x16xbf16, #tpu.memory_space<vmem>>, vector<1x8x8x16xbf16>
    %c0_46 = arith.constant 0 : index
    %c2_47 = arith.constant 2 : index
    %c2_48 = arith.constant 2 : index
    %c0_49 = arith.constant 0 : index
    %24 = vector.load %arg7[%c0_46, %c2_47, %c2_48, %c0_49] : memref<1x10x10x16xbf16, #tpu.memory_space<vmem>>, vector<1x8x8x16xbf16>
    %25 = tpu.concatenate %16, %17, %19, %20 in 3 : vector<1x8x8x16xbf16>, vector<1x8x8x16xbf16>, vector<1x8x8x16xbf16>, vector<1x8x8x16xbf16> -> vector<1x8x8x64xbf16>
    %26 = vector.shape_cast %25 : vector<1x8x8x64xbf16> to vector<64x64xbf16>
    %c0_50 = arith.constant 0 : index
    %c0_51 = arith.constant 0 : index
    %c0_52 = arith.constant 0 : index
    %27 = vector.load %arg4[%c0_50, %c0_51, %c0_52] : memref<4x64x128xbf16, #tpu.memory_space<vmem>>, vector<1x64x128xbf16>
    %28 = vector.shape_cast %27 : vector<1x64x128xbf16> to vector<64x128xbf16>
    %cst_53 = arith.constant dense<0.000000e+00> : vector<64x128xf32>
    %29 = tpu.matmul %26, %28, %cst_53 {dimension_numbers = #tpu.dot_dimension_numbers<[1], [0], [0], [1], [0, 0, 1, 1], [], []>} : vector<64x64xbf16>, vector<64x128xbf16>, vector<64x128xf32> -> vector<64x128xf32>
    %c0_54 = arith.constant 0 : index
    %c0_55 = arith.constant 0 : index
    %30 = vector.load %arg5[%c0_54, %c0_55] : memref<1x128xf32, #tpu.memory_space<vmem>>, vector<1x128xf32>
    %31 = vector.broadcast %30 : vector<1x128xf32> to vector<64x128xf32>
    %32 = arith.addf %29, %31 : vector<64x128xf32>
    %33 = math.tanh %32 : vector<64x128xf32>
    %34 = vector.shape_cast %33 : vector<64x128xf32> to vector<1x8x8x128xf32>
    %35 = tpu.concatenate %17, %18, %20, %21 in 3 : vector<1x8x8x16xbf16>, vector<1x8x8x16xbf16>, vector<1x8x8x16xbf16>, vector<1x8x8x16xbf16> -> vector<1x8x8x64xbf16>
    %36 = vector.shape_cast %35 : vector<1x8x8x64xbf16> to vector<64x64xbf16>
    %c1_56 = arith.constant 1 : index
    %c0_57 = arith.constant 0 : index
    %c0_58 = arith.constant 0 : index
    %37 = vector.load %arg4[%c1_56, %c0_57, %c0_58] : memref<4x64x128xbf16, #tpu.memory_space<vmem>>, vector<1x64x128xbf16>
    %38 = vector.shape_cast %37 : vector<1x64x128xbf16> to vector<64x128xbf16>
    %cst_59 = arith.constant dense<0.000000e+00> : vector<64x128xf32>
    %39 = tpu.matmul %36, %38, %cst_59 {dimension_numbers = #tpu.dot_dimension_numbers<[1], [0], [0], [1], [0, 0, 1, 1], [], []>} : vector<64x64xbf16>, vector<64x128xbf16>, vector<64x128xf32> -> vector<64x128xf32>
    %c0_60 = arith.constant 0 : index
    %c0_61 = arith.constant 0 : index
    %40 = vector.load %arg5[%c0_60, %c0_61] : memref<1x128xf32, #tpu.memory_space<vmem>>, vector<1x128xf32>
    %41 = vector.broadcast %40 : vector<1x128xf32> to vector<64x128xf32>
    %42 = arith.addf %39, %41 : vector<64x128xf32>
    %43 = math.tanh %42 : vector<64x128xf32>
    %44 = vector.shape_cast %43 : vector<64x128xf32> to vector<1x8x8x128xf32>
    %45 = tpu.concatenate %34, %44 in 3 : vector<1x8x8x128xf32>, vector<1x8x8x128xf32> -> vector<1x8x8x256xf32>
    %46 = arith.truncf %45 : vector<1x8x8x256xf32> to vector<1x8x8x256xbf16>
    %c0_62 = arith.constant 0 : index
    %c0_63 = arith.constant 0 : index
    %c0_64 = arith.constant 0 : index
    %c0_65 = arith.constant 0 : index
    %c0_66 = arith.constant 0 : index
    %47 = vector.load %arg6[%c0_62, %c0_63, %c0_64, %c0_65, %c0_66] : memref<1x8x2x8x256xbf16, #tpu.memory_space<vmem>>, vector<1x8x1x8x256xbf16>
    %48 = vector.shape_cast %47 : vector<1x8x1x8x256xbf16> to vector<1x8x8x256xbf16>
    %49 = vector.shape_cast %46 : vector<1x8x8x256xbf16> to vector<1x8x1x8x256xbf16>
    tpu.vector_store %arg6[%c0_62, %c0_63, %c0_64, %c0_65, %c0_66], %49 {strides = array<i32>} : memref<1x8x2x8x256xbf16, #tpu.memory_space<vmem>>, vector<1x8x1x8x256xbf16>,
    %50 = tpu.concatenate %19, %20, %22, %23 in 3 : vector<1x8x8x16xbf16>, vector<1x8x8x16xbf16>, vector<1x8x8x16xbf16>, vector<1x8x8x16xbf16> -> vector<1x8x8x64xbf16>
    %51 = vector.shape_cast %50 : vector<1x8x8x64xbf16> to vector<64x64xbf16>
    %c2_67 = arith.constant 2 : index
    %c0_68 = arith.constant 0 : index
    %c0_69 = arith.constant 0 : index
    %52 = vector.load %arg4[%c2_67, %c0_68, %c0_69] : memref<4x64x128xbf16, #tpu.memory_space<vmem>>, vector<1x64x128xbf16>
    %53 = vector.shape_cast %52 : vector<1x64x128xbf16> to vector<64x128xbf16>
    %cst_70 = arith.constant dense<0.000000e+00> : vector<64x128xf32>
    %54 = tpu.matmul %51, %53, %cst_70 {dimension_numbers = #tpu.dot_dimension_numbers<[1], [0], [0], [1], [0, 0, 1, 1], [], []>} : vector<64x64xbf16>, vector<64x128xbf16>, vector<64x128xf32> -> vector<64x128xf32>
    %c0_71 = arith.constant 0 : index
    %c0_72 = arith.constant 0 : index
    %55 = vector.load %arg5[%c0_71, %c0_72] : memref<1x128xf32, #tpu.memory_space<vmem>>, vector<1x128xf32>
    %56 = vector.broadcast %55 : vector<1x128xf32> to vector<64x128xf32>
    %57 = arith.addf %54, %56 : vector<64x128xf32>
    %58 = math.tanh %57 : vector<64x128xf32>
    %59 = vector.shape_cast %58 : vector<64x128xf32> to vector<1x8x8x128xf32>
    %60 = tpu.concatenate %20, %21, %23, %24 in 3 : vector<1x8x8x16xbf16>, vector<1x8x8x16xbf16>, vector<1x8x8x16xbf16>, vector<1x8x8x16xbf16> -> vector<1x8x8x64xbf16>
    %61 = vector.shape_cast %60 : vector<1x8x8x64xbf16> to vector<64x64xbf16>
    %c3 = arith.constant 3 : index
    %c0_73 = arith.constant 0 : index
    %c0_74 = arith.constant 0 : index
    %62 = vector.load %arg4[%c3, %c0_73, %c0_74] : memref<4x64x128xbf16, #tpu.memory_space<vmem>>, vector<1x64x128xbf16>
    %63 = vector.shape_cast %62 : vector<1x64x128xbf16> to vector<64x128xbf16>
    %cst_75 = arith.constant dense<0.000000e+00> : vector<64x128xf32>
    %64 = tpu.matmul %61, %63, %cst_75 {dimension_numbers = #tpu.dot_dimension_numbers<[1], [0], [0], [1], [0, 0, 1, 1], [], []>} : vector<64x64xbf16>, vector<64x128xbf16>, vector<64x128xf32> -> vector<64x128xf32>
    %c0_76 = arith.constant 0 : index
    %c0_77 = arith.constant 0 : index
    %65 = vector.load %arg5[%c0_76, %c0_77] : memref<1x128xf32, #tpu.memory_space<vmem>>, vector<1x128xf32>
    %66 = vector.broadcast %65 : vector<1x128xf32> to vector<64x128xf32>
    %67 = arith.addf %64, %66 : vector<64x128xf32>
    %68 = math.tanh %67 : vector<64x128xf32>
    %69 = vector.shape_cast %68 : vector<64x128xf32> to vector<1x8x8x128xf32>
    %70 = tpu.concatenate %59, %69 in 3 : vector<1x8x8x128xf32>, vector<1x8x8x128xf32> -> vector<1x8x8x256xf32>
    %71 = arith.truncf %70 : vector<1x8x8x256xf32> to vector<1x8x8x256xbf16>
    %c0_78 = arith.constant 0 : index
    %c0_79 = arith.constant 0 : index
    %c1_80 = arith.constant 1 : index
    %c0_81 = arith.constant 0 : index
    %c0_82 = arith.constant 0 : index
    %72 = vector.load %arg6[%c0_78, %c0_79, %c1_80, %c0_81, %c0_82] : memref<1x8x2x8x256xbf16, #tpu.memory_space<vmem>>, vector<1x8x1x8x256xbf16>
    %73 = vector.shape_cast %72 : vector<1x8x1x8x256xbf16> to vector<1x8x8x256xbf16>
    %74 = vector.shape_cast %71 : vector<1x8x8x256xbf16> to vector<1x8x1x8x256xbf16>
    tpu.vector_store %arg6[%c0_78, %c0_79, %c1_80, %c0_81, %c0_82], %74 {strides = array<i32>} : memref<1x8x2x8x256xbf16, #tpu.memory_space<vmem>>, vector<1x8x1x8x256xbf16>,
    return
  }
  func.func @transform_0(%arg0: i32) -> (i32, i32, i32, i32) {
    %c0_i32 = arith.constant 0 : i32
    %c0_i32_0 = arith.constant 0 : i32
    %c0_i32_1 = arith.constant 0 : i32
    %c0_i32_2 = arith.constant 0 : i32
    return %arg0, %c0_i32, %c0_i32_0, %c0_i32_1 : i32, i32, i32, i32
  }
  func.func @transform_1(%arg0: i32) -> (i32, i32) {
    %c0_i32 = arith.constant 0 : i32
    %c0_i32_0 = arith.constant 0 : i32
    %c0_i32_1 = arith.constant 0 : i32
    return %c0_i32, %c0_i32_0 : i32, i32
  }
  func.func @transform_2(%arg0: i32) -> (i32, i32) {
    %c0_i32 = arith.constant 0 : i32
    %c0_i32_0 = arith.constant 0 : i32
    %c0_i32_1 = arith.constant 0 : i32
    return %c0_i32, %c0_i32_0 : i32, i32
  }
  func.func @transform_3(%arg0: i32) -> (i32, i32, i32) {
    %c0_i32 = arith.constant 0 : i32
    %c0_i32_0 = arith.constant 0 : i32
    %c0_i32_1 = arith.constant 0 : i32
    %c0_i32_2 = arith.constant 0 : i32
    return %c0_i32, %c0_i32_0, %c0_i32_1 : i32, i32, i32
  }
  func.func @transform_4(%arg0: i32) -> (i32, i32) {
    %c0_i32 = arith.constant 0 : i32
    %c0_i32_0 = arith.constant 0 : i32
    %c0_i32_1 = arith.constant 0 : i32
    return %c0_i32, %c0_i32_0 : i32, i32
  }
  func.func @transform_5(%arg0: i32) -> (i32, i32, i32, i32, i32) {
    %c0_i32 = arith.constant 0 : i32
    %c0_i32_0 = arith.constant 0 : i32
    %c0_i32_1 = arith.constant 0 : i32
    %c0_i32_2 = arith.constant 0 : i32
    %c0_i32_3 = arith.constant 0 : i32
    return %arg0, %c0_i32, %c0_i32_0, %c0_i32_1, %c0_i32_2 : i32, i32, i32, i32, i32
  }
}

</mosaic_0001>

<bundles_post_ra>
// kernel: dcgan_generator_forward.3
= control target key start
LH: loop header
LB: loop body
LE: loop exit
PB: predicated region body
PF: predicated region fallthrough
CT: control target
= control target key end

     0   :  { %v555_v1 = vmov 0   ;;  %vm40_vm0 = vcmask 130048   ;;  %v556_v6 = vmov 1966171168   ;;  %v139_v8 = vlaneseq  ;;  %s558_s25 = smov 96   ;;  %s559_s26 = smov 32   ;;  %s725_s1 = inlined_call_operand.vmem [shape: bf16[16,512], index: 1, kind: input, shape index: {}]   ;;  %s726_s0 = inlined_call_operand.vmem [shape: bf16[2,16], index: 0, kind: input, shape index: {}]   ;;  %s727_s2 = inlined_call_operand.vmem [shape: bf16[2,512], index: 2, kind: output, shape index: {0}]   ;;  %s728_s3 = inlined_call_operand.vmem [shape: f32[1,32], index: 3, kind: output, shape index: {1}]   ;;  %s729_s4 = inlined_call_operand.vmem [shape: f32[1,32], index: 4, kind: output, shape index: {2}]  }
   0x1   :  { %v549_v0 = vld [vmem:[%s725_s1 + $0x4] ss:$16 sps:$4 sm:$0xff]   ;;  %76 = vmatprep.mubr.bf16.mxu0 %v555_v1  ;;  %117 = vmatprep.mubr.bf16.mxu1 %v555_v1  ;;  %v551_v2 = vld [vmem:[%s725_s1 + $0xc] ss:$16 sps:$4 sm:$0xff]   ;;  %v553_v3 = vld [vmem:[%s725_s1] ss:$16 sps:$4 sm:$0xff]   ;;  %v137_v7 = vunpack.c.l.s4 %v556_v6 }
   0x2   :  { %44 = vmatprep.subr.bf16.mxu0 %v549_v0  ;;  %v554_v4 = vld [vmem:[%s725_s1 + $0x8] ss:$16 sps:$4 sm:$0xff]   ;;  %85 = vmatprep.subr.bf16.mxu1 %v551_v2  ;;  %v15_v5 = vld [vmem:[%s726_s0] sm:$0x1]  ;;  %v140_v10 = vshrl.u32 %v139_v8, 7  ;;  %vm203_vm1 = vcmask 779776  }
   0x3   :  { %45 = vmatpush1.bf16.msra.mxu0 %v553_v3  ;;  %86 = vmatpush1.bf16.msra.mxu1 %v554_v4  ;;  %v138_v9 = vunpack.c.0.s8 %v137_v7  ;;  %vm178_vm2 = vcmask 517376   ;;  %vm228_vm3 = vcmask 1042176   ;;  %vm160_vm4 = vcmask 254976  }
   0x4   :  { %vm520_vm5 = vcmask 253952  }
   0x5   :  { %v141_v13 = vsub.s32 %v138_v9, %v140_v10 }
   0x6   :  { %539 = vmatmul.mubr.msk.bf16.vlgmr.msra.gmra.mrb[0].mxu0 %vm40_vm0, %v15_v5  ;;  %540 = vmatmul.mubr.msk.bf16.vlgmr.msra.gmra.mrb[0].mxu1 %vm40_vm0, %v15_v5 }
  0xd9   :  { %v600_v11 = vpop.f32.mrb[0].mxu0  ;;  %v602_v12 = vpop.f32.mrb[0].mxu1 }
  0xda   :  { %v606_v14 = vmul.f32 %v600_v11, %v600_v11  ;;  %v608_v15 = vpop.f32.mrb[1].mxu0  ;;  %v610_v16 = vpop.f32.mrb[1].mxu1  ;;  %v204_v17 = vsel %vm203_vm1, %v600_v11, 0.0  ;;  %v179_v18 = vsel %vm178_vm2, %v600_v11, 0.0  ;;  %v618_v19 = vmul.f32 %v602_v12, %v602_v12 }
  0xdb   :  { %v541_v20 = vpack.c.bf16 %v608_v15, %v600_v11  ;;  %v624_v21 = vmul.f32 %v608_v15, %v608_v15  ;;  %v542_v22 = vpack.c.bf16 %v610_v16, %v602_v12  ;;  %v82_v23 = vpop.f32.mrb[2].mxu0  ;;  %v123_v24 = vpop.f32.mrb[2].mxu1  ;;  %v205_v27 = vrot.slane %v204_v17, 4 }
  0xdc   :  { %v83_v25 = vpop.f32.mrb[3].mxu0  ;;  %v124_v26 = vpop.f32.mrb[3].mxu1  ;;  %v180_v28 = vrot.slane %v179_v18, 4  ;;  %v229_v29 = vsel %vm228_vm3, %v600_v11, 0.0  ;;  %v216_v30 = vsel %vm203_vm1, %v606_v14, 0.0  ;;  %v241_v37 = vsel %vm228_vm3, %v606_v14, 0.0 }
  0xdd   :  { %v142_v31 = vrot.slane %v541_v20, %v141_v13  ;;  %v149_v32 = vrot.slane %v542_v22, %v141_v13  ;;  %v230_v33 = vrot.slane %v229_v29, 4  ;;  %v217_v34 = vrot.slane %v216_v30, 4 }
  0xde   :  { %v206_v35 = vadd.f32 %v205_v27, %v204_v17  ;;  %v181_v36 = vadd.f32 %v180_v28, %v179_v18  ;;  %v270_v38 = vsel %vm178_vm2, %v608_v15, 0.0  ;;  %v242_v42 = vrot.slane %v241_v37, 4 }
  0xdf   :  { %v150_v39 = vcombine.low %v142_v31, %v149_v32  ;;  %v231_v40 = vadd.f32 %v230_v33, %v229_v29  ;;  %v218_v41 = vadd.f32 %v217_v34, %v216_v30  ;;  %v271_v45 = vrot.slane %v270_v38, 4 }
  0xe0   :  { %v207_v43 = vrot.slane %v206_v35, 2  ;;  %v182_v44 = vrot.slane %v181_v36, 2  ;;  %v371_v46 = vsel %vm178_vm2, %v618_v19, 0.0  ;;  %v243_v49 = vadd.f32 %v242_v42, %v241_v37 }
  0xe1   :  { %543 = vst.sshfl [vmem:[%s727_s2] sm:$0x55 pattern:$0x73625140] %v150_v39  ;;  %v232_v47 = vrot.slane %v231_v40, 2  ;;  %v219_v48 = vrot.slane %v218_v41, 2  ;;  %v372_v50 = vrot.slane %v371_v46, 4  ;;  %v272_v53 = vadd.f32 %v271_v45, %v270_v38 }
  0xe2   :  { %v208_v51 = vadd.f32 %v207_v43, %v206_v35  ;;  %v183_v52 = vadd.f32 %v182_v44, %v181_v36  ;;  %v294_v54 = vsel %vm203_vm1, %v608_v15, 0.0  ;;  %v244_v57 = vrot.slane %v243_v49, 2  ;;  %s557_s2 = smov 64  }
  0xe3   :  { %v233_v55 = vadd.f32 %v232_v47, %v231_v40  ;;  %v220_v56 = vadd.f32 %v219_v48, %v218_v41  ;;  %v373_v58 = vadd.f32 %v372_v50, %v371_v46  ;;  %v273_v61 = vrot.slane %v272_v53, 2 }
  0xe4   :  { %v209_v59 = vrot.slane %v208_v51, 1  ;;  %v184_v60 = vrot.slane %v183_v52, 1  ;;  %v295_v62 = vrot.slane %v294_v54, 4  ;;  %v245_v1 = vadd.f32 %v244_v57, %v243_v49 }
  0xe5   :  { %v234_v63 = vrot.slane %v233_v55, 1  ;;  %v221_v0 = vrot.slane %v220_v56, 1  ;;  %v374_v2 = vrot.slane %v373_v58, 2  ;;  %v274_v5 = vadd.f32 %v273_v61, %v272_v53 }
  0xe6   :  { %v210_v3 = vadd.f32 %v209_v59, %v208_v51  ;;  %v185_v4 = vadd.f32 %v184_v60, %v183_v52  ;;  %v296_v6 = vadd.f32 %v295_v62, %v294_v54  ;;  %v246_v9 = vrot.slane %v245_v1, 1 }
  0xe7   :  { %v235_v7 = vadd.f32 %v234_v63, %v233_v55  ;;  %v222_v8 = vadd.f32 %v221_v0, %v220_v56  ;;  %v375_v10 = vadd.f32 %v374_v2, %v373_v58  ;;  %v275_v13 = vrot.slane %v274_v5, 1 }
  0xe8   :  { %212 = vrot.lane.b32.xlu1 %v210_v3, %s557_s2  ;;  %187 = vrot.lane.b32.xlu0 %v185_v4, %s558_s25  ;;  %v297_v17 = vrot.slane %v296_v6, 2  ;;  %v395_v18 = vsel %vm203_vm1, %v618_v19, 0.0  ;;  %v191_v20 = vsel %vm178_vm2, %v606_v14, 0.0  ;;  %v247_v22 = vadd.f32 %v246_v9, %v245_v1 }
  0xe9   :  { %v376_v23 = vrot.slane %v375_v10, 1  ;;  %v396_v24 = vrot.slane %v395_v18, 4  ;;  %v192_v25 = vrot.slane %v191_v20, 4  ;;  %v276_v26 = vadd.f32 %v275_v13, %v274_v5 }
  0xea   :  { %v298_v27 = vadd.f32 %v297_v17, %v296_v6  ;;  %v318_v28 = vsel %vm228_vm3, %v608_v15, 0.0  ;;  %v282_v29 = vsel %vm178_vm2, %v624_v21, 0.0  ;;  %v359_v36 = vsel %vm178_vm2, %v602_v12, 0.0 }
  0xeb   :  { %v377_v30 = vadd.f32 %v376_v23, %v375_v10  ;;  %v397_v31 = vadd.f32 %v396_v24, %v395_v18  ;;  %v193_v32 = vadd.f32 %v192_v25, %v191_v20  ;;  %v319_v33 = vrot.slane %v318_v28, 4 }
  0xec   :  { %237 = vrot.lane.b32.xlu0 %v235_v7, %s559_s26  ;;  %224 = vrot.lane.b32.xlu1 %v222_v8, %s557_s2  ;;  %v299_v34 = vrot.slane %v298_v27, 1  ;;  %v283_v35 = vrot.slane %v282_v29, 4  ;;  %v306_v37 = vsel %vm203_vm1, %v624_v21, 0.0  ;;  %v360_v41 = vrot.slane %v359_v36, 4 }
  0xed   :  { %v398_v38 = vrot.slane %v397_v31, 2  ;;  %v194_v39 = vrot.slane %v193_v32, 2  ;;  %v320_v40 = vadd.f32 %v319_v33, %v318_v28  ;;  %v307_v44 = vrot.slane %v306_v37, 4 }
  0xee   :  { %v300_v42 = vadd.f32 %v299_v34, %v298_v27  ;;  %v284_v43 = vadd.f32 %v283_v35, %v282_v29  ;;  %v383_v45 = vsel %vm203_vm1, %v602_v12, 0.0  ;;  %v361_v49 = vadd.f32 %v360_v41, %v359_v36 }
  0xef   :  { %v399_v46 = vadd.f32 %v398_v38, %v397_v31  ;;  %v195_v47 = vadd.f32 %v194_v39, %v193_v32  ;;  %v321_v48 = vrot.slane %v320_v40, 2  ;;  %v308_v51 = vadd.f32 %v307_v44, %v306_v37 }
  0xf0   :  { %249 = vrot.lane.b32.xlu1 %v247_v22, %s559_s26  ;;  %278 = vrot.lane.b32.xlu0 %v276_v26, %s558_s25  ;;  %v285_v50 = vrot.slane %v284_v43, 2  ;;  %v384_v52 = vrot.slane %v383_v45, 4  ;;  %v330_v53 = vsel %vm228_vm3, %v624_v21, 0.0  ;;  %v362_v57 = vrot.slane %v361_v49, 2 }
  0xf1   :  { %v400_v54 = vrot.slane %v399_v46, 1  ;;  %v196_v55 = vrot.slane %v195_v47, 1  ;;  %v322_v56 = vadd.f32 %v321_v48, %v320_v40  ;;  %v309_v59 = vrot.slane %v308_v51, 2 }
  0xf2   :  { %v286_v58 = vadd.f32 %v285_v50, %v284_v43  ;;  %v385_v60 = vadd.f32 %v384_v52, %v383_v45  ;;  %v331_v61 = vrot.slane %v330_v53, 4  ;;  %v363_v63 = vadd.f32 %v362_v57, %v361_v49 }
  0xf3   :  { %v323_v62 = vrot.slane %v322_v56, 1  ;;  %v310_v1 = vadd.f32 %v309_v59, %v308_v51  ;;  %v669_v4 = vmul.f32 %v610_v16, %v610_v16  ;;  %v407_v6 = vsel %vm228_vm3, %v602_v12, 0.0 }
  0xf4   :  { %379 = vrot.lane.b32.xlu1 %v377_v30, %s558_s25  ;;  %302 = vrot.lane.b32.xlu0 %v300_v42, %s557_s2  ;;  %v287_v0 = vrot.slane %v286_v58, 1  ;;  %v386_v2 = vrot.slane %v385_v60, 2  ;;  %v332_v3 = vadd.f32 %v331_v61, %v330_v53  ;;  %v364_v5 = vrot.slane %v363_v63, 1 }
  0xf5   :  { %v419_v7 = vsel %vm228_vm3, %v618_v19, 0.0  ;;  %v401_v8 = vadd.f32 %v400_v54, %v399_v46  ;;  %v197_v9 = vadd.f32 %v196_v55, %v195_v47  ;;  %v311_v10 = vrot.slane %v310_v1, 1 }
  0xf6   :  { %v333_v13 = vrot.slane %v332_v3, 2  ;;  %v324_v17 = vadd.f32 %v323_v62, %v322_v56  ;;  %v408_v18 = vrot.slane %v407_v6, 4  ;;  %v420_v20 = vrot.slane %v419_v7, 4 }
  0xf7   :  { %v448_v22 = vsel %vm178_vm2, %v610_v16, 0.0  ;;  %v288_v23 = vadd.f32 %v287_v0, %v286_v58  ;;  %v365_v24 = vadd.f32 %v364_v5, %v363_v63  ;;  %v387_v25 = vadd.f32 %v386_v2, %v385_v60 }
  0xf8   :  { %403 = vrot.lane.b32.xlu1 %v401_v8, %s557_s2  ;;  %199 = vrot.lane.b32.xlu0 %v197_v9, %s558_s25  ;;  %v449_v26 = vrot.slane %v448_v22, 4  ;;  %v409_v27 = vadd.f32 %v408_v18, %v407_v6  ;;  %v421_v28 = vadd.f32 %v420_v20, %v419_v7  ;;  %v460_v29 = vsel %vm178_vm2, %v669_v4, 0.0 }
  0xf9   :  { %v472_v30 = vsel %vm203_vm1, %v610_v16, 0.0  ;;  %v312_v31 = vadd.f32 %v311_v10, %v310_v1  ;;  %v334_v32 = vadd.f32 %v333_v13, %v332_v3  ;;  %v461_v34 = vrot.slane %v460_v29, 4 }
  0xfa   :  { %v450_v33 = vadd.f32 %v449_v26, %v448_v22  ;;  %v410_v35 = vrot.slane %v409_v27, 2  ;;  %v422_v36 = vrot.slane %v421_v28, 2  ;;  %v473_v37 = vrot.slane %v472_v30, 4 }
  0xfb   :  { %v484_v38 = vsel %vm203_vm1, %v669_v4, 0.0  ;;  %v388_v39 = vrot.slane %v387_v25, 1  ;;  %v462_v41 = vadd.f32 %v461_v34, %v460_v29  ;;  %v496_v46 = vsel %vm228_vm3, %v610_v16, 0.0 }
  0xfc   :  { %326 = vrot.lane.b32.xlu0 %v324_v17, %s559_s26  ;;  %290 = vrot.lane.b32.xlu1 %v288_v23, %s558_s25  ;;  %v451_v40 = vrot.slane %v450_v33, 2  ;;  %v485_v42 = vrot.slane %v484_v38, 4  ;;  %v411_v43 = vadd.f32 %v410_v35, %v409_v27  ;;  %v423_v44 = vadd.f32 %v422_v36, %v421_v28 }
  0xfd   :  { %v474_v45 = vadd.f32 %v473_v37, %v472_v30  ;;  %v335_v47 = vrot.slane %v334_v32, 1  ;;  %v463_v48 = vrot.slane %v462_v41, 2  ;;  %v497_v50 = vrot.slane %v496_v46, 4 }
  0xfe   :  { %v486_v49 = vadd.f32 %v485_v42, %v484_v38  ;;  %v508_v51 = vsel %vm228_vm3, %v669_v4, 0.0  ;;  %v389_v52 = vadd.f32 %v388_v39, %v387_v25  ;;  %v452_v53 = vadd.f32 %v451_v40, %v450_v33 }
  0xff   :  { %v412_v54 = vrot.slane %v411_v43, 1  ;;  %v424_v55 = vrot.slane %v423_v44, 1  ;;  %v475_v56 = vrot.slane %v474_v45, 2  ;;  %v509_v57 = vrot.slane %v508_v51, 4 }
 0x100   :  { %367 = vrot.lane.b32.xlu0 %v365_v24, %s558_s25  ;;  %314 = vrot.lane.b32.xlu1 %v312_v31, %s557_s2  ;;  %v336_v58 = vadd.f32 %v335_v47, %v334_v32  ;;  %v464_v59 = vadd.f32 %v463_v48, %v462_v41  ;;  %v487_v60 = vrot.slane %v486_v49, 2  ;;  %v498_v61 = vadd.f32 %v497_v50, %v496_v46 }
 0x101   :  { %v510_v62 = vadd.f32 %v509_v57, %v508_v51  ;;  %v413_v63 = vadd.f32 %v412_v54, %v411_v43  ;;  %v425_v0 = vadd.f32 %v424_v55, %v423_v44  ;;  %v453_v1 = vrot.slane %v452_v53, 1 }
 0x102   :  { %v476_v2 = vadd.f32 %v475_v56, %v474_v45  ;;  %v465_v3 = vrot.slane %v464_v59, 1  ;;  %v488_v5 = vadd.f32 %v487_v60, %v486_v49  ;;  %v499_v6 = vrot.slane %v498_v61, 2 }
 0x103   :  { %v511_v7 = vrot.slane %v510_v62, 2  ;;  %v454_v8 = vadd.f32 %v453_v1, %v452_v53  ;;  %v161_v27 = vsel %vm160_vm4, %v600_v11, 0.0  ;;  %v253_v29 = vsel %vm160_vm4, %v608_v15, 0.0 }
 0x104   :  { %391 = vrot.lane.b32.xlu0 %v389_v52, %s557_s2  ;;  %338 = vrot.lane.b32.xlu1 %v336_v58, %s559_s26  ;;  %v477_v9 = vrot.slane %v476_v2, 1  ;;  %v466_v10 = vadd.f32 %v465_v3, %v464_v59  ;;  %v489_v13 = vrot.slane %v488_v5, 1  ;;  %v500_v17 = vadd.f32 %v499_v6, %v498_v61 }
 0x105   :  { %v512_v18 = vadd.f32 %v511_v7, %v510_v62  ;;  %v162_v28 = vrot.slane %v161_v27, 4  ;;  %v254_v31 = vrot.slane %v253_v29, 4  ;;  %v170_v35 = vsel %vm160_vm4, %v606_v14, 0.0 }
 0x106   :  { %v478_v20 = vadd.f32 %v477_v9, %v476_v2  ;;  %v490_v22 = vadd.f32 %v489_v13, %v488_v5  ;;  %v501_v23 = vrot.slane %v500_v17, 1  ;;  %v171_v38 = vrot.slane %v170_v35, 4 }
 0x107   :  { %v513_v24 = vrot.slane %v512_v18, 1  ;;  %v163_v30 = vadd.f32 %v162_v28, %v161_v27  ;;  %v255_v33 = vadd.f32 %v254_v31, %v253_v29  ;;  %v262_v40 = vsel %vm160_vm4, %v624_v21, 0.0 }
 0x108   :  { %415 = vrot.lane.b32.xlu0 %v413_v63, %s559_s26  ;;  %427 = vrot.lane.b32.xlu1 %v425_v0, %s559_s26  ;;  %v502_v25 = vadd.f32 %v501_v23, %v500_v17  ;;  %v342_v11 = vsel %vm160_vm4, %v602_v12, 0.0  ;;  %v172_v15 = vadd.f32 %v171_v38, %v170_v35  ;;  %v263_v46 = vrot.slane %v262_v40, 4 }
 0x109   :  { %v514_v26 = vadd.f32 %v513_v24, %v512_v18  ;;  %v164_v32 = vrot.slane %v163_v30, 2  ;;  %v256_v36 = vrot.slane %v255_v33, 2  ;;  %v343_v47 = vrot.slane %v342_v11, 4 }
 0x10a   :  { %v173_v14 = vrot.slane %v172_v15, 2  ;;  %v351_v51 = vsel %vm160_vm4, %v618_v19, 0.0  ;;  %v264_v53 = vadd.f32 %v263_v46, %v262_v40  ;;  %v431_v61 = vsel %vm160_vm4, %v610_v16, 0.0 }
 0x10b   :  { %v165_v34 = vadd.f32 %v164_v32, %v163_v30  ;;  %v257_v39 = vadd.f32 %v256_v36, %v255_v33  ;;  %v344_v54 = vadd.f32 %v343_v47, %v342_v11  ;;  %v352_v58 = vrot.slane %v351_v51, 4 }
 0x10c   :  { %456 = vrot.lane.b32.xlu0 %v454_v8, %s558_s25  ;;  %468 = vrot.lane.b32.xlu1 %v466_v10, %s558_s25  ;;  %v174_v55 = vadd.f32 %v173_v14, %v172_v15  ;;  %v265_v59 = vrot.slane %v264_v53, 2  ;;  %v432_v2 = vrot.slane %v431_v61, 4  ;;  %v440_v5 = vsel %vm160_vm4, %v669_v4, 0.0 }
 0x10d   :  { %v166_v37 = vrot.slane %v165_v34, 1  ;;  %v258_v45 = vrot.slane %v257_v39, 1  ;;  %v345_v60 = vrot.slane %v344_v54, 2  ;;  %v353_v1 = vadd.f32 %v352_v58, %v351_v51 }
 0x10e   :  { %v175_v62 = vrot.slane %v174_v55, 1  ;;  %v266_v19 = vadd.f32 %v265_v59, %v264_v53  ;;  %v433_v10 = vadd.f32 %v432_v2, %v431_v61  ;;  %v441_v13 = vrot.slane %v440_v5, 4 }
 0x10f   :  { %v167_v41 = vadd.f32 %v166_v37, %v165_v34  ;;  %v259_v21 = vadd.f32 %v258_v45, %v257_v39  ;;  %v346_v3 = vadd.f32 %v345_v60, %v344_v54  ;;  %v354_v9 = vrot.slane %v353_v1, 2 }
 0x110   :  { %480 = vrot.lane.b32.xlu0 %v478_v20, %s557_s2  ;;  %492 = vrot.lane.b32.xlu1 %v490_v22, %s557_s2  ;;  %v176_v6 = vadd.f32 %v175_v62, %v174_v55  ;;  %v267_v20 = vrot.slane %v266_v19, 1  ;;  %v434_v27 = vrot.slane %v433_v10, 2  ;;  %v442_v28 = vadd.f32 %v441_v13, %v440_v5 }
 0x111   :  { %v347_v16 = vrot.slane %v346_v3, 1 }
 0x112   :  { %v268_v4 = vadd.f32 %v267_v20, %v266_v19  ;;  %v435_v38 = vadd.f32 %v434_v27, %v433_v10  ;;  %v443_v39 = vrot.slane %v442_v28, 2 }
 0x113   :  { %v348_v31 = vadd.f32 %v347_v16, %v346_v3 }
 0x114   :  { %504 = vrot.lane.b32.xlu0 %v502_v25, %s559_s26  ;;  %516 = vrot.lane.b32.xlu1 %v514_v26, %s559_s26  ;;  %v355_v26 = vadd.f32 %v354_v9, %v353_v1  ;;  %v444_v45 = vadd.f32 %v443_v39, %v442_v28 }
 0x116   :  { %v356_v36 = vrot.slane %v355_v26, 1 }
 0x15a   :  { %v213_v42 = vpop.permute.xlu1 %212  ;;  %v188_v43 = vpop.permute.xlu0 %187 }
 0x15b   :  { %v190_v44 = vadd.f32 %v188_v43, %v167_v41  ;;  %v357_v41 = vadd.f32 %v356_v36, %v355_v26 }
 0x15d   :  { %v215_v48 = vadd.f32 %v213_v42, %v190_v44  ;;  %v436_v44 = vrot.slane %v435_v38, 1 }
 0x15e   :  { %v238_v49 = vpop.permute.xlu0 %237  ;;  %v225_v50 = vpop.permute.xlu1 %224 }
 0x15f   :  { %v240_v52 = vadd.f32 %v238_v49, %v215_v48  ;;  %v437_v51 = vadd.f32 %v436_v44, %v435_v38 }
 0x161   :  { %v260_v12 = vadd.f32 %v259_v21, %v240_v52  ;;  %v445_v52 = vrot.slane %v444_v45, 1 }
 0x162   :  { %v250_v56 = vpop.permute.xlu1 %249  ;;  %v279_v57 = vpop.permute.xlu0 %278 }
 0x163   :  { %v281_v17 = vadd.f32 %v279_v57, %v260_v12 }
 0x166   :  { %v380_v63 = vpop.permute.xlu1 %379  ;;  %v303_v0 = vpop.permute.xlu0 %302 }
 0x167   :  { %v305_v22 = vadd.f32 %v303_v0, %v281_v17 }
 0x16a   :  { %v404_v7 = vpop.permute.xlu1 %403  ;;  %v200_v8 = vpop.permute.xlu0 %199 }
 0x16b   :  { %v202_v18 = vadd.f32 %v200_v8, %v176_v6 }
 0x16d   :  { %v227_v23 = vadd.f32 %v225_v50, %v202_v18 }
 0x16e   :  { %v327_v24 = vpop.permute.xlu0 %326  ;;  %v291_v25 = vpop.permute.xlu1 %290 }
 0x16f   :  { %v329_v29 = vadd.f32 %v327_v24, %v305_v22  ;;  %v252_v30 = vadd.f32 %v250_v56, %v227_v23  ;;  %v446_v56 = vadd.f32 %v445_v52, %v444_v45 }
 0x171   :  { %v269_v32 = vadd.f32 %v268_v4, %v252_v30  ;;  %v349_v33 = vadd.f32 %v348_v31, %v329_v29 }
 0x172   :  { %v368_v34 = vpop.permute.xlu0 %367  ;;  %v315_v35 = vpop.permute.xlu1 %314 }
 0x173   :  { %v293_v37 = vadd.f32 %v291_v25, %v269_v32  ;;  %v370_v42 = vadd.f32 %v368_v34, %v349_v33 }
 0x175   :  { %v317_v40 = vadd.f32 %v315_v35, %v293_v37 }
 0x176   :  { %v392_v11 = vpop.permute.xlu0 %391  ;;  %v339_v15 = vpop.permute.xlu1 %338 }
 0x177   :  { %v341_v43 = vadd.f32 %v339_v15, %v317_v40  ;;  %v394_v46 = vadd.f32 %v392_v11, %v370_v42 }
 0x179   :  { %v358_v47 = vadd.f32 %v357_v41, %v341_v43 }
 0x17a   :  { %v416_v48 = vpop.permute.xlu0 %415  ;;  %v428_v14 = vpop.permute.xlu1 %427 }
 0x17b   :  { %v418_v49 = vadd.f32 %v416_v48, %v394_v46  ;;  %v382_v50 = vadd.f32 %v380_v63, %v358_v47 }
 0x17d   :  { %v406_v21 = vadd.f32 %v404_v7, %v382_v50  ;;  %v438_v53 = vadd.f32 %v437_v51, %v418_v49 }
 0x17e   :  { %v457_v54 = vpop.permute.xlu0 %456  ;;  %v469_v12 = vpop.permute.xlu1 %468 }
 0x17f   :  { %v430_v55 = vadd.f32 %v428_v14, %v406_v21  ;;  %v459_v60 = vadd.f32 %v457_v54, %v438_v53 }
 0x181   :  { %v447_v57 = vadd.f32 %v446_v56, %v430_v55 }
 0x182   :  { %v481_v58 = vpop.permute.xlu0 %480  ;;  %v493_v59 = vpop.permute.xlu1 %492 }
 0x183   :  { %v471_v61 = vadd.f32 %v469_v12, %v447_v57  ;;  %v483_v62 = vadd.f32 %v481_v58, %v459_v60 }
 0x185   :  { %v495_v0 = vadd.f32 %v493_v59, %v471_v61 }
 0x186   :  { %v505_v1 = vpop.permute.xlu0 %504  ;;  %v517_v2 = vpop.permute.xlu1 %516 }
 0x187   :  { %v507_v19 = vadd.f32 %v505_v1, %v483_v62  ;;  %v519_v63 = vadd.f32 %v517_v2, %v495_v0 }
 0x189   :  { %521 = vst.msk [vmem:[%s728_s3] sm:$0x1] %vm520_vm5, %v507_v19  ;;  %522 = vst.msk [vmem:[%s729_s4] sm:$0x1] %vm520_vm5, %v519_v63 }

// kernel: dcgan_generator_forward.4
= control target key start
LH: loop header
LB: loop body
LE: loop exit
PB: predicated region body
PF: predicated region fallthrough
CT: control target
= control target key end

     0   :  { %s2254_s21 = smov 0   ;;  %s2760_s0 = inlined_call_operand.vmem [shape: bf16[2,4,4,32], index: 0, kind: input, shape index: {}]   ;;  %s2761_s1 = inlined_call_operand.vmem [shape: f32[1,32], index: 1, kind: input, shape index: {}]   ;;  %s2762_s2 = inlined_call_operand.vmem [shape: f32[1,32], index: 2, kind: input, shape index: {}]   ;;  %s2763_s3 = inlined_call_operand.vmem [shape: bf16[4,128,16], index: 3, kind: input, shape index: {}]   ;;  %s2764_s4 = inlined_call_operand.vmem [shape: bf16[2,4,2,4,32], index: 4, kind: output, shape index: {0}]   ;;  %s2765_s5 = inlined_call_operand.vmem [shape: f32[2,1,16], index: 5, kind: output, shape index: {1}]   ;;  %s2766_s6 = inlined_call_operand.vmem [shape: f32[2,1,16], index: 6, kind: output, shape index: {2}]  }
   0x1 LB: > { %s1848_s22 = sadd.s32 4294967295, %s2209_s21   ;;  %p1852_p0 = scmp.ge.s32.totalorder %s2209_s21, 1  ;;  %s2209_s21 = sphi %s2254_s21, %s17_s21  }
   0x2   : > { %p217_p1 = scmp.lt.s32.totalorder %s2209_s21, 3 }
   0x4   : > { %p218_p2 = pnand %p1852_p0, %p217_p1 }
   0x5   : > { %vm270_vm0 = vcmask (!%p218_p2), 256000   ;;  %p253_p3 = scmp.lt.s32.totalorder (!%p218_p2), %s1848_s22, 1  ;;  %v2211_v0 = vmov (!%p218_p2), 0   ;;  %v1857_v1 = vld [vmem:[%s2761_s1] ss:$0 sm:$0xff] (!%p218_p2)  ;;  %s2212_s7 = smov (!%p218_p2), 32  }
   0x6   : > { %221 = sbr.rel (%p218_p2) target bundleno = 569 (0x239), region = 36  ;;  %271 = vst.msk [vmem:[#allocation2] sm:$0x7] (!%p218_p2), %vm270_vm0, %v2211_v0  ;;  %272 = vst.msk [vmem:[#allocation2 + $0x4] sm:$0x7] (!%p218_p2), %vm270_vm0, %v2211_v0  ;;  %v2171_v57 = vld [vmem:[%s2763_s3 + $0x40] sm:$0xff] (!%p218_p2)  }
   0x7   : > { %273 = vst.msk [vmem:[#allocation2 + $0x8] sm:$0x7] (!%p218_p2), %vm270_vm0, %v2211_v0  ;;  %274 = vst.msk [vmem:[#allocation2 + $0xc] sm:$0x7] (!%p218_p2), %vm270_vm0, %v2211_v0  ;;  %v1858_v3 = vld [vmem:[%s2762_s2] ss:$0 sm:$0xff] (!%p218_p2) }
   0x8   : > { %275 = vst.msk [vmem:[#allocation2 + $0x10] sm:$0x7] (!%p218_p2), %vm270_vm0, %v2211_v0  ;;  %276 = vst.msk [vmem:[#allocation2 + $0x14] sm:$0x7] (!%p218_p2), %vm270_vm0, %v2211_v0  ;;  %vm361_vm1 = vsmask.f32 (!%p218_p2), 2306 }
   0x9   : > { %vm2283_vm2 = vmand (!%p218_p2), %vm270_vm0, %vm361_vm1  ;;  %v2213_v58 = vmov (!%p218_p2), 0.0   ;;  %v2172_v59 = vld [vmem:[%s2763_s3 + $0x48] sm:$0xff] (!%p218_p2)   ;;  %s2214_s12 = smov (!%p218_p2), 64   ;;  %s2215_s13 = smov (!%p218_p2), 96   ;;  %v2175_v45 = vld [vmem:[%s2763_s3 + $0x60] sm:$0xff] (!%p218_p2)   ;;  %vm2216_vm3 = vmmov (!%p218_p2), 0  }
   0xa   : > { %2043 = vmatprep.subr.bf16.mxu1 (!%p218_p2), %v2213_v58  ;;  %2023 = vmatprep.subr.bf16.mxu0 (!%p218_p2), %v2213_v58  ;;  %vm528_vm4 = vcmask (!%p218_p2), 261120   ;;  %vm541_vm5 = vcmask (!%p218_p2), 523264   ;;  %vm550_vm6 = vcmask (!%p218_p2), 785408   ;;  %vm883_vm7 = vsmask.f32 (!%p218_p2), 1280  ;;  %s2218_s9 = smov (!%p218_p2), 16  }
   0xb   : > { %2044 = vmatpush3.bf16.msra.mxu1 (!%p218_p2), %v2171_v57  ;;  %2059 = vmatprep.mubr.msk.bf16.mxu1 (!%p218_p2), %vm2216_vm3, %v2213_v58  ;;  %vm884_vm8 = vsmask.f32 (!%p218_p2), 3336  ;;  %vm886_vm9 = vsmask.f32 (!%p218_p2), 5392  ;;  %vm888_vm11 = vsmask.f32 (!%p218_p2), 7448 }
   0xc   : > { %2045 = vmatprep.subr.bf16.mxu1 (!%p218_p2), %v2213_v58  ;;  %2039 = vmatprep.mubr.msk.bf16.mxu0 (!%p218_p2), %vm2216_vm3, %v2213_v58  ;;  %vm885_vm10 = vmor (!%p218_p2), %vm883_vm7, %vm884_vm8  ;;  %vm686_vm14 = vcmask (!%p218_p2), 130048   ;;  %vm1740_vm15 = vcmask (!%p218_p2), 122880   ;;  %vm1116_vm0 = vcmask (!%p218_p2), 254976  }
   0xd   : > { %s2772_s22 = smov (!%p253_p3, %s1848_s22), 1  ;;  %v2139_v10 = vld [vmem:[#allocation2] ss:$0 sps:$4 sm:$0x66]   ;;  %v363_v37 = vld [vmem:[#allocation2 + $0x4] sm:$0x7]  ;;  %vm887_vm12 = vmor %vm885_vm10, %vm886_vm9 }
   0xe   : > { %s1981_s23 = sshll.u32 %s2772_s22, 3  ;;  %v728_v15 = vshrl.u32 %v2139_v10, 16  ;;  %v730_v16 = vshll.u32 %v2139_v10, 16  ;;  %v366_v36 = vld [vmem:[#allocation2 + $0x8] sm:$0x7]  ;;  %vm2525_vm13 = vmor %vm887_vm12, %vm888_vm11  ;;  %s265_s14 = scalar_lea.vmem %s2765_s5, %s2772_s22 }
   0xf   : > { %s257_s28 = scalar_lea.vmem %s2760_s0, %s1981_s23  ;;  %v372_v44 = vld [vmem:[#allocation2 + $0x10] sm:$0x7]  ;;  %v369_v48 = vld [vmem:[#allocation2 + $0xc] sm:$0x7]  ;;  %2046 = vmatpush3.bf16.msra.mxu1 %v2172_v59  ;;  %s268_s17 = scalar_lea.vmem %s2766_s6, %s2772_s22 }
  0x10   : > { %v278_v2 = vld [vmem:[%s257_s28 + $0x2] sm:$0x3]  ;;  %v277_v4 = vld [vmem:[%s257_s28] sm:$0x3]  ;;  %v280_v5 = vld [vmem:[%s257_s28 + $0x6] sm:$0x3]  ;;  %2047 = vmatprep.subr.bf16.mxu1 %v2213_v58 }
  0x11   : > { %v282_v6 = vunpack.c.l.bf16 %v278_v2  ;;  %v281_v7 = vunpack.c.l.bf16 %v277_v4  ;;  %v284_v8 = vunpack.c.l.bf16 %v280_v5  ;;  %v279_v9 = vld [vmem:[%s257_s28 + $0x4] sm:$0x3]  ;;  %v732_v21 = vrot.slane %v730_v16, 1  ;;  %s1982_s18 = sshll.u32 %s2772_s22, 4 }
  0x12   : > { %v283_v11 = vunpack.c.l.bf16 %v279_v9  ;;  %s2723_s23 = scalar_lea.vmem %s2764_s4, %s1982_s18 }
  0x13   : > { %v293_v12 = vmul.f32 %v1857_v1, %v282_v6  ;;  %v292_v13 = vmul.f32 %v1857_v1, %v281_v7  ;;  %v295_v14 = vmul.f32 %v1857_v1, %v284_v8  ;;  %v733_v26 = vor.u32 %v732_v21, %v728_v15 }
  0x14   : > { %v294_v17 = vmul.f32 %v1857_v1, %v283_v11 }
  0x15   : > { %v304_v18 = vadd.f32 %v1858_v3, %v293_v12  ;;  %v303_v19 = vadd.f32 %v1858_v3, %v292_v13  ;;  %v306_v20 = vadd.f32 %v1858_v3, %v295_v14  ;;  %755 = vrot.lane.b32.xlu0 %v733_v26, %s2212_s7 }
  0x16   : > { %v305_v22 = vadd.f32 %v1858_v3, %v294_v17 }
  0x17   : > { %v308_v23 = vmax.f32 %v304_v18, 0.0  ;;  %v307_v24 = vmax.f32 %v303_v19, 0.0  ;;  %v310_v25 = vmax.f32 %v306_v20, 0.0 }
  0x18   : > { %v309_v27 = vmax.f32 %v305_v22, 0.0 }
  0x19   : > { %v1984_v28 = vpack.c.bf16 %v308_v23, %v308_v23  ;;  %v1983_v29 = vpack.c.bf16 %v307_v24, %v307_v24  ;;  %v1986_v30 = vpack.c.bf16 %v310_v25, %v310_v25 }
  0x1a   : > { %v1985_v31 = vpack.c.bf16 %v309_v27, %v309_v27 }
  0x1b   : > { %v335_v32 = vshrl.u32 %v1984_v28, 16  ;;  %v338_v33 = vshll.u32 %v1984_v28, 16  ;;  %v328_v34 = vshrl.u32 %v1983_v29, 16  ;;  %v331_v35 = vshll.u32 %v1983_v29, 16 }
  0x1c   : > { %v349_v38 = vshrl.u32 %v1986_v30, 16  ;;  %v352_v39 = vshll.u32 %v1986_v30, 16  ;;  %v342_v40 = vshrl.u32 %v1985_v31, 16  ;;  %v345_v41 = vshll.u32 %v1985_v31, 16 }
  0x1d   : > { %v337_v42 = vrot.slane %v335_v32, 7  ;;  %v330_v43 = vrot.slane %v328_v34, 7 }
  0x1e   : > { %v351_v46 = vrot.slane %v349_v38, 7  ;;  %v344_v47 = vrot.slane %v342_v40, 7  ;;  %v2173_v38 = vld [vmem:[%s2763_s3 + $0x50] sm:$0xff]  }
  0x1f   : > { %v340_v49 = vor.u32 %v338_v33, %v337_v42  ;;  %v333_v50 = vor.u32 %v331_v35, %v330_v43  ;;  %2048 = vmatpush3.bf16.msra.mxu1 %v2173_v38 }
  0x20   : > { %v354_v51 = vor.u32 %v352_v39, %v351_v46  ;;  %v347_v52 = vor.u32 %v345_v41, %v344_v47  ;;  %v2174_v41 = vld [vmem:[%s2763_s3 + $0x58] sm:$0xff]   ;;  %2049 = vmatprep.subr.bf16.mxu1 %v2213_v58 }
  0x21   : > { %v367_v53 = vsel %vm2283_vm2, %v340_v49, %v366_v36  ;;  %v364_v54 = vsel %vm2283_vm2, %v333_v50, %v363_v37  ;;  %v2362_v46 = vld [vmem:[#allocation2 + $0x14] ss:$0 sps:$4 sm:$0x77]   ;;  %v2365_v49 = vld [vmem:[#allocation2] sm:$0x7] }
  0x22   : > { %368 = vst [vmem:[#allocation2 + $0x8] sm:$0x7] %v367_v53  ;;  %365 = vst [vmem:[#allocation2 + $0x4] sm:$0x7] %v364_v54  ;;  %v373_v55 = vsel %vm2283_vm2, %v354_v51, %v372_v44  ;;  %v370_v56 = vsel %vm2283_vm2, %v347_v52, %v369_v48  ;;  %v2176_v52 = vld [vmem:[%s2763_s3 + $0x68] sm:$0xff]   ;;  %v1863_v54 = vcombine.low %v2365_v49, %v2365_v49 }
  0x23   : > { %374 = vst [vmem:[#allocation2 + $0x10] sm:$0x7] %v373_v55  ;;  %371 = vst [vmem:[#allocation2 + $0xc] sm:$0x7] %v370_v56  ;;  %2050 = vmatpush3.bf16.msra.mxu1 %v2174_v41 }
  0x24   : > { %v2158_v47 = vld [vmem:[#allocation2 + $0x14] ss:$0 sps:$4 sm:$0x66]   ;;  %2051 = vmatprep.subr.bf16.mxu1 %v2213_v58 }
  0x25   : > { %v1431_v53 = vshrl.u32 %v2158_v47, 16 }
  0x27   : > { %2052 = vmatpush3.bf16.msra.mxu1 %v2175_v45 }
  0x28   : > { %2053 = vmatprep.subr.bf16.mxu1 %v2213_v58 }
  0x29   : > { %v2304_v60 = vld [vmem:[#allocation2 + $0x8] sm:$0x7]  ;;  %v2306_v61 = vld [vmem:[#allocation2 + $0x4] sm:$0x7] }
  0x2a   : > { %v2310_v62 = vcombine.low %v2304_v60, %v2304_v60  ;;  %v2314_v63 = vcombine.low %v2306_v61, %v2306_v61  ;;  %v2316_v0 = vld [vmem:[#allocation2 + $0x10] sm:$0x7]  ;;  %v2318_v1 = vld [vmem:[#allocation2 + $0xc] sm:$0x7]  ;;  %v2379_v57 = vld [vmem:[#allocation2 + $0x4] sm:$0x7] }
  0x2b   : > { %v2144_v2 = vld [vmem:[#allocation2 + $0x8] ss:$0 sps:$4 sm:$0x66]   ;;  %v2145_v3 = vld [vmem:[#allocation2 + $0x4] ss:$0 sps:$4 sm:$0x66]   ;;  %v2327_v4 = vcombine.low %v2316_v0, %v2316_v0  ;;  %v2331_v5 = vcombine.low %v2318_v1, %v2318_v1  ;;  %2054 = vmatpush3.bf16.msra.mxu1 %v2176_v52 }
  0x2c   : > { %765 = vrot.lane.b32.xlu1 %v2310_v62, %s2214_s12  ;;  %763 = vrot.lane.b32.xlu0 %v2314_v63, %s2214_s12  ;;  %v2146_v6 = vld [vmem:[#allocation2 + $0xc] ss:$0 sps:$4 sm:$0x66]   ;;  %v742_v7 = vshrl.u32 %v2144_v2, 16  ;;  %v744_v8 = vshll.u32 %v2144_v2, 16  ;;  %v735_v9 = vshrl.u32 %v2145_v3, 16 }
  0x2d   : > { %v737_v10 = vshll.u32 %v2145_v3, 16  ;;  %v749_v11 = vshrl.u32 %v2146_v6, 16  ;;  %v751_v12 = vshll.u32 %v2146_v6, 16  ;;  %v2147_v13 = vld [vmem:[#allocation2 + $0x4] ss:$0 sps:$4 sm:$0x66]   ;;  %2055 = vmatprep.subr.bf16.mxu1 %v2213_v58 }
  0x2e   : > { %v746_v14 = vrot.slane %v744_v8, 1  ;;  %v784_v17 = vshrl.u32 %v2147_v13, 16  ;;  %v786_v18 = vshll.u32 %v2147_v13, 16  ;;  %v2148_v19 = vld [vmem:[#allocation2 + $0x8] ss:$0 sps:$4 sm:$0x66]  }
  0x2f   : > { %v739_v15 = vrot.slane %v737_v10, 1  ;;  %v753_v16 = vrot.slane %v751_v12, 1  ;;  %v2149_v22 = vld [vmem:[#allocation2 + $0xc] ss:$0 sps:$4 sm:$0x66]   ;;  %v793_v24 = vshll.u32 %v2148_v19, 16  ;;  %v1864_v12 = vcombine.low %v2379_v57, %v2379_v57 }
  0x30   : > { %769 = vrot.lane.b32.xlu1 %v2327_v4, %s2214_s12  ;;  %767 = vrot.lane.b32.xlu0 %v2331_v5, %s2214_s12  ;;  %v747_v20 = vor.u32 %v746_v14, %v742_v7  ;;  %v788_v23 = vrot.slane %v786_v18, 1  ;;  %v2150_v25 = vld [vmem:[#allocation2 + $0x10] ss:$0 sps:$4 sm:$0x66]   ;;  %v791_v27 = vshrl.u32 %v2148_v19, 16  ;;  %v800_v28 = vshll.u32 %v2149_v22, 16 }
  0x31   : > { %v740_v21 = vor.u32 %v739_v15, %v735_v9  ;;  %v754_v26 = vor.u32 %v753_v16, %v749_v11  ;;  %v795_v30 = vrot.slane %v793_v24, 1  ;;  %v798_v31 = vshrl.u32 %v2149_v22, 16  ;;  %v2346_v40 = vld [vmem:[#allocation2 + $0x8] ss:$0 sps:$4 sm:$0x77]   ;;  %v2178_v13 = vld [vmem:[%s2763_s3 + $0x78] sm:$0xff]  }
  0x32   : > { %v789_v29 = vor.u32 %v788_v23, %v784_v17  ;;  %v807_v32 = vshll.u32 %v2150_v25, 16  ;;  %v802_v33 = vrot.slane %v800_v28, 1  ;;  %v805_v36 = vshrl.u32 %v2150_v25, 16  ;;  %v2351_v42 = vld [vmem:[#allocation2 + $0xc] ss:$0 sps:$4 sm:$0x77]  }
  0x33   : > { %v796_v34 = vor.u32 %v795_v30, %v791_v27  ;;  %v2353_v43 = vld [vmem:[#allocation2 + $0x10] ss:$0 sps:$4 sm:$0x77]   ;;  %v2155_v44 = vld [vmem:[#allocation2 + $0x8] ss:$0 sps:$4 sm:$0x66]  }
  0x34   : > { %759 = vrot.lane.b32.xlu1 %v747_v20, %s2212_s7  ;;  %757 = vrot.lane.b32.xlu0 %v740_v21, %s2212_s7  ;;  %v803_v35 = vor.u32 %v802_v33, %v798_v31  ;;  %v809_v37 = vrot.slane %v807_v32, 1  ;;  %v2156_v48 = vld [vmem:[#allocation2 + $0xc] ss:$0 sps:$4 sm:$0x66]   ;;  %v1412_v50 = vshll.u32 %v2155_v44, 16  ;;  %v1410_v55 = vshrl.u32 %v2155_v44, 16 }
  0x35   : > { %v2157_v51 = vld [vmem:[#allocation2 + $0x10] ss:$0 sps:$4 sm:$0x66]   ;;  %v1419_v56 = vshll.u32 %v2156_v48, 16  ;;  %v2381_v59 = vld [vmem:[#allocation2 + $0x8] sm:$0x7] }
  0x36   : > { %v810_v39 = vor.u32 %v809_v37, %v805_v36  ;;  %v1414_v2 = vrot.slane %v1412_v50, 1  ;;  %v1426_v3 = vshll.u32 %v2157_v51, 16  ;;  %v1433_v6 = vshll.u32 %v2158_v47, 16  ;;  %v2177_v7 = vld [vmem:[%s2763_s3 + $0x70] sm:$0xff]   ;;  %v2181_v14 = vld [vmem:[%s2763_s3] sm:$0xff]   ;;  %v2183_v23 = vld [vmem:[%s2763_s3 + $0x8] sm:$0xff]  }
  0x37   : > { %v1417_v8 = vshrl.u32 %v2156_v48, 16  ;;  %v427_v9 = vshll.u32 %v1863_v54, 16  ;;  %v2391_v10 = vld [vmem:[#allocation2 + $0xc] sm:$0x7]  ;;  %v1424_v11 = vshrl.u32 %v2157_v51, 16  ;;  %v1421_v16 = vrot.slane %v1419_v56, 1  ;;  %2056 = vmatpush3.bf16.msra.mxu1 %v2177_v7  ;;  %2024 = vmatpush3.bf16.msra.mxu0 %v2181_v14 }
  0x38   : > { %761 = vrot.lane.b32.xlu1 %v754_v26, %s2212_s7  ;;  %811 = vrot.lane.b32.xlu0 %v789_v29, %s2215_s13  ;;  %v1415_v15 = vor.u32 %v1414_v2, %v1410_v55  ;;  %v1428_v17 = vrot.slane %v1426_v3, 1  ;;  %v1865_v18 = vcombine.low %v2381_v59, %v2381_v59  ;;  %v1435_v19 = vrot.slane %v1433_v6, 1  ;;  %v2185_v31 = vld [vmem:[%s2763_s3 + $0x10] sm:$0xff]   ;;  %v2187_v36 = vld [vmem:[%s2763_s3 + $0x18] sm:$0xff]   ;;  %v2428_v44 = vld [vmem:[#allocation2 + $0x4] sm:$0x3] }
  0x39   : > { %v425_v20 = vshrl.u32 %v1863_v54, 16  ;;  %2057 = vmatprep.subr.bf16.mxu1 %v2213_v58  ;;  %2025 = vmatprep.subr.bf16.mxu0 %v2213_v58  ;;  %v429_v21 = vrot.slane %v427_v9, 1  ;;  %v1866_v22 = vcombine.low %v2391_v10, %v2391_v10  ;;  %v1422_v24 = vor.u32 %v1421_v16, %v1417_v8  ;;  %v2189_v47 = vld [vmem:[%s2763_s3 + $0x20] sm:$0xff]   ;;  %v2439_v51 = vld [vmem:[#allocation2 + $0x8] sm:$0x3]  ;;  %v2191_v55 = vld [vmem:[%s2763_s3 + $0x28] sm:$0xff]  }
  0x3a   : > { %v1429_v25 = vor.u32 %v1428_v17, %v1424_v11  ;;  %v434_v26 = vshll.u32 %v1864_v12, 16  ;;  %v441_v27 = vshll.u32 %v1865_v18, 16  ;;  %v1436_v28 = vor.u32 %v1435_v19, %v1431_v53  ;;  %v2441_v52 = vld [vmem:[#allocation2 + $0xc] sm:$0x3] }
  0x3b   : > { %2058 = vmatpush3.bf16.msra.mxu1 %v2178_v13  ;;  %2026 = vmatpush3.bf16.msra.mxu0 %v2183_v23  ;;  %v432_v30 = vshrl.u32 %v1864_v12, 16  ;;  %v439_v33 = vshrl.u32 %v1865_v18, 16  ;;  %v495_v45 = vshll.u32 %v2314_v63, 16  ;;  %v1867_v50 = vcombine.low %v2428_v44, %v2428_v44  ;;  %v2193_v11 = vld [vmem:[%s2763_s3 + $0x30] sm:$0xff]  }
  0x3c   : > { %813 = vrot.lane.b32.xlu1 %v796_v34, %s2215_s13  ;;  %815 = vrot.lane.b32.xlu0 %v803_v35, %s2215_s13  ;;  %v436_v32 = vrot.slane %v434_v26, 1  ;;  %v493_v53 = vshrl.u32 %v2314_v63, 16  ;;  %v1868_v56 = vcombine.low %v2439_v51, %v2439_v51  ;;  %v1869_v2 = vcombine.low %v2441_v52, %v2441_v52  ;;  %v2456_v63 = vld [vmem:[#allocation2 + $0x10] sm:$0x3] }
  0x3d   : > { %2083 = vmatprep.subr.bf16.mxu1 %v2213_v58  ;;  %2027 = vmatprep.subr.bf16.mxu0 %v2213_v58  ;;  %v497_v54 = vrot.slane %v495_v45, 1  ;;  %v502_v3 = vshll.u32 %v2310_v62, 16  ;;  %v509_v6 = vshll.u32 %v2331_v5, 16  ;;  %v500_v8 = vshrl.u32 %v2310_v62, 16  ;;  %v2194_v62 = vld [vmem:[%s2763_s3 + $0x38] sm:$0xff]  }
  0x3e   : > { %v437_v37 = vor.u32 %v436_v32, %v432_v30  ;;  %v507_v9 = vshrl.u32 %v2331_v5, 16  ;;  %v1870_v12 = vcombine.low %v2456_v63, %v2456_v63  ;;  %v514_v17 = vshrl.u32 %v2327_v4, 16 }
  0x3f   : > { %2028 = vmatpush3.bf16.msra.mxu0 %v2185_v31  ;;  %v498_v7 = vor.u32 %v497_v54, %v493_v53  ;;  %v504_v13 = vrot.slane %v502_v3, 1  ;;  %v511_v14 = vrot.slane %v509_v6, 1  ;;  %v1162_v23 = vshrl.u32 %v2346_v40, 16 }
  0x40   : > { %817 = vrot.lane.b32.xlu1 %v810_v39, %s2215_s13  ;;  %1389 = vrot.lane.b32.xlu0 %v2346_v40, %s2214_s12  ;;  %v1178_v26 = vshll.u32 %v2353_v43, 16  ;;  %v1176_v32 = vshrl.u32 %v2353_v43, 16  ;;  %v584_v45 = vlaneseq }
  0x41   : > { %2029 = vmatprep.subr.bf16.mxu0 %v2213_v58  ;;  %v505_v5 = vor.u32 %v504_v13, %v500_v8  ;;  %v512_v16 = vor.u32 %v511_v14, %v507_v9 }
  0x42   : > { %v585_v53 = vshrl.u32 %v584_v45, 7 }
  0x43   : > { %2030 = vmatpush3.bf16.msra.mxu0 %v2187_v36 }
  0x44   : > { %1391 = vrot.lane.b32.xlu1 %v2351_v42, %s2214_s12  ;;  %1393 = vrot.lane.b32.xlu0 %v2353_v43, %s2214_s12 }
  0x45   : > { %2031 = vmatprep.subr.bf16.mxu0 %v2213_v58 }
  0x47   : > { %2032 = vmatpush3.bf16.msra.mxu0 %v2189_v47 }
  0x48   : > { %1395 = vrot.lane.b32.xlu1 %v2362_v46, %s2214_s12  ;;  %1381 = vrot.lane.b32.xlu0 %v789_v29, %s2212_s7  ;;  %v430_v29 = vor.u32 %v429_v21, %v425_v20  ;;  %v2167_v20 = vld [vmem:[#allocation2 + $0x8] ss:$0 sps:$4 sm:$0x33]   ;;  %v2168_v21 = vld [vmem:[#allocation2 + $0xc] ss:$0 sps:$4 sm:$0x33]  }
  0x49   : > { %2033 = vmatprep.subr.bf16.mxu0 %v2213_v58 }
  0x4b   : > { %2034 = vmatpush3.bf16.msra.mxu0 %v2191_v55 }
  0x4c   : > { %1383 = vrot.lane.b32.xlu1 %v796_v34, %s2212_s7  ;;  %1385 = vrot.lane.b32.xlu0 %v803_v35, %s2212_s7  ;;  %v443_v34 = vrot.slane %v441_v27, 1  ;;  %v448_v35 = vshll.u32 %v1866_v22, 16  ;;  %v1169_v27 = vshrl.u32 %v2351_v42, 16 }
  0x4d   : > { %2035 = vmatprep.subr.bf16.mxu0 %v2213_v58 }
  0x4e   : > { %v444_v38 = vor.u32 %v443_v34, %v439_v33  ;;  %v450_v41 = vrot.slane %v448_v35, 1  ;;  %v1180_v33 = vrot.slane %v1178_v26, 1 }
  0x4f   : > { %2036 = vmatpush3.bf16.msra.mxu0 %v2193_v11 }
  0x50   : > { %1387 = vrot.lane.b32.xlu1 %v810_v39, %s2212_s7  ;;  %1437 = vrot.lane.b32.xlu0 %v1415_v15, %s2215_s13  ;;  %v446_v39 = vshrl.u32 %v1866_v22, 16  ;;  %v516_v15 = vshll.u32 %v2327_v4, 16  ;;  %v1164_v4 = vshll.u32 %v2346_v40, 16  ;;  %v2169_v22 = vld [vmem:[#allocation2 + $0x10] ss:$0 sps:$4 sm:$0x33]   ;;  %v1181_v34 = vor.u32 %v1180_v33, %v1176_v32 }
  0x51   : > { %2037 = vmatprep.subr.bf16.mxu0 %v2213_v58 }
  0x52   : > { %v451_v48 = vor.u32 %v450_v41, %v446_v39  ;;  %v518_v18 = vrot.slane %v516_v15, 1  ;;  %v2217_v39 = vmov 1983009808  }
  0x53   : > { %2038 = vmatpush3.bf16.msra.mxu0 %v2194_v62  ;;  %v582_v41 = vunpack.c.l.s4 %v2217_v39 }
  0x54   : > { %1439 = vrot.lane.b32.xlu1 %v1422_v24, %s2215_s13  ;;  %1441 = vrot.lane.b32.xlu0 %v1429_v25, %s2215_s13  ;;  %v519_v19 = vor.u32 %v518_v18, %v514_v17  ;;  %v1166_v24 = vrot.slane %v1164_v4, 1  ;;  %v1171_v25 = vshll.u32 %v2351_v42, 16  ;;  %v1183_v42 = vshrl.u32 %v2362_v46, 16 }
  0x55   : > { %2063 = vmatprep.subr.bf16.mxu0 %v2213_v58 }
  0x56   : > { %v1167_v30 = vor.u32 %v1166_v24, %v1162_v23  ;;  %v1173_v31 = vrot.slane %v1171_v25, 1 }
  0x58   : > { %1443 = vrot.lane.b32.xlu1 %v1436_v28, %s2215_s13  ;;  %452 = vrot.lane.b32.xlu0 %v430_v29, %s2212_s7  ;;  %v1185_v28 = vshll.u32 %v2362_v46, 16  ;;  %v2170_v29 = vld [vmem:[#allocation2 + $0x14] ss:$0 sps:$4 sm:$0x33]   ;;  %v1174_v40 = vor.u32 %v1173_v31, %v1169_v27 }
  0x5a   : > { %v1187_v35 = vrot.slane %v1185_v28, 1 }
  0x5c   : > { %454 = vrot.lane.b32.xlu1 %v437_v37, %s2212_s7  ;;  %456 = vrot.lane.b32.xlu0 %v444_v38, %s2212_s7  ;;  %v1188_v36 = vor.u32 %v1187_v35, %v1183_v42 }
  0x60   : > { %458 = vrot.lane.b32.xlu1 %v451_v48, %s2212_s7  ;;  %472 = vrot.lane.b32.xlu0 %v1867_v50, %s2214_s12  ;;  %v583_v50 = vunpack.c.0.s8 %v582_v41 }
  0x64   : > { %474 = vrot.lane.b32.xlu1 %v1868_v56, %s2214_s12  ;;  %476 = vrot.lane.b32.xlu0 %v1869_v2, %s2214_s12  ;;  %v2502_v56 = vsub.s32 %v583_v50, %v585_v53 }
  0x68   : > { %478 = vrot.lane.b32.xlu1 %v1870_v12, %s2214_s12  ;;  %520 = vrot.lane.b32.xlu0 %v498_v7, %s2215_s13 }
  0x6c   : > { %522 = vrot.lane.b32.xlu1 %v505_v5, %s2215_s13  ;;  %524 = vrot.lane.b32.xlu0 %v512_v16, %s2215_s13 }
  0x70   : > { %526 = vrot.lane.b32.xlu1 %v519_v19, %s2215_s13  ;;  %1121 = vrot.lane.b32.xlu0 %v498_v7, %s2212_s7 }
  0x74   : > { %1123 = vrot.lane.b32.xlu1 %v505_v5, %s2212_s7  ;;  %1125 = vrot.lane.b32.xlu0 %v512_v16, %s2212_s7 }
  0x78   : > { %1127 = vrot.lane.b32.xlu1 %v519_v19, %s2212_s7  ;;  %1141 = vrot.lane.b32.xlu0 %v2167_v20, %s2214_s12 }
  0x7c   : > { %1143 = vrot.lane.b32.xlu1 %v2168_v21, %s2214_s12  ;;  %1145 = vrot.lane.b32.xlu0 %v2169_v22, %s2214_s12 }
  0x80   : > { %1147 = vrot.lane.b32.xlu1 %v2170_v29, %s2214_s12  ;;  %1189 = vrot.lane.b32.xlu0 %v1167_v30, %s2215_s13 }
  0x84   : > { %1191 = vrot.lane.b32.xlu1 %v1174_v40, %s2215_s13  ;;  %1193 = vrot.lane.b32.xlu0 %v1181_v34, %s2215_s13 }
  0x87   : > { %v756_v37 = vpop.permute.xlu0 %755 }
  0x88   : > { %1195 = vrot.lane.b32.xlu1 %v1188_v36, %s2215_s13  ;;  %v821_v55 = vsel %vm528_vm4, %v2365_v49, %v756_v37 }
  0x9e   : > { %v766_v38 = vpop.permute.xlu1 %765  ;;  %v764_v43 = vpop.permute.xlu0 %763 }
  0x9f   : > { %v832_v2 = vsel %vm541_vm5, %v821_v55, %v764_v43 }
  0xa2   : > { %v770_v47 = vpop.permute.xlu1 %769  ;;  %v768_v48 = vpop.permute.xlu0 %767 }
  0xa6   : > { %v760_v46 = vpop.permute.xlu1 %759  ;;  %v758_v54 = vpop.permute.xlu0 %757 }
  0xa7   : > { %v827_v7 = vsel %vm528_vm4, %v2381_v59, %v760_v46  ;;  %v824_v8 = vsel %vm528_vm4, %v2379_v57, %v758_v54 }
  0xa8   : > { %v834_v14 = vsel %vm541_vm5, %v824_v8, %v766_v38  ;;  %v836_v15 = vsel %vm541_vm5, %v827_v7, %v768_v48 }
  0xaa   : > { %v762_v3 = vpop.permute.xlu1 %761  ;;  %v812_v6 = vpop.permute.xlu0 %811 }
  0xab   : > { %v840_v9 = vsel %vm550_vm6, %v832_v2, %v812_v6  ;;  %v830_v5 = vsel %vm528_vm4, %v2391_v10, %v762_v3 }
  0xac   : > { %v857_v11 = vrot.slane %v840_v9, %v2502_v56  ;;  %v838_v21 = vsel %vm541_vm5, %v830_v5, %v770_v47 }
  0xae   : > { %v891_v12 = vshrl.u32 %v857_v11, 16  ;;  %v894_v49 = vshll.u32 %v857_v11, 16  ;;  %v814_v13 = vpop.permute.xlu1 %813  ;;  %v816_v62 = vpop.permute.xlu0 %815  ;;  %v858_v24 = vcombine.high %v857_v11, %v857_v11 }
  0xaf   : > { %v842_v59 = vsel %vm550_vm6, %v834_v14, %v814_v13  ;;  %v844_v16 = vsel %vm550_vm6, %v836_v15, %v816_v62 }
  0xb0   : > { %v893_v57 = vrot.slane %v891_v12, 6  ;;  %v896_v17 = vrot.slane %v894_v49, 7  ;;  %v865_v18 = vrot.slane %v842_v59, %v2502_v56  ;;  %v873_v19 = vrot.slane %v844_v16, %v2502_v56 }
  0xb1   : > { %v900_v36 = vshll.u32 %v858_v24, 16 }
  0xb2   : > { %v866_v20 = vcombine.high %v865_v18, %v865_v18  ;;  %v905_v4 = vshrl.u32 %v865_v18, 16  ;;  %v818_v22 = vpop.permute.xlu1 %817  ;;  %v1390_v23 = vpop.permute.xlu0 %1389  ;;  %v908_v10 = vshll.u32 %v865_v18, 16  ;;  %v919_v25 = vshrl.u32 %v873_v19, 16 }
  0xb3   : > { %v922_v26 = vshll.u32 %v873_v19, 16  ;;  %v897_v27 = vor.u32 %v896_v17, %v893_v57  ;;  %v846_v29 = vsel %vm550_vm6, %v838_v21, %v818_v22  ;;  %v874_v31 = vcombine.high %v873_v19, %v873_v19  ;;  %v2179_v22 = vld [vmem:[%s2763_s3 + $0xc0] sm:$0xff]  }
  0xb4   : > { %v907_v28 = vrot.slane %v905_v4, 6  ;;  %v910_v30 = vrot.slane %v908_v10, 7  ;;  %v921_v32 = vrot.slane %v919_v25, 6  ;;  %v914_v40 = vshll.u32 %v866_v20, 16 }
  0xb5   : > { %v924_v33 = vrot.slane %v922_v26, 7  ;;  %v881_v34 = vrot.slane %v846_v29, %v2502_v56  ;;  %v898_v45 = vrot.slane %v897_v27, 2  ;;  %v928_v48 = vshll.u32 %v874_v31, 16 }
  0xb6   : > { %v1392_v42 = vpop.permute.xlu1 %1391  ;;  %v1394_v35 = vpop.permute.xlu0 %1393  ;;  %v911_v37 = vor.u32 %v910_v30, %v907_v28  ;;  %v916_v50 = vrot.slane %v914_v40, 7  ;;  %v902_v6 = vrot.slane %v900_v36, 7  ;;  %v2180_v30 = vld [vmem:[%s2763_s3 + $0xc8] sm:$0xff]  }
  0xb7   : > { %v925_v38 = vor.u32 %v924_v33, %v921_v32  ;;  %v882_v43 = vcombine.high %v881_v34, %v881_v34  ;;  %v933_v39 = vshrl.u32 %v881_v34, 16  ;;  %v936_v41 = vshll.u32 %v881_v34, 16 }
  0xb8   : > { %v912_v47 = vrot.slane %v911_v37, 2  ;;  %v930_v11 = vrot.slane %v928_v48, 7  ;;  %v903_v15 = vsel %vm2525_vm13, %v898_v45, %v902_v6  ;;  %v2184_v6 = vld [vmem:[%s2763_s3 + $0xd8] sm:$0xff]  }
  0xb9   : > { %v935_v53 = vrot.slane %v933_v39, 6  ;;  %v938_v46 = vrot.slane %v936_v41, 7  ;;  %v942_v54 = vshll.u32 %v882_v43, 16  ;;  %v926_v7 = vrot.slane %v925_v38, 2  ;;  %v2182_v38 = vld [vmem:[%s2763_s3 + $0xd0] sm:$0xff]  }
  0xba   : > { %v1396_v55 = vpop.permute.xlu1 %1395  ;;  %v1382_v2 = vpop.permute.xlu0 %1381  ;;  %v917_v9 = vsel %vm2525_vm13, %v912_v47, %v916_v50 }
  0xbb   : > { %v939_v8 = vor.u32 %v938_v46, %v935_v53  ;;  %v944_v49 = vrot.slane %v942_v54, 7  ;;  %v963_v62 = vcombine.low %v903_v15, %v917_v9  ;;  %v931_v5 = vsel %vm2525_vm13, %v926_v7, %v930_v11 }
  0xbc   : > { %v1447_v57 = vsel %vm528_vm4, %v2306_v61, %v1382_v2 }
  0xbd   : > { %v940_v12 = vrot.slane %v939_v8, 2  ;;  %v971_v4 = vrot.slane %v963_v62, %v2502_v56  ;;  %v1458_v24 = vsel %vm541_vm5, %v1447_v57, %v1390_v23  ;;  %v375_v57 = vld [vmem:[#allocation2] sm:$0x3] }
  0xbe   : > { %v1384_v13 = vpop.permute.xlu1 %1383  ;;  %v1386_v14 = vpop.permute.xlu0 %1385 }
  0xbf   : > { %v945_v59 = vsel %vm2525_vm13, %v940_v12, %v944_v49  ;;  %v1450_v19 = vsel %vm528_vm4, %v2304_v60, %v1384_v13  ;;  %v1453_v20 = vsel %vm528_vm4, %v2318_v1, %v1386_v14 }
  0xc0   : > { %v964_v16 = vcombine.low %v931_v5, %v945_v59  ;;  %v1460_v25 = vsel %vm541_vm5, %v1450_v19, %v1392_v42  ;;  %v1462_v60 = vsel %vm541_vm5, %v1453_v20, %v1394_v35 }
  0xc2   : > { %v1388_v17 = vpop.permute.xlu1 %1387  ;;  %v1438_v18 = vpop.permute.xlu0 %1437  ;;  %v978_v21 = vrot.slane %v964_v16, %v2502_v56 }
  0xc3   : > { %v1466_v61 = vsel %vm550_vm6, %v1458_v24, %v1438_v18  ;;  %v1456_v29 = vsel %vm528_vm4, %v2316_v0, %v1388_v17  ;;  %v2186_v17 = vld [vmem:[%s2763_s3 + $0xe0] sm:$0xff]  }
  0xc4   : > { %v979_v10 = vcombine.low %v971_v4, %v978_v21  ;;  %v1483_v31 = vrot.slane %v1466_v61, %v2502_v56  ;;  %v1464_v35 = vsel %vm541_vm5, %v1456_v29, %v1396_v55  ;;  %v376_v21 = vld [vmem:[#allocation2 + $0x4] sm:$0x3]  ;;  %v377_v61 = vld [vmem:[#allocation2 + $0x8] sm:$0x3] }
  0xc6   : > { %v1440_v26 = vpop.permute.xlu1 %1439  ;;  %v1442_v27 = vpop.permute.xlu0 %1441  ;;  %2060 = vmatmul.mubr.bf16.vlgmr.msra.gmra.mrb[0].mxu1 %v979_v10  ;;  %v1510_v43 = vshrl.u32 %v1483_v31, 16  ;;  %v1513_v39 = vshll.u32 %v1483_v31, 16  ;;  %v1484_v15 = vcombine.high %v1483_v31, %v1483_v31  ;;  %v378_v31 = vld [vmem:[#allocation2 + $0xc] sm:$0x3] }
  0xc7   : > { %v1468_v1 = vsel %vm550_vm6, %v1460_v25, %v1440_v26  ;;  %v1470_v28 = vsel %vm550_vm6, %v1462_v60, %v1442_v27  ;;  %2084 = vmatpush3.bf16.msra.mxu1 %v2179_v22  ;;  %2099 = vmatprep.mubr.msk.bf16.mxu1 %vm2216_vm3, %v2213_v58 }
  0xc8   : > { %v1491_v23 = vrot.slane %v1468_v1, %v2502_v56  ;;  %v1499_v32 = vrot.slane %v1470_v28, %v2502_v56  ;;  %2085 = vmatprep.subr.bf16.mxu1 %v2213_v58  ;;  %v1512_v7 = vrot.slane %v1510_v43, 6  ;;  %v1515_v8 = vrot.slane %v1513_v39, 7  ;;  %v2188_v1 = vld [vmem:[%s2763_s3 + $0xe8] sm:$0xff]  }
  0xc9   : > { %v1519_v25 = vshll.u32 %v1484_v15, 16 }
  0xca   : > { %v1444_v33 = vpop.permute.xlu1 %1443  ;;  %v453_v40 = vpop.permute.xlu0 %452  ;;  %v1524_v34 = vshrl.u32 %v1491_v23, 16  ;;  %v1527_v0 = vshll.u32 %v1491_v23, 16  ;;  %v1538_v42 = vshrl.u32 %v1499_v32, 16  ;;  %v1541_v36 = vshll.u32 %v1499_v32, 16 }
  0xcb   : > { %2086 = vmatpush3.bf16.msra.mxu1 %v2180_v30  ;;  %v1472_v37 = vsel %vm550_vm6, %v1464_v35, %v1444_v33  ;;  %v1492_v9 = vcombine.high %v1491_v23, %v1491_v23  ;;  %v1500_v11 = vcombine.high %v1499_v32, %v1499_v32  ;;  %v1516_v18 = vor.u32 %v1515_v8, %v1512_v7 }
  0xcc   : > { %2087 = vmatprep.subr.bf16.mxu1 %v2213_v58  ;;  %v1507_v41 = vrot.slane %v1472_v37, %v2502_v56  ;;  %v1526_v48 = vrot.slane %v1524_v34, 6  ;;  %v1529_v50 = vrot.slane %v1527_v0, 7  ;;  %v1540_v53 = vrot.slane %v1538_v42, 6 }
  0xcd   : > { %v1543_v46 = vrot.slane %v1541_v36, 7  ;;  %v1533_v19 = vshll.u32 %v1492_v9, 16  ;;  %v1547_v20 = vshll.u32 %v1500_v11, 16  ;;  %v531_v10 = vsel %vm528_vm4, %v375_v57, %v453_v40  ;;  %v2190_v36 = vld [vmem:[%s2763_s3 + $0xf0] sm:$0xff]  }
  0xce   : > { %v455_v45 = vpop.permute.xlu1 %454  ;;  %v457_v47 = vpop.permute.xlu0 %456  ;;  %v1508_v54 = vcombine.high %v1507_v41, %v1507_v41  ;;  %v1552_v55 = vshrl.u32 %v1507_v41, 16  ;;  %v1555_v2 = vshll.u32 %v1507_v41, 16  ;;  %v1530_v62 = vor.u32 %v1529_v50, %v1526_v48 }
  0xcf   : > { %2088 = vmatpush3.bf16.msra.mxu1 %v2182_v38  ;;  %v1544_v5 = vor.u32 %v1543_v46, %v1540_v53  ;;  %v1517_v28 = vrot.slane %v1516_v18, 2  ;;  %v534_v29 = vsel %vm528_vm4, %v376_v21, %v455_v45  ;;  %v1535_v23 = vrot.slane %v1533_v19, 7 }
  0xd0   : > { %2089 = vmatprep.subr.bf16.mxu1 %v2213_v58  ;;  %v1554_v12 = vrot.slane %v1552_v55, 6  ;;  %v1557_v49 = vrot.slane %v1555_v2, 7  ;;  %v1561_v16 = vshll.u32 %v1508_v54, 16  ;;  %v1531_v26 = vrot.slane %v1530_v62, 2  ;;  %v2192_v2 = vld [vmem:[%s2763_s3 + $0xf8] sm:$0xff]  }
  0xd1   : > { %v1545_v60 = vrot.slane %v1544_v5, 2  ;;  %v1549_v30 = vrot.slane %v1547_v20, 7  ;;  %v537_v0 = vsel %vm528_vm4, %v377_v61, %v457_v47  ;;  %v1521_v42 = vrot.slane %v1519_v25, 7  ;;  %v2195_v5 = vld [vmem:[%s2763_s3 + $0x80] sm:$0xff]   ;;  %v2197_v20 = vld [vmem:[%s2763_s3 + $0x90] sm:$0xff]  }
  0xd2   : > { %v459_v13 = vpop.permute.xlu1 %458  ;;  %v473_v14 = vpop.permute.xlu0 %472  ;;  %v1558_v59 = vor.u32 %v1557_v49, %v1554_v12  ;;  %v1563_v27 = vrot.slane %v1561_v16, 7  ;;  %v1536_v37 = vsel %vm2525_vm13, %v1531_v26, %v1535_v23  ;;  %v2200_v23 = vld [vmem:[%s2763_s3 + $0xa8] sm:$0xff]  }
  0xd3   : > { %2090 = vmatpush3.bf16.msra.mxu1 %v2184_v6  ;;  %v543_v32 = vsel %vm541_vm5, %v531_v10, %v473_v14  ;;  %v1550_v38 = vsel %vm2525_vm13, %v1545_v60, %v1549_v30  ;;  %v540_v43 = vsel %vm528_vm4, %v378_v31, %v459_v13  ;;  %v1522_v50 = vsel %vm2525_vm13, %v1517_v28, %v1521_v42  ;;  %v2199_v60 = vld [vmem:[%s2763_s3 + $0xa0] sm:$0xff]   ;;  %v2202_v42 = vld [vmem:[%s2763_s3 + $0xb8] sm:$0xff]  }
  0xd4   : > { %2091 = vmatprep.subr.bf16.mxu1 %v2213_v58  ;;  %v1559_v4 = vrot.slane %v1558_v59, 2  ;;  %v1582_v46 = vcombine.low %v1522_v50, %v1536_v37 }
  0xd6   : > { %v475_v22 = vpop.permute.xlu1 %474  ;;  %v477_v24 = vpop.permute.xlu0 %476  ;;  %v1564_v34 = vsel %vm2525_vm13, %v1559_v4, %v1563_v27  ;;  %v1590_v11 = vrot.slane %v1582_v46, %v2502_v56 }
  0xd7   : > { %2092 = vmatpush3.bf16.msra.mxu1 %v2186_v17  ;;  %v545_v35 = vsel %vm541_vm5, %v534_v29, %v475_v22  ;;  %v1583_v41 = vcombine.low %v1550_v38, %v1564_v34  ;;  %v547_v45 = vsel %vm541_vm5, %v537_v0, %v477_v24  ;;  %v2196_v17 = vld [vmem:[%s2763_s3 + $0x88] sm:$0xff]   ;;  %v2198_v22 = vld [vmem:[%s2763_s3 + $0x98] sm:$0xff]  }
  0xd8   : > { %2093 = vmatprep.subr.bf16.mxu1 %v2213_v58 }
  0xd9   : > { %v1597_v7 = vrot.slane %v1583_v41, %v2502_v56 }
  0xda   : > { %v479_v33 = vpop.permute.xlu1 %478  ;;  %v521_v40 = vpop.permute.xlu0 %520 }
  0xdb   : > { %2094 = vmatpush3.bf16.msra.mxu1 %v2188_v1  ;;  %v552_v39 = vsel %vm550_vm6, %v543_v32, %v521_v40  ;;  %v549_v54 = vsel %vm541_vm5, %v540_v43, %v479_v33  ;;  %v1598_v13 = vcombine.low %v1590_v11, %v1597_v7  ;;  %v2201_v40 = vld [vmem:[%s2763_s3 + $0xb0] sm:$0xff]  }
  0xdc   : > { %2095 = vmatprep.subr.bf16.mxu1 %v2213_v58 }
  0xde   : > { %v523_v47 = vpop.permute.xlu1 %522  ;;  %v525_v48 = vpop.permute.xlu0 %524 }
  0xdf   : > { %v554_v53 = vsel %vm550_vm6, %v545_v35, %v523_v47  ;;  %2096 = vmatpush3.bf16.msra.mxu1 %v2190_v36  ;;  %v556_v6 = vsel %vm550_vm6, %v547_v45, %v525_v48 }
  0xe0   : > { %v579_v55 = vcombine.low %v552_v39, %v554_v53  ;;  %2097 = vmatprep.subr.bf16.mxu1 %v2213_v58 }
  0xe2   : > { %v527_v8 = vpop.permute.xlu1 %526  ;;  %v1122_v3 = vpop.permute.xlu0 %1121  ;;  %v587_v12 = vrot.slane %v579_v55, %v2502_v56 }
  0xe3   : > { %v558_v9 = vsel %vm550_vm6, %v549_v54, %v527_v8  ;;  %2098 = vmatpush3.bf16.msra.mxu1 %v2192_v2  ;;  %v1199_v24 = vsel %vm528_vm4, %v2428_v44, %v1122_v3 }
  0xe4   : > { %v580_v49 = vcombine.low %v556_v6, %v558_v9 }
  0xe6   : > { %v594_v14 = vrot.slane %v580_v49, %v2502_v56  ;;  %v1124_v15 = vpop.permute.xlu1 %1123  ;;  %v1126_v62 = vpop.permute.xlu0 %1125  ;;  %2100 = vmatmul.mubr.bf16.vlgmr.msra.gmra.mrb[4].mxu1 %v1598_v13 }
  0xe7   : > { %v1202_v10 = vsel %vm528_vm4, %v2439_v51, %v1124_v15  ;;  %v1205_v61 = vsel %vm528_vm4, %v2441_v52, %v1126_v62 }
  0xe8   : > { %v595_v59 = vcombine.low %v587_v12, %v594_v14 }
  0xea   : > { %2040 = vmatmul.mubr.bf16.vlgmr.msra.gmra.mrb[0].mxu0 %v595_v59  ;;  %v1128_v16 = vpop.permute.xlu1 %1127  ;;  %v1142_v57 = vpop.permute.xlu0 %1141 }
  0xeb   : > { %2064 = vmatpush3.bf16.msra.mxu0 %v2195_v5  ;;  %2079 = vmatprep.mubr.msk.bf16.mxu0 %vm2216_vm3, %v2213_v58  ;;  %v1208_v25 = vsel %vm528_vm4, %v2456_v63, %v1128_v16  ;;  %v1210_v27 = vsel %vm541_vm5, %v1199_v24, %v1142_v57 }
  0xec   : > { %2065 = vmatprep.subr.bf16.mxu0 %v2213_v58 }
  0xee   : > { %v1144_v18 = vpop.permute.xlu1 %1143  ;;  %v1146_v19 = vpop.permute.xlu0 %1145 }
  0xef   : > { %2066 = vmatpush3.bf16.msra.mxu0 %v2196_v17  ;;  %v1212_v1 = vsel %vm541_vm5, %v1202_v10, %v1144_v18  ;;  %v1214_v44 = vsel %vm541_vm5, %v1205_v61, %v1146_v19 }
  0xf0   : > { %2067 = vmatprep.subr.bf16.mxu0 %v2213_v58 }
  0xf2   : > { %v1148_v4 = vpop.permute.xlu1 %1147  ;;  %v1190_v21 = vpop.permute.xlu0 %1189 }
  0xf3   : > { %2068 = vmatpush3.bf16.msra.mxu0 %v2197_v20  ;;  %v1216_v51 = vsel %vm541_vm5, %v1208_v25, %v1148_v4  ;;  %v1218_v63 = vsel %vm550_vm6, %v1210_v27, %v1190_v21 }
  0xf4   : > { %2069 = vmatprep.subr.bf16.mxu0 %v2213_v58 }
  0xf6   : > { %v1192_v26 = vpop.permute.xlu1 %1191  ;;  %v1194_v52 = vpop.permute.xlu0 %1193 }
  0xf7   : > { %2070 = vmatpush3.bf16.msra.mxu0 %v2198_v22  ;;  %v1220_v29 = vsel %vm550_vm6, %v1212_v1, %v1192_v26  ;;  %v1222_v30 = vsel %vm550_vm6, %v1214_v44, %v1194_v52 }
  0xf8   : > { %2071 = vmatprep.subr.bf16.mxu0 %v2213_v58  ;;  %v1246_v32 = vcombine.low %v1218_v63, %v1220_v29 }
  0xfa   : > { %v1196_v28 = vpop.permute.xlu1 %1195  ;;  %v1254_v34 = vrot.slane %v1246_v32, %v2502_v56 }
  0xfb   : > { %2072 = vmatpush3.bf16.msra.mxu0 %v2199_v60  ;;  %v1224_v31 = vsel %vm550_vm6, %v1216_v51, %v1196_v28 }
  0xfc   : > { %2073 = vmatprep.subr.bf16.mxu0 %v2213_v58  ;;  %v1247_v33 = vcombine.low %v1222_v30, %v1224_v31 }
  0xfe   : > { %v1261_v0 = vrot.slane %v1247_v33, %v2502_v56 }
  0xff   : > { %2074 = vmatpush3.bf16.msra.mxu0 %v2200_v23 }
 0x100   : > { %2075 = vmatprep.subr.bf16.mxu0 %v2213_v58  ;;  %v1262_v35 = vcombine.low %v1254_v34, %v1261_v0 }
 0x103   : > { %2076 = vmatpush3.bf16.msra.mxu0 %v2201_v40 }
 0x104   : > { %2077 = vmatprep.subr.bf16.mxu0 %v2213_v58 }
 0x107   : > { %2078 = vmatpush3.bf16.msra.mxu0 %v2202_v42 }
 0x10a   : > { %2080 = vmatmul.mubr.bf16.vlgmr.msra.gmra.mrb[4].mxu0 %v1262_v35 }
 0x199   : > { %v1063_v36 = vpop.f32.mrb[0].mxu1 }
 0x19a   : > { %v1080_v37 = vmul.f32 %v1063_v36, %v1063_v36  ;;  %v1094_v38 = vcombine.high %v1063_v36, %v1063_v36  ;;  %v2061_v43 = vpop.f32.mrb[1].mxu1  ;;  %v1070_v41 = vsel %vm686_vm14, %v1063_v36, 0.0 }
 0x19b   : > { %v1066_v39 = vpop.f32.mrb[2].mxu1 }
 0x19c   : > { %v1071_v56 = vsel %vm686_vm14, %v1066_v39, 0.0  ;;  %v1081_v45 = vmul.f32 %v1066_v39, %v1066_v39  ;;  %v1095_v47 = vcombine.high %v1066_v39, %v1066_v39  ;;  %v2062_v48 = vpop.f32.mrb[3].mxu1  ;;  %v2119_v53 = vpack.i.bf16 %v1094_v38, %v1063_v36 }
 0x19d   : > { %v1072_v50 = vadd.f32 %v1071_v56, %v1070_v41  ;;  %v1082_v58 = vsel %vm686_vm14, %v1080_v37, 0.0 }
 0x19e   : > { %v1083_v46 = vsel %vm686_vm14, %v1081_v45, 0.0  ;;  %v2124_v54 = vpack.i.bf16 %v1095_v47, %v1066_v39  ;;  %2120 = vrot.lane.b32.xlu0 %v2119_v53, %s2218_s9 }
 0x19f   : > { %v1084_v55 = vadd.f32 %v1083_v46, %v1082_v58  ;;  %v1073_v2 = vrot.slane %v1072_v50, 4 }
 0x1a0   : > { %2125 = vrot.lane.b32.xlu1 %v2124_v54, %s2218_s9 }
 0x1a1   : > { %v1074_v9 = vadd.f32 %v1073_v2, %v1072_v50  ;;  %v1085_v11 = vrot.slane %v1084_v55, 4 }
 0x1a3   : > { %v1086_v22 = vadd.f32 %v1085_v11, %v1084_v55  ;;  %v1075_v25 = vrot.slane %v1074_v9, 2 }
 0x1a5   : > { %v1087_v51 = vrot.slane %v1086_v22, 2  ;;  %v1076_v28 = vadd.f32 %v1075_v25, %v1074_v9 }
 0x1a7   : > { %v1088_v30 = vadd.f32 %v1087_v51, %v1086_v22  ;;  %v1077_v32 = vrot.slane %v1076_v28, 1 }
 0x1a9   : > { %v1089_v0 = vrot.slane %v1088_v30, 1  ;;  %v1078_v35 = vadd.f32 %v1077_v32, %v1076_v28 }
 0x1ab   : > { %v1090_v43 = vadd.f32 %v1089_v0, %v1088_v30 }
 0x1b9   : > { %v1682_v6 = vpop.f32.mrb[4].mxu1 }
 0x1ba   : > { %v1699_v7 = vmul.f32 %v1682_v6, %v1682_v6  ;;  %v1713_v8 = vcombine.high %v1682_v6, %v1682_v6  ;;  %v2101_v3 = vpop.f32.mrb[5].mxu1  ;;  %v1689_v49 = vsel %vm686_vm14, %v1682_v6, 0.0 }
 0x1bb   : > { %v1685_v12 = vpop.f32.mrb[6].mxu1 }
 0x1bc   : > { %v1690_v13 = vsel %vm686_vm14, %v1685_v12, 0.0  ;;  %v1700_v14 = vmul.f32 %v1685_v12, %v1685_v12  ;;  %v1714_v15 = vcombine.high %v1685_v12, %v1685_v12  ;;  %v2102_v62 = vpop.f32.mrb[7].mxu1  ;;  %v2129_v16 = vpack.i.bf16 %v1713_v8, %v1682_v6 }
 0x1bd   : > { %v2675_v5 = vpop.f32.mrb[0].mxu0  ;;  %v1691_v59 = vadd.f32 %v1690_v13, %v1689_v49  ;;  %v1701_v19 = vsel %vm686_vm14, %v1699_v7, 0.0 }
 0x1be   : > { %v687_v57 = vsel %vm686_vm14, %v2675_v5, 0.0  ;;  %v697_v17 = vmul.f32 %v2675_v5, %v2675_v5  ;;  %v2041_v18 = vpop.f32.mrb[1].mxu0  ;;  %v1702_v20 = vsel %vm686_vm14, %v1700_v14, 0.0  ;;  %v2134_v4 = vpack.i.bf16 %v1714_v15, %v1685_v12  ;;  %2130 = vrot.lane.b32.xlu0 %v2129_v16, %s2218_s9 }
 0x1bf   : > { %v2683_v21 = vpop.f32.mrb[2].mxu0  ;;  %v1703_v24 = vadd.f32 %v1702_v20, %v1701_v19  ;;  %v1692_v56 = vrot.slane %v1691_v59, 4  ;;  %v711_v51 = vcombine.high %v2675_v5, %v2675_v5 }
 0x1c0   : > { %v688_v10 = vsel %vm686_vm14, %v2683_v21, 0.0  ;;  %v2042_v61 = vpop.f32.mrb[3].mxu0  ;;  %v699_v26 = vsel %vm686_vm14, %v697_v17, 0.0  ;;  %2135 = vrot.lane.b32.xlu1 %v2134_v4, %s2218_s9  ;;  %v698_v27 = vmul.f32 %v2683_v21, %v2683_v21 }
 0x1c1   : > { %v689_v60 = vadd.f32 %v688_v10, %v687_v57  ;;  %v1704_v45 = vrot.slane %v1703_v24, 4  ;;  %v1693_v58 = vadd.f32 %v1692_v56, %v1691_v59 }
 0x1c2   : > { %v700_v44 = vsel %vm686_vm14, %v698_v27, 0.0 }
 0x1c3   : > { %v690_v1 = vrot.slane %v689_v60, 4  ;;  %v701_v52 = vadd.f32 %v700_v44, %v699_v26  ;;  %v1705_v7 = vadd.f32 %v1704_v45, %v1703_v24  ;;  %v1694_v9 = vrot.slane %v1693_v58, 2 }
 0x1c5   : > { %v691_v63 = vadd.f32 %v690_v1, %v689_v60  ;;  %v702_v29 = vrot.slane %v701_v52, 4  ;;  %v1706_v49 = vrot.slane %v1705_v7, 2  ;;  %v1695_v15 = vadd.f32 %v1694_v9, %v1693_v58 }
 0x1c7   : > { %v692_v23 = vrot.slane %v691_v63, 2  ;;  %v703_v31 = vadd.f32 %v702_v29, %v701_v52  ;;  %v1707_v16 = vadd.f32 %v1706_v49, %v1705_v7  ;;  %v1696_v18 = vrot.slane %v1695_v15, 1 }
 0x1c8   : > { %v712_v29 = vcombine.high %v2683_v21, %v2683_v21 }
 0x1c9   : > { %v693_v33 = vadd.f32 %v692_v23, %v691_v63  ;;  %v704_v40 = vrot.slane %v703_v31, 2  ;;  %v1708_v4 = vrot.slane %v1707_v16, 1  ;;  %v1697_v10 = vadd.f32 %v1696_v18, %v1695_v15 }
 0x1cb   : > { %v694_v34 = vrot.slane %v693_v33, 1  ;;  %v705_v42 = vadd.f32 %v704_v40, %v703_v31  ;;  %v1709_v26 = vadd.f32 %v1708_v4, %v1707_v16 }
 0x1cd   : > { %v695_v36 = vadd.f32 %v694_v34, %v693_v33  ;;  %v706_v37 = vrot.slane %v705_v42, 1 }
 0x1cf   : > { %v1079_v38 = vadd.f32 %v1078_v35, %v695_v36  ;;  %v707_v39 = vadd.f32 %v706_v37, %v705_v42 }
 0x1d1   : > { %v1091_v41 = vadd.f32 %v1090_v43, %v707_v39 }
 0x1dd   : > { %v2693_v47 = vpop.f32.mrb[4].mxu0 }
 0x1de   : > { %v1353_v48 = vsel %vm686_vm14, %v2693_v47, 0.0  ;;  %v1363_v50 = vmul.f32 %v2693_v47, %v2693_v47  ;;  %v2081_v53 = vpop.f32.mrb[5].mxu0  ;;  %v1377_v36 = vcombine.high %v2693_v47, %v2693_v47 }
 0x1df   : > { %v2699_v46 = vpop.f32.mrb[6].mxu0 }
 0x1e0   : > { %v1365_v54 = vsel %vm686_vm14, %v1363_v50, 0.0  ;;  %v1354_v55 = vsel %vm686_vm14, %v2699_v46, 0.0  ;;  %v1364_v2 = vmul.f32 %v2699_v46, %v2699_v46  ;;  %v2082_v6 = vpop.f32.mrb[7].mxu0  ;;  %v1378_v43 = vcombine.high %v2699_v46, %v2699_v46 }
 0x1e1   : > { %v1355_v8 = vadd.f32 %v1354_v55, %v1353_v48 }
 0x1e2   : > { %v1366_v3 = vsel %vm686_vm14, %v1364_v2, 0.0 }
 0x1e3   : > { %v1356_v11 = vrot.slane %v1355_v8, 4  ;;  %v1367_v12 = vadd.f32 %v1366_v3, %v1365_v54 }
 0x1e5   : > { %v1357_v13 = vadd.f32 %v1356_v11, %v1355_v8  ;;  %v1368_v14 = vrot.slane %v1367_v12, 4 }
 0x1e7   : > { %v1358_v62 = vrot.slane %v1357_v13, 2  ;;  %v1369_v59 = vadd.f32 %v1368_v14, %v1367_v12 }
 0x1e9   : > { %v1359_v57 = vadd.f32 %v1358_v62, %v1357_v13  ;;  %v1370_v17 = vrot.slane %v1369_v59, 2 }
 0x1eb   : > { %v1360_v19 = vrot.slane %v1359_v57, 1  ;;  %v1371_v20 = vadd.f32 %v1370_v17, %v1369_v59 }
 0x1ed   : > { %v1361_v22 = vadd.f32 %v1360_v19, %v1359_v57  ;;  %v1372_v24 = vrot.slane %v1371_v20, 1 }
 0x1ef   : > { %v1362_v61 = vadd.f32 %v1361_v22, %v1079_v38  ;;  %v1373_v25 = vadd.f32 %v1372_v24, %v1371_v20 }
 0x1f1   : > { %v1374_v60 = vadd.f32 %v1373_v25, %v1091_v41  ;;  %v1698_v27 = vadd.f32 %v1697_v10, %v1362_v61 }
 0x1f3   : > { %v1710_v1 = vadd.f32 %v1709_v26, %v1374_v60  ;;  %1741 = vst.msk [vmem:[%s265_s14] sm:$0x1] %vm1740_vm15, %v1698_v27 }
 0x1f5   : > { %1742 = vst.msk [vmem:[%s268_s17] sm:$0x1] %vm1740_vm15, %v1710_v1 }
 0x210   : > { %v2121_v44 = vpop.permute.xlu0 %2120 }
 0x211   : > { %v2123_v52 = vunpack.i.h.bf16 %v2121_v44  ;;  %v2122_v28 = vunpack.i.l.bf16 %v2121_v44 }
 0x212   : > { %v2126_v63 = vpop.permute.xlu1 %2125 }
 0x213   : > { %v2128_v23 = vunpack.i.h.bf16 %v2126_v63  ;;  %v2127_v30 = vunpack.i.l.bf16 %v2126_v63  ;;  %v1108_v31 = vsel %vm686_vm14, %v2675_v5, %v2122_v28  ;;  %v1109_v32 = vsel %vm686_vm14, %v711_v51, %v2123_v52 }
 0x214   : > { %v1112_v33 = vpack.c.bf16 %v1108_v31, %v1108_v31  ;;  %v1113_v40 = vpack.c.bf16 %v1109_v32, %v1109_v32 }
 0x215   : > { %v1110_v34 = vsel %vm686_vm14, %v2683_v21, %v2127_v30  ;;  %v1111_v0 = vsel %vm686_vm14, %v712_v29, %v2128_v23 }
 0x216   : > { %v1114_v42 = vpack.c.bf16 %v1110_v34, %v1110_v34  ;;  %v1115_v35 = vpack.c.bf16 %v1111_v0, %v1111_v0  ;;  %1117 = vst.msk [vmem:[%s2723_s23] sm:$0x3] %vm1116_vm0, %v1112_v33  ;;  %1118 = vst.msk [vmem:[%s2723_s23 + $0x4] sm:$0x3] %vm1116_vm0, %v1113_v40 }
 0x218   : > { %1119 = vst.msk [vmem:[%s2723_s23 + $0x8] sm:$0x3] %vm1116_vm0, %v1114_v42  ;;  %1120 = vst.msk [vmem:[%s2723_s23 + $0xc] sm:$0x3] %vm1116_vm0, %v1115_v35 }
 0x230   : > { %v2131_v5 = vpop.permute.xlu0 %2130 }
 0x231   : > { %v2133_v37 = vunpack.i.h.bf16 %v2131_v5  ;;  %v2132_v21 = vunpack.i.l.bf16 %v2131_v5 }
 0x232   : > { %v2136_v38 = vpop.permute.xlu1 %2135 }
 0x233   : > { %v2138_v39 = vunpack.i.h.bf16 %v2136_v38  ;;  %v2137_v41 = vunpack.i.l.bf16 %v2136_v38  ;;  %v1727_v56 = vsel %vm686_vm14, %v2693_v47, %v2132_v21  ;;  %v1728_v45 = vsel %vm686_vm14, %v1377_v36, %v2133_v37 }
 0x234   : > { %v1731_v48 = vpack.c.bf16 %v1727_v56, %v1727_v56  ;;  %v1732_v50 = vpack.c.bf16 %v1728_v45, %v1728_v45 }
 0x235   : > { %v1729_v53 = vsel %vm686_vm14, %v2699_v46, %v2137_v41  ;;  %v1730_v58 = vsel %vm686_vm14, %v1378_v43, %v2138_v39 }
 0x236   : > { %v1733_v54 = vpack.c.bf16 %v1729_v53, %v1729_v53  ;;  %v1734_v55 = vpack.c.bf16 %v1730_v58, %v1730_v58  ;;  %1975 = vst.msk [vmem:[%s2723_s23 + $0x2] sm:$0x3] %vm1116_vm0, %v1731_v48  ;;  %1976 = vst.msk [vmem:[%s2723_s23 + $0x6] sm:$0x3] %vm1116_vm0, %v1732_v50 }
 0x238   : > { %1977 = vst.msk [vmem:[%s2723_s23 + $0xa] sm:$0x3] %vm1116_vm0, %v1733_v54  ;;  %1978 = vst.msk [vmem:[%s2723_s23 + $0xe] sm:$0x3] %vm1116_vm0, %v1734_v55 }
 0x239 PF: > { %s17_s21 = sadd.s32 1, %s2209_s21  }
 0x23a   : > { %p14_p4 = scmp.ge.s32.totalorder %s17_s21, 4  }
 0x23c   :  { %16 = sbr.rel (!%p14_p4) target bundleno = 1 (0x1), region = 96 }

// kernel: dcgan_generator_forward.5
= control target key start
LH: loop header
LB: loop body
LE: loop exit
PB: predicated region body
PF: predicated region fallthrough
CT: control target
= control target key end

     0   :  { %s3108_s18 = smov 0   ;;  %s4019_s0 = inlined_call_operand.vmem [shape: bf16[2,8,8,16], index: 0, kind: input, shape index: {}]   ;;  %s4020_s1 = inlined_call_operand.vmem [shape: f32[1,16], index: 1, kind: input, shape index: {}]   ;;  %s4021_s2 = inlined_call_operand.vmem [shape: f32[1,16], index: 2, kind: input, shape index: {}]   ;;  %s4022_s3 = inlined_call_operand.vmem [shape: bf16[4,64,128], index: 3, kind: input, shape index: {}]   ;;  %s4023_s4 = inlined_call_operand.vmem [shape: f32[1,128], index: 4, kind: input, shape index: {}]   ;;  %s4024_s5 = inlined_call_operand.vmem [shape: bf16[2,8,2,8,256], index: 5, kind: output, shape index: {}]  }
   0x1 LB: > { %s2546_s19 = sadd.s32 4294967295, %s3072_s18   ;;  %p2550_p0 = scmp.ge.s32.totalorder %s3072_s18, 1  ;;  %s3072_s18 = sphi %s3108_s18, %s15_s18  }
   0x2   : > { %p187_p1 = scmp.lt.s32.totalorder %s3072_s18, 3 }
   0x4   : > { %p188_p2 = pnand %p2550_p0, %p187_p1 }
   0x6   : > { %191 = sbr.rel (%p188_p2) target bundleno = 589 (0x24d), region = 40 }
   0xd   : > { %vm226_vm0 = vcmask 125952   ;;  %vm228_vm1 = vcmask 122880   ;;  %p3116_p3 = scmp.lt.s32.totalorder %s2546_s19, 1  ;;  %v3074_v0 = vmov 0   ;;  %v3148_v1 = vld [vmem:[%s4020_s1] ss:$0 sm:$0xff] }
   0xe   : > { %227 = vst.msk [vmem:[#allocation2] sm:$0xf] %vm226_vm0, %v3074_v0  ;;  %230 = vst.msk [vmem:[#allocation2 + $0x8] sm:$0xf] %vm226_vm0, %v3074_v0  ;;  %v3156_v3 = vld [vmem:[%s4021_s2] ss:$0 sm:$0xff] }
   0xf   : > { %229 = vst.msk [vmem:[#allocation2 + $0x4] sm:$0x1] %vm228_vm1, %v3074_v0  ;;  %231 = vst.msk [vmem:[#allocation2 + $0xc] sm:$0x1] %vm228_vm1, %v3074_v0  ;;  %s4078_s19 = smov (!%p3116_p3, %s2546_s19), 1  ;;  %s3075_s29 = smov 16  }
  0x10   : > { %232 = vst.msk [vmem:[#allocation2 + $0x10] sm:$0xf] %vm226_vm0, %v3074_v0  ;;  %234 = vst.msk [vmem:[#allocation2 + $0x18] sm:$0xf] %vm226_vm0, %v3074_v0  ;;  %s2761_s21 = sshll.u32 %s4078_s19, 5  ;;  %s3076_s30 = smov 32  }
  0x11   : > { %233 = vst.msk [vmem:[#allocation2 + $0x14] sm:$0x1] %vm228_vm1, %v3074_v0  ;;  %235 = vst.msk [vmem:[#allocation2 + $0x1c] sm:$0x1] %vm228_vm1, %v3074_v0  ;;  %s219_s26 = scalar_lea.vmem %s4019_s0, %s2761_s21  ;;  %vm416_vm2 = vsmask.f32 7938 }
  0x12   : > { %236 = vst.msk [vmem:[#allocation2 + $0x20] sm:$0xf] %vm226_vm0, %v3074_v0  ;;  %238 = vst.msk [vmem:[#allocation2 + $0x28] sm:$0xf] %vm226_vm0, %v3074_v0  ;;  %v2788_v2 = vld [vmem:[%s219_s26] sm:$0xff]   ;;  %v2803_v4 = vld [vmem:[%s219_s26 + $0x8] sm:$0xff]  }
  0x13   : > { %237 = vst.msk [vmem:[#allocation2 + $0x24] sm:$0x1] %vm228_vm1, %v3074_v0  ;;  %239 = vst.msk [vmem:[#allocation2 + $0x2c] sm:$0x1] %vm228_vm1, %v3074_v0  ;;  %v2804_v5 = vld [vmem:[%s219_s26 + $0x10] sm:$0xff]   ;;  %v2790_v6 = vunpack.c.h.bf16 %v2788_v2  ;;  %v2789_v7 = vunpack.c.l.bf16 %v2788_v2  ;;  %v2794_v8 = vunpack.c.h.bf16 %v2803_v4  ;;  %v2793_v9 = vunpack.c.l.bf16 %v2803_v4  ;;  %v3158_v10 = vld [vmem:[%s219_s26 + $0x18] sm:$0xff]  }
  0x14   : > { %240 = vst.msk [vmem:[#allocation2 + $0x30] sm:$0xf] %vm226_vm0, %v3074_v0  ;;  %242 = vst.msk [vmem:[#allocation2 + $0x38] sm:$0xf] %vm226_vm0, %v3074_v0  ;;  %v2798_v13 = vunpack.c.h.bf16 %v2804_v5  ;;  %v2797_v14 = vunpack.c.l.bf16 %v2804_v5  ;;  %v2802_v15 = vunpack.c.h.bf16 %v3158_v10  ;;  %vm422_vm3 = vsmask.f32 256 }
  0x15   : > { %241 = vst.msk [vmem:[#allocation2 + $0x34] sm:$0x1] %vm228_vm1, %v3074_v0  ;;  %243 = vst.msk [vmem:[#allocation2 + $0x3c] sm:$0x1] %vm228_vm1, %v3074_v0  ;;  %v485_v12 = vld [vmem:[#allocation2] sm:$0xe]  ;;  %v272_v17 = vmul.f32 %v2790_v6, %v3148_v1  ;;  %v271_v18 = vmul.f32 %v2789_v7, %v3148_v1  ;;  %v2801_v19 = vunpack.c.l.bf16 %v3158_v10  ;;  %v274_v20 = vmul.f32 %v2794_v8, %v3148_v1 }
  0x16   : > { %244 = vst.msk [vmem:[#allocation2 + $0x40] sm:$0xf] %vm226_vm0, %v3074_v0  ;;  %246 = vst.msk [vmem:[#allocation2 + $0x48] sm:$0xf] %vm226_vm0, %v3074_v0  ;;  %v3160_v11 = vld [vmem:[#allocation2 + $0x4] sm:$0x1]  ;;  %v273_v21 = vmul.f32 %v2793_v9, %v3148_v1  ;;  %v276_v22 = vmul.f32 %v2798_v13, %v3148_v1  ;;  %v275_v23 = vmul.f32 %v2797_v14, %v3148_v1 }
  0x17   : > { %245 = vst.msk [vmem:[#allocation2 + $0x44] sm:$0x1] %vm228_vm1, %v3074_v0  ;;  %247 = vst.msk [vmem:[#allocation2 + $0x4c] sm:$0x1] %vm228_vm1, %v3074_v0  ;;  %v2602_v16 = vcombine.low %v485_v12, %v3160_v11  ;;  %v287_v26 = vadd.f32 %v3156_v3, %v272_v17  ;;  %v286_v27 = vadd.f32 %v3156_v3, %v271_v18  ;;  %v427_v52 = vld [vmem:[#allocation2 + $0x10] sm:$0xf] }
  0x18   : > { %v289_v28 = vadd.f32 %v3156_v3, %v274_v20  ;;  %v288_v29 = vadd.f32 %v3156_v3, %v273_v21  ;;  %v291_v30 = vadd.f32 %v3156_v3, %v276_v22  ;;  %v290_v31 = vadd.f32 %v3156_v3, %v275_v23  ;;  %v430_v53 = vld [vmem:[#allocation2 + $0x14] sm:$0x1]  ;;  %v418_v54 = vld [vmem:[#allocation2 + $0x8] sm:$0xf]  ;;  %v424_v55 = vld [vmem:[#allocation2 + $0xc] sm:$0x1] }
  0x19   : > { %v1019_v24 = vshrl.u32 %v2602_v16, 16  ;;  %v1021_v25 = vshll.u32 %v2602_v16, 16  ;;  %v295_v33 = vmax.f32 %v287_v26, 0.0  ;;  %v294_v34 = vmax.f32 %v286_v27, 0.0  ;;  %vm3188_vm4 = vmand %vm226_vm0, %vm416_vm2  ;;  %v439_v63 = vld [vmem:[#allocation2 + $0x20] sm:$0xf] }
  0x1a   : > { %v278_v35 = vmul.f32 %v2802_v15, %v3148_v1  ;;  %v297_v36 = vmax.f32 %v289_v28, 0.0  ;;  %v296_v37 = vmax.f32 %v288_v29, 0.0  ;;  %v299_v38 = vmax.f32 %v291_v30, 0.0  ;;  %v442_v0 = vld [vmem:[#allocation2 + $0x24] sm:$0x1]  ;;  %vm3196_vm5 = vmand %vm228_vm1, %vm422_vm3  ;;  %s3077_s10 = smov 48  }
  0x1b   : > { %v1023_v32 = vrot.slane %v1021_v25, 1  ;;  %v298_v39 = vmax.f32 %v290_v31, 0.0  ;;  %v2764_v41 = vpack.c.bf16 %v295_v33, %v295_v33  ;;  %v2763_v42 = vpack.c.bf16 %v294_v34, %v294_v34  ;;  %v433_v2 = vld [vmem:[#allocation2 + $0x18] sm:$0xf]  ;;  %v436_v4 = vld [vmem:[#allocation2 + $0x1c] sm:$0x1] }
  0x1c   : > { %v3179_v43 = vadd.f32 %v3156_v3, %v278_v35  ;;  %v2766_v44 = vpack.c.bf16 %v297_v36, %v297_v36  ;;  %v2765_v45 = vpack.c.bf16 %v296_v37, %v296_v37  ;;  %v3181_v46 = vpack.c.bf16 %v299_v38, %v299_v38  ;;  %v451_v31 = vld [vmem:[#allocation2 + $0x30] sm:$0xf]  ;;  %v445_v37 = vld [vmem:[#allocation2 + $0x28] sm:$0xf]  ;;  %v448_v38 = vld [vmem:[#allocation2 + $0x2c] sm:$0x1] }
  0x1d   : > { %v1024_v40 = vor.u32 %v1023_v32, %v1019_v24  ;;  %v3183_v47 = vpack.c.bf16 %v298_v39, %v298_v39  ;;  %v343_v48 = vshrl.u32 %v2764_v41, 16  ;;  %v346_v49 = vshll.u32 %v2764_v41, 16  ;;  %v454_v32 = vld [vmem:[#allocation2 + $0x34] sm:$0x1]  ;;  %s2762_s20 = sshll.u32 %s4078_s19, 7 }
  0x1e   : > { %v335_v50 = vshrl.u32 %v2763_v42, 16  ;;  %v338_v51 = vshll.u32 %v2763_v42, 16  ;;  %v359_v56 = vshrl.u32 %v2766_v44, 16  ;;  %v362_v57 = vshll.u32 %v2766_v44, 16  ;;  %s3974_s23 = scalar_lea.vmem %s4024_s5, %s2762_s20 }
  0x1f   : > { %1074 = vrot.lane.b32.xlu0 %v1024_v40, %s3075_s29  ;;  %v351_v58 = vshrl.u32 %v2765_v45, 16  ;;  %v354_v59 = vshll.u32 %v2765_v45, 16  ;;  %v345_v60 = vrot.slane %v343_v48, 7  ;;  %v375_v5 = vshrl.u32 %v3181_v46, 16 }
  0x20   : > { %v337_v62 = vrot.slane %v335_v50, 7  ;;  %v378_v6 = vshll.u32 %v3181_v46, 16  ;;  %v361_v8 = vrot.slane %v359_v56, 7  ;;  %v367_v12 = vshrl.u32 %v3183_v47, 16  ;;  %v466_v56 = vld [vmem:[#allocation2 + $0x44] sm:$0x1] }
  0x21   : > { %v353_v9 = vrot.slane %v351_v58, 7  ;;  %v370_v13 = vshll.u32 %v3183_v47, 16  ;;  %v348_v14 = vor.u32 %v346_v49, %v345_v60  ;;  %v349_v15 = vrot.slane %v345_v60, 4 }
  0x22   : > { %v340_v16 = vor.u32 %v338_v51, %v337_v62  ;;  %v341_v17 = vrot.slane %v337_v62, 4  ;;  %v364_v18 = vor.u32 %v362_v57, %v361_v8  ;;  %v365_v20 = vrot.slane %v361_v8, 4 }
  0x23   : > { %v356_v21 = vor.u32 %v354_v59, %v353_v9  ;;  %v357_v22 = vrot.slane %v353_v9, 4  ;;  %v428_v23 = vsel %vm3188_vm4, %v348_v14, %v427_v52  ;;  %v431_v24 = vsel %vm3196_vm5, %v349_v15, %v430_v53  ;;  %v460_v15 = vld [vmem:[#allocation2 + $0x3c] sm:$0x1] }
  0x24   : > { %v419_v25 = vsel %vm3188_vm4, %v340_v16, %v418_v54  ;;  %v425_v26 = vsel %vm3196_vm5, %v341_v17, %v424_v55  ;;  %429 = vst [vmem:[#allocation2 + $0x10] sm:$0xf] %v428_v23  ;;  %432 = vst [vmem:[#allocation2 + $0x14] sm:$0x1] %v431_v24  ;;  %v440_v27 = vsel %vm3188_vm4, %v364_v18, %v439_v63  ;;  %v377_v33 = vrot.slane %v375_v5, 7 }
  0x25   : > { %420 = vst [vmem:[#allocation2 + $0x8] sm:$0xf] %v419_v25  ;;  %426 = vst [vmem:[#allocation2 + $0xc] sm:$0x1] %v425_v26  ;;  %v443_v28 = vsel %vm3196_vm5, %v365_v20, %v442_v0  ;;  %v434_v29 = vsel %vm3188_vm4, %v356_v21, %v433_v2  ;;  %v437_v30 = vsel %vm3196_vm5, %v357_v22, %v436_v4  ;;  %v369_v34 = vrot.slane %v367_v12, 7 }
  0x26   : > { %441 = vst [vmem:[#allocation2 + $0x20] sm:$0xf] %v440_v27  ;;  %444 = vst [vmem:[#allocation2 + $0x24] sm:$0x1] %v443_v28  ;;  %v301_v35 = vmax.f32 %v3179_v43, 0.0  ;;  %v277_v36 = vmul.f32 %v2801_v19, %v3148_v1  ;;  %v380_v39 = vor.u32 %v378_v6, %v377_v33  ;;  %v381_v40 = vrot.slane %v377_v33, 4 }
  0x27   : > { %435 = vst [vmem:[#allocation2 + $0x18] sm:$0xf] %v434_v29  ;;  %438 = vst [vmem:[#allocation2 + $0x1c] sm:$0x1] %v437_v30  ;;  %v372_v41 = vor.u32 %v370_v13, %v369_v34  ;;  %v373_v42 = vrot.slane %v369_v34, 4  ;;  %vm790_vm6 = vcmask 130048  }
  0x28   : > { %v2770_v44 = vpack.c.bf16 %v301_v35, %v301_v35  ;;  %v292_v45 = vadd.f32 %v3156_v3, %v277_v36  ;;  %v452_v46 = vsel %vm3188_vm4, %v380_v39, %v451_v31  ;;  %v455_v47 = vsel %vm3196_vm5, %v381_v40, %v454_v32  ;;  %v463_v55 = vld [vmem:[#allocation2 + $0x40] sm:$0xf]  ;;  %v457_v12 = vld [vmem:[#allocation2 + $0x38] sm:$0xf] }
  0x29   : > { %v446_v43 = vsel %vm3188_vm4, %v372_v41, %v445_v37  ;;  %v449_v1 = vsel %vm3196_vm5, %v373_v42, %v448_v38  ;;  %453 = vst [vmem:[#allocation2 + $0x30] sm:$0xf] %v452_v46  ;;  %456 = vst [vmem:[#allocation2 + $0x34] sm:$0x1] %v455_v47  ;;  %vm815_vm7 = vcmask 261120   ;;  %vm832_vm8 = vcmask 392192  }
  0x2a   : > { %447 = vst [vmem:[#allocation2 + $0x28] sm:$0xf] %v446_v43  ;;  %450 = vst [vmem:[#allocation2 + $0x2c] sm:$0x1] %v449_v1  ;;  %v391_v10 = vshrl.u32 %v2770_v44, 16  ;;  %v394_v19 = vshll.u32 %v2770_v44, 16 }
  0x2b   : > { %v300_v48 = vmax.f32 %v292_v45, 0.0  ;;  %v3231_v3 = vld [vmem:[#allocation2 + $0x10] sm:$0xf]  ;;  %v3233_v49 = vld [vmem:[#allocation2 + $0x14] sm:$0x1]  ;;  %vm908_vm11 = vcmask 523264  }
  0x2c   : > { %v3235_v50 = vld [vmem:[#allocation2 + $0x8] sm:$0xf]  ;;  %v3239_v51 = vcombine.low %v3231_v3, %v3233_v49  ;;  %v501_v52 = vld [vmem:[#allocation2 + $0xc] sm:$0x1]  ;;  %v393_v62 = vrot.slane %v391_v10, 7 }
  0x2d   : > { %v3241_v53 = vld [vmem:[#allocation2 + $0x20] sm:$0xf]  ;;  %v3243_v54 = vld [vmem:[#allocation2 + $0x24] sm:$0x1]  ;;  %v2769_v57 = vpack.c.bf16 %v300_v48, %v300_v48  ;;  %v3246_v58 = vcombine.low %v3235_v50, %v501_v52  ;;  %v3256_v4 = vld [vmem:[#allocation2 + $0x14] sm:$0x1] }
  0x2e   : > { %4043 = vst [vmem:[#allocation3_spill] sm:$0xff] %v3239_v51  ;;  %v3248_v59 = vld [vmem:[#allocation2 + $0x18] sm:$0xf]  ;;  %v503_v60 = vld [vmem:[#allocation2 + $0x1c] sm:$0x1]  ;;  %1092 = vrot.lane.b32.xlu1 %v3239_v51, %s3076_s30  ;;  %v3254_v63 = vcombine.low %v3241_v53, %v3243_v54  ;;  %v396_v8 = vor.u32 %v394_v19, %v393_v62  ;;  %v397_v9 = vrot.slane %v393_v62, 4 }
  0x2f   : > { %4044 = vst [vmem:[#allocation4_spill] sm:$0xff] %v3246_v58  ;;  %v383_v0 = vshrl.u32 %v2769_v57, 16  ;;  %v386_v2 = vshll.u32 %v2769_v57, 16  ;;  %v487_v5 = vld [vmem:[#allocation2 + $0x10] sm:$0xe]  ;;  %1090 = vrot.lane.b32.xlu0 %v3246_v58, %s3076_s30  ;;  %v3261_v6 = vcombine.low %v3248_v59, %v503_v60 }
  0x30   : > { %4045 = vst [vmem:[#allocation5_spill] sm:$0xff] %v3254_v63  ;;  %v3263_v13 = vld [vmem:[#allocation2 + $0xc] sm:$0x1]  ;;  %v2604_v16 = vcombine.low %v487_v5, %v3256_v4  ;;  %v486_v17 = vld [vmem:[#allocation2 + $0x8] sm:$0xe]  ;;  %v464_v22 = vsel %vm3188_vm4, %v396_v8, %v463_v55  ;;  %v467_v23 = vsel %vm3196_vm5, %v397_v9, %v466_v56 }
  0x31   : > { %4046 = vst [vmem:[#allocation6_spill] sm:$0xff] %v3261_v6  ;;  %v385_v14 = vrot.slane %v383_v0, 7  ;;  %v3266_v18 = vld [vmem:[#allocation2 + $0x30] sm:$0xf]  ;;  %v3268_v20 = vld [vmem:[#allocation2 + $0x34] sm:$0x1]  ;;  %v2603_v28 = vcombine.low %v486_v17, %v3263_v13 }
  0x32   : > { %v3270_v21 = vld [vmem:[#allocation2 + $0x28] sm:$0xf]  ;;  %1096 = vrot.lane.b32.xlu1 %v3254_v63, %s3076_s30  ;;  %v3280_v24 = vcombine.low %v3266_v18, %v3268_v20  ;;  %v3282_v25 = vld [vmem:[#allocation2 + $0x2c] sm:$0x1]  ;;  %465 = vst [vmem:[#allocation2 + $0x40] sm:$0xf] %v464_v22 }
  0x33   : > { %468 = vst [vmem:[#allocation2 + $0x44] sm:$0x1] %v467_v23  ;;  %v388_v26 = vor.u32 %v386_v2, %v385_v14  ;;  %v389_v27 = vrot.slane %v385_v14, 4  ;;  %1094 = vrot.lane.b32.xlu0 %v3261_v6, %s3076_s30  ;;  %v3289_v29 = vcombine.low %v3270_v21, %v3282_v25  ;;  %v3291_v30 = vld [vmem:[#allocation2 + $0x1c] sm:$0x1]  ;;  %v1035_v33 = vshll.u32 %v2604_v16, 16 }
  0x34   : > { %4047 = vst [vmem:[#allocation7_spill] sm:$0xff] %v3280_v24  ;;  %v488_v34 = vld [vmem:[#allocation2 + $0x18] sm:$0xe]  ;;  %v509_v35 = vld [vmem:[#allocation2 + $0x8] sm:$0xe]  ;;  %v1028_v38 = vshll.u32 %v2603_v28, 16 }
  0x35   : > { %4048 = vst [vmem:[#allocation8_spill] sm:$0xff] %v3289_v29  ;;  %v458_v31 = vsel %vm3188_vm4, %v388_v26, %v457_v12  ;;  %v461_v32 = vsel %vm3196_vm5, %v389_v27, %v460_v15  ;;  %v2605_v36 = vcombine.low %v488_v34, %v3291_v30  ;;  %v510_v37 = vld [vmem:[#allocation2 + $0x10] sm:$0xe]  ;;  %v2610_v61 = vcombine.low %v509_v35, %v501_v52  ;;  %v511_v39 = vld [vmem:[#allocation2 + $0x18] sm:$0xe] }
  0x36   : > { %459 = vst [vmem:[#allocation2 + $0x38] sm:$0xf] %v458_v31  ;;  %462 = vst [vmem:[#allocation2 + $0x3c] sm:$0x1] %v461_v32  ;;  %1100 = vrot.lane.b32.xlu1 %v3280_v24, %s3076_s30  ;;  %v1033_v40 = vshrl.u32 %v2604_v16, 16  ;;  %v1037_v7 = vrot.slane %v1035_v33, 1  ;;  %v2611_v42 = vcombine.low %v510_v37, %v3233_v49  ;;  %v2612_v10 = vcombine.low %v511_v39, %v503_v60 }
  0x37   : > { %1098 = vrot.lane.b32.xlu0 %v3289_v29, %s3076_s30  ;;  %v1042_v41 = vshll.u32 %v2605_v36, 16  ;;  %v512_v44 = vld [vmem:[#allocation2 + $0x20] sm:$0xe]  ;;  %v1026_v43 = vshrl.u32 %v2603_v28, 16  ;;  %v1030_v1 = vrot.slane %v1028_v38, 1  ;;  %v1040_v19 = vshrl.u32 %v2605_v36, 16 }
  0x38   : > { %v1133_v48 = vshll.u32 %v2610_v61, 16  ;;  %v2613_v52 = vcombine.low %v512_v44, %v3243_v54  ;;  %v3312_v55 = vld [vmem:[#allocation2 + $0x24] sm:$0x1]  ;;  %v489_v56 = vld [vmem:[#allocation2 + $0x20] sm:$0xe]  ;;  %v1038_v62 = vor.u32 %v1037_v7, %v1033_v40  ;;  %v1140_v2 = vshll.u32 %v2611_v42, 16 }
  0x39   : > { %v3303_v45 = vld [vmem:[#allocation2 + $0x40] sm:$0xf]  ;;  %v1044_v0 = vrot.slane %v1042_v41, 1  ;;  %v3324_v5 = vld [vmem:[#allocation2 + $0x2c] sm:$0x1]  ;;  %v1031_v8 = vor.u32 %v1030_v1, %v1026_v43  ;;  %v1147_v9 = vshll.u32 %v2612_v10, 16  ;;  %v2606_v16 = vcombine.low %v489_v56, %v3312_v55 }
  0x3a   : > { %v3305_v46 = vld [vmem:[#allocation2 + $0x44] sm:$0x1]  ;;  %v490_v54 = vld [vmem:[#allocation2 + $0x28] sm:$0xe]  ;;  %v1131_v12 = vshrl.u32 %v2610_v61, 16  ;;  %v1135_v14 = vrot.slane %v1133_v48, 1 }
  0x3b   : > { %v3309_v47 = vcombine.low %v3303_v45, %v3305_v46  ;;  %v1154_v15 = vshll.u32 %v2613_v52, 16  ;;  %v1045_v17 = vor.u32 %v1044_v0, %v1040_v19  ;;  %v1138_v22 = vshrl.u32 %v2611_v42, 16  ;;  %v3331_v27 = vld [vmem:[#allocation2 + $0x34] sm:$0x1]  ;;  %v491_v28 = vld [vmem:[#allocation2 + $0x30] sm:$0xe] }
  0x3c   : > { %v1142_v23 = vrot.slane %v1140_v2, 1  ;;  %v2607_v26 = vcombine.low %v490_v54, %v3324_v5  ;;  %v2970_v33 = vld [vmem:[%s4022_s3 + $0x20] sm:$0xff]   ;;  %v1145_v34 = vshrl.u32 %v2612_v10, 16  ;;  %v1149_v35 = vrot.slane %v1147_v9, 1  ;;  %v2971_v40 = vld [vmem:[%s4022_s3 + $0x28] sm:$0xff]   ;;  %v2973_v2 = vld [vmem:[%s4022_s3 + $0x30] sm:$0xff]  }
  0x3d   : > { %4049 = vst [vmem:[#allocation9_spill] sm:$0xff] %v3309_v47  ;;  %1104 = vrot.lane.b32.xlu1 %v3309_v47, %s3076_s30  ;;  %v3316_v49 = vld [vmem:[#allocation2 + $0x38] sm:$0xf]  ;;  %v3318_v57 = vld [vmem:[#allocation2 + $0x3c] sm:$0x1]  ;;  %v1152_v36 = vshrl.u32 %v2613_v52, 16  ;;  %v3339_v37 = vor.u32 %v1135_v14, %v1131_v12  ;;  %v2608_v39 = vcombine.low %v491_v28, %v3331_v27  ;;  %2854 = vmatprep.subr.bf16.mxu1 %v2970_v33 }
  0x3e   : > { %v3322_v60 = vcombine.low %v3316_v49, %v3318_v57  ;;  %v3333_v31 = vld [vmem:[#allocation2 + $0x3c] sm:$0x1]  ;;  %v492_v32 = vld [vmem:[#allocation2 + $0x38] sm:$0xe]  ;;  %v1156_v38 = vrot.slane %v1154_v15, 1  ;;  %v1049_v61 = vshll.u32 %v2606_v16, 16  ;;  %v3346_v7 = vor.u32 %v1142_v23, %v1138_v22  ;;  %2855 = vmatpush3.bf16.msra.mxu1 %v2970_v33 }
  0x3f   : > { %v1056_v41 = vshll.u32 %v2607_v26, 16  ;;  %v2609_v42 = vcombine.low %v492_v32, %v3333_v31  ;;  %v513_v44 = vld [vmem:[#allocation2 + $0x28] sm:$0xe]  ;;  %v514_v43 = vld [vmem:[#allocation2 + $0x30] sm:$0xe]  ;;  %2856 = vmatprep.subr.bf16.mxu1 %v2971_v40  ;;  %v3351_v10 = vor.u32 %v1149_v35, %v1145_v34  ;;  %v1047_v19 = vshrl.u32 %v2606_v16, 16 }
  0x40   : > { %4050 = vst [vmem:[#allocation10_spill] sm:$0xff] %v3322_v60  ;;  %1102 = vrot.lane.b32.xlu0 %v3322_v60, %s3076_s30  ;;  %v3349_v1 = vld [vmem:[#allocation2] sm:$0xf]  ;;  %v3353_v48 = vld [vmem:[#allocation2 + $0x8] sm:$0xf]  ;;  %v3357_v52 = vor.u32 %v1156_v38, %v1152_v36  ;;  %v1051_v56 = vrot.slane %v1049_v61, 1  ;;  %v2614_v0 = vcombine.low %v513_v44, %v3282_v25  ;;  %v2615_v12 = vcombine.low %v514_v43, %v3268_v20 }
  0x41   : > { %1078 = vrot.lane.b32.xlu1 %v1038_v62, %s3075_s29  ;;  %v1063_v62 = vshll.u32 %v2608_v39, 16  ;;  %v1054_v54 = vshrl.u32 %v2607_v26, 16  ;;  %v1070_v9 = vshll.u32 %v2609_v42, 16  ;;  %v3368_v14 = vcombine.low %v3349_v1, %v3160_v11  ;;  %v515_v23 = vld [vmem:[#allocation2 + $0x38] sm:$0xe] }
  0x42   : > { %2857 = vmatpush3.bf16.msra.mxu1 %v2971_v40  ;;  %v3372_v25 = vcombine.low %v3353_v48, %v3263_v13  ;;  %v1052_v15 = vor.u32 %v1051_v56, %v1047_v19  ;;  %v1061_v16 = vshrl.u32 %v2608_v39, 16  ;;  %v1161_v22 = vshll.u32 %v2614_v0, 16  ;;  %v2976_v13 = vld [vmem:[%s4022_s3 + $0x38] sm:$0xff]   ;;  %v516_v32 = vld [vmem:[#allocation2 + $0x40] sm:$0xe] }
  0x43   : > { %2858 = vmatprep.subr.bf16.mxu1 %v2973_v2  ;;  %v1068_v26 = vshrl.u32 %v2609_v42, 16  ;;  %v1072_v28 = vrot.slane %v1070_v9, 1  ;;  %v1168_v11 = vshll.u32 %v2615_v12, 16  ;;  %v585_v33 = vshll.u32 %v3368_v14, 16  ;;  %v3384_v39 = vld [vmem:[#allocation2 + $0x10] sm:$0xf] }
  0x44   : > { %1076 = vrot.lane.b32.xlu0 %v1031_v8, %s3075_s29  ;;  %v1058_v8 = vrot.slane %v1056_v41, 1  ;;  %v2616_v34 = vcombine.low %v515_v23, %v3318_v57  ;;  %v1159_v36 = vshrl.u32 %v2614_v0, 16  ;;  %v1163_v38 = vrot.slane %v1161_v22, 1  ;;  %v3386_v40 = vld [vmem:[#allocation2 + $0x18] sm:$0xf] }
  0x45   : > { %1080 = vrot.lane.b32.xlu1 %v1045_v17, %s3075_s29  ;;  %v1065_v17 = vrot.slane %v1063_v62, 1  ;;  %v1166_v61 = vshrl.u32 %v2615_v12, 16  ;;  %4051 = vst [vmem:[#allocation11_spill] sm:$0xff] %v3386_v40  ;;  %v1073_v41 = vor.u32 %v1072_v28, %v1068_v26  ;;  %v1170_v42 = vrot.slane %v1168_v11, 1 }
  0x46   : > { %v1059_v20 = vor.u32 %v1058_v8, %v1054_v54  ;;  %2859 = vmatpush3.bf16.msra.mxu1 %v2973_v2  ;;  %v592_v44 = vshll.u32 %v3372_v25, 16  ;;  %v2617_v43 = vcombine.low %v516_v32, %v3305_v46  ;;  %v583_v57 = vshrl.u32 %v3368_v14, 16 }
  0x47   : > { %2860 = vmatprep.subr.bf16.mxu1 %v2976_v13  ;;  %v1066_v35 = vor.u32 %v1065_v17, %v1061_v16  ;;  %v587_v19 = vrot.slane %v585_v33, 1  ;;  %v3394_v56 = vcombine.low %v3384_v39, %v3256_v4  ;;  %v3398_v62 = vcombine.low %v3386_v40, %v3291_v30  ;;  %v2978_v33 = vld [vmem:[%s4022_s3] sm:$0xff]  }
  0x48   : > { %1186 = vrot.lane.b32.xlu0 %v3339_v37, %s3077_s10  ;;  %v3401_v0 = vor.u32 %v1163_v38, %v1159_v36  ;;  %v1175_v2 = vshll.u32 %v2616_v34, 16  ;;  %v3404_v46 = vor.u32 %v1170_v42, %v1166_v61  ;;  %v590_v54 = vshrl.u32 %v3372_v25, 16  ;;  %2838 = vmatprep.subr.bf16.mxu0 %v2978_v33 }
  0x49   : > { %1188 = vrot.lane.b32.xlu1 %v3346_v7, %s3077_s10  ;;  %v594_v8 = vrot.slane %v592_v44, 1  ;;  %v1182_v9 = vshll.u32 %v2617_v43, 16  ;;  %v588_v4 = vor.u32 %v587_v19, %v583_v57  ;;  %v1173_v12 = vshrl.u32 %v2616_v34, 16  ;;  %2839 = vmatpush3.bf16.msra.mxu0 %v2978_v33  ;;  %v3481_v33 = vld [vmem:[#allocation2 + $0x10] sm:$0xf] }
  0x4a   : > { %2861 = vmatpush3.bf16.msra.mxu1 %v2976_v13  ;;  %v1177_v30 = vrot.slane %v1175_v2, 1  ;;  %v1180_v17 = vshrl.u32 %v2617_v43, 16  ;;  %v606_v23 = vshll.u32 %v3398_v62, 16  ;;  %v597_v26 = vshrl.u32 %v3394_v56, 16  ;;  %v2985_v2 = vld [vmem:[%s4022_s3 + $0x18] sm:$0xff]  }
  0x4b   : > { %v595_v16 = vor.u32 %v594_v8, %v590_v54  ;;  %v1184_v22 = vrot.slane %v1182_v9, 1  ;;  %v604_v13 = vshrl.u32 %v3398_v62, 16  ;;  %v2573_v38 = vcombine.low %v3235_v50, %v3235_v50 }
  0x4c   : > { %1190 = vrot.lane.b32.xlu0 %v3351_v10, %s3077_s10  ;;  %v608_v32 = vrot.slane %v606_v23, 1  ;;  %v721_v61 = vshll.u32 %v3246_v58, 16  ;;  %v2574_v42 = vcombine.low %v3231_v3, %v3231_v3  ;;  %v728_v44 = vshll.u32 %v3239_v51, 16  ;;  %v535_v23 = vld [vmem:[#allocation2 + $0x18] sm:$0xe] }
  0x4d   : > { %1192 = vrot.lane.b32.xlu1 %v3357_v52, %s3077_s10  ;;  %v3418_v11 = vor.u32 %v1184_v22, %v1180_v17  ;;  %v2575_v50 = vcombine.low %v3248_v59, %v3248_v59  ;;  %v719_v43 = vshrl.u32 %v3246_v58, 16  ;;  %v735_v19 = vshll.u32 %v3261_v6, 16  ;;  %v534_v22 = vld [vmem:[#allocation2 + $0x10] sm:$0xe] }
  0x4e   : > { %v609_v36 = vor.u32 %v608_v32, %v604_v13  ;;  %v723_v57 = vrot.slane %v721_v61, 1  ;;  %v2576_v3 = vcombine.low %v3241_v53, %v3241_v53  ;;  %v726_v54 = vshrl.u32 %v3239_v51, 16  ;;  %v527_v13 = vld [vmem:[#allocation2 + $0x1c] sm:$0x1]  ;;  %v3477_v32 = vld [vmem:[#allocation2 + $0x20] sm:$0xf] }
  0x4f   : > { %v730_v8 = vrot.slane %v728_v44, 1  ;;  %v742_v9 = vshll.u32 %v3254_v63, 16  ;;  %v740_v53 = vshrl.u32 %v3254_v63, 16  ;;  %4052 = vst [vmem:[#allocation12_spill] sm:$0xff] %v3477_v32  ;;  %v3491_v61 = vcombine.low %v3477_v32, %v3312_v55  ;;  %v3507_v55 = vld [vmem:[#allocation2 + $0x28] sm:$0xf] }
  0x50   : > { %1082 = vrot.lane.b32.xlu0 %v1052_v15, %s3075_s29  ;;  %v599_v15 = vshll.u32 %v3394_v56, 16  ;;  %v3456_v59 = vor.u32 %v723_v57, %v719_v43  ;;  %v529_v43 = vld [vmem:[#allocation2 + $0x2c] sm:$0x1]  ;;  %v537_v57 = vld [vmem:[#allocation2 + $0x28] sm:$0xe] }
  0x51   : > { %1084 = vrot.lane.b32.xlu1 %v1059_v20, %s3075_s29  ;;  %v3414_v20 = vor.u32 %v1177_v30, %v1173_v12  ;;  %v737_v12 = vrot.slane %v735_v19, 1  ;;  %v3460_v30 = vor.u32 %v730_v8, %v726_v54  ;;  %v3509_v19 = vld [vmem:[#allocation2 + $0x30] sm:$0xf]  ;;  %v3514_v54 = vld [vmem:[#allocation2 + $0x38] sm:$0xf]  ;;  %v3519_v8 = vcombine.low %v3507_v55, %v529_v43 }
  0x52   : > { %v601_v28 = vrot.slane %v599_v15, 1  ;;  %v744_v15 = vrot.slane %v742_v9, 1  ;;  %4054 = vst [vmem:[#allocation14_spill] sm:$0xff] %v3509_v19  ;;  %4055 = vst [vmem:[#allocation15_spill] sm:$0xff] %v3514_v54  ;;  %v613_v9 = vshll.u32 %v3491_v61, 16 }
  0x53   : > { %vm1290_vm9 = vsmask.f32 3328  ;;  %vm1291_vm10 = vsmask.f32 7440 }
  0x54   : > { %1086 = vrot.lane.b32.xlu0 %v1066_v35, %s3075_s29  ;;  %v602_v34 = vor.u32 %v601_v28, %v597_v26  ;;  %v2980_v35 = vld [vmem:[%s4022_s3 + $0x8] sm:$0xff]   ;;  %v3469_v17 = vor.u32 %v744_v15, %v740_v53  ;;  %v526_v26 = vld [vmem:[#allocation2 + $0x14] sm:$0x1]  ;;  %vm3703_vm12 = vmor %vm1290_vm9, %vm1291_vm10 }
  0x55   : > { %1088 = vrot.lane.b32.xlu1 %v1073_v41, %s3075_s29  ;;  %2840 = vmatprep.subr.bf16.mxu0 %v2980_v35  ;;  %v2983_v41 = vld [vmem:[%s4022_s3 + $0x10] sm:$0xff]   ;;  %v2699_v28 = vcombine.low %v534_v22, %v526_v26  ;;  %v3527_v22 = vcombine.low %v3509_v19, %v3331_v27 }
  0x56   : > { %2841 = vmatpush3.bf16.msra.mxu0 %v2980_v35  ;;  %v3483_v35 = vld [vmem:[#allocation2 + $0x28] sm:$0xf] }
  0x57   : > { %2842 = vmatprep.subr.bf16.mxu0 %v2983_v41  ;;  %4053 = vst [vmem:[#allocation13_spill] sm:$0xff] %v3483_v35  ;;  %v3500_v44 = vcombine.low %v3483_v35, %v3324_v5  ;;  %v2017_v5 = vshrl.u32 %v2699_v28, 16 }
  0x58   : > { %1194 = vrot.lane.b32.xlu0 %v3401_v0, %s3077_s10 }
  0x59   : > { %1196 = vrot.lane.b32.xlu1 %v3404_v46, %s3077_s10  ;;  %v620_v15 = vshll.u32 %v3500_v44, 16 }
  0x5a   : > { %2843 = vmatpush3.bf16.msra.mxu0 %v2983_v41  ;;  %v536_v41 = vld [vmem:[#allocation2 + $0x20] sm:$0xe] }
  0x5b   : > { %2844 = vmatprep.subr.bf16.mxu0 %v2985_v2  ;;  %v622_v27 = vrot.slane %v620_v15, 1 }
  0x5c   : > { %638 = vrot.lane.b32.xlu0 %v588_v4, %s3075_s29  ;;  %v733_v4 = vshrl.u32 %v3261_v6, 16 }
  0x5d   : > { %640 = vrot.lane.b32.xlu1 %v595_v16, %s3075_s29 }
  0x5e   : > { %2845 = vmatpush3.bf16.msra.mxu0 %v2985_v2  ;;  %v3465_v16 = vor.u32 %v737_v12, %v733_v4  ;;  %v2702_v4 = vcombine.low %v537_v57, %v529_v43 }
  0x60   : > { %1198 = vrot.lane.b32.xlu0 %v3414_v20, %s3077_s10 }
  0x61   : > { %1200 = vrot.lane.b32.xlu1 %v3418_v11, %s3077_s10 }
  0x64   : > { %642 = vrot.lane.b32.xlu0 %v602_v34, %s3075_s29  ;;  %v2700_v34 = vcombine.low %v535_v23, %v527_v13  ;;  %v3531_v23 = vcombine.low %v3514_v54, %v3333_v31  ;;  %v3542_v31 = vld [vmem:[%s4022_s3 + $0x60] sm:$0xff]   ;;  %v625_v54 = vshrl.u32 %v3527_v22, 16 }
  0x65   : > { %644 = vrot.lane.b32.xlu1 %v609_v36, %s3075_s29  ;;  %v3485_v36 = vld [vmem:[#allocation2 + $0x18] sm:$0xf]  ;;  %2886 = vmatprep.subr.bf16.mxu1 %v3542_v31 }
  0x66   : > { %v2024_v12 = vshrl.u32 %v2700_v34, 16 }
  0x68   : > { %678 = vrot.lane.b32.xlu0 %v2573_v38, %s3076_s30  ;;  %v3487_v38 = vld [vmem:[#allocation2 + $0x20] sm:$0xf] }
  0x69   : > { %680 = vrot.lane.b32.xlu1 %v2574_v42, %s3076_s30  ;;  %v2019_v42 = vshll.u32 %v2699_v28, 16  ;;  %v611_v28 = vshrl.u32 %v3491_v61, 16 }
  0x6c   : > { %682 = vrot.lane.b32.xlu0 %v2575_v50, %s3076_s30  ;;  %v3505_v50 = vcombine.low %v3485_v36, %v527_v13  ;;  %v615_v13 = vrot.slane %v613_v9, 1  ;;  %v2038_v9 = vshrl.u32 %v2702_v4, 16 }
  0x6d   : > { %684 = vrot.lane.b32.xlu1 %v2576_v3, %s3076_s30 }
  0x6e   : > { %v616_v43 = vor.u32 %v615_v13, %v611_v28 }
  0x70   : > { %774 = vrot.lane.b32.xlu0 %v3456_v59, %s3077_s10 }
  0x71   : > { %776 = vrot.lane.b32.xlu1 %v3460_v30, %s3077_s10 }
  0x74   : > { %778 = vrot.lane.b32.xlu0 %v3465_v16, %s3077_s10 }
  0x75   : > { %780 = vrot.lane.b32.xlu1 %v3469_v17, %s3077_s10 }
  0x78   : > { %1960 = vrot.lane.b32.xlu0 %v3339_v37, %s3075_s29  ;;  %v3496_v37 = vcombine.low %v3481_v33, %v526_v26 }
  0x79   : > { %1962 = vrot.lane.b32.xlu1 %v3346_v7, %s3075_s29  ;;  %v528_v7 = vld [vmem:[#allocation2 + $0x24] sm:$0x1] }
  0x7a   : > { %v3512_v2 = vcombine.low %v3487_v38, %v528_v7  ;;  %v2701_v3 = vcombine.low %v536_v41, %v528_v7  ;;  %v618_v41 = vshrl.u32 %v3500_v44, 16 }
  0x7c   : > { %1964 = vrot.lane.b32.xlu0 %v3351_v10, %s3075_s29  ;;  %v2026_v10 = vshll.u32 %v2700_v34, 16  ;;  %v2033_v7 = vshll.u32 %v2701_v3, 16 }
  0x7d   : > { %1966 = vrot.lane.b32.xlu1 %v3357_v52, %s3075_s29  ;;  %v2021_v52 = vrot.slane %v2019_v42, 1  ;;  %v2040_v42 = vshll.u32 %v2702_v4, 16 }
  0x7e   : > { %v2028_v53 = vrot.slane %v2026_v10, 1  ;;  %v2031_v10 = vshrl.u32 %v2701_v3, 16  ;;  %v2035_v57 = vrot.slane %v2033_v7, 1  ;;  %v632_v3 = vshrl.u32 %v3531_v23, 16 }
  0x7f   : > { %v2022_v26 = vor.u32 %v2021_v52, %v2017_v5  ;;  %v627_v5 = vshll.u32 %v3527_v22, 16  ;;  %v623_v52 = vor.u32 %v622_v27, %v618_v41  ;;  %v2577_v7 = vcombine.low %v3270_v21, %v3270_v21 }
  0x80   : > { %1976 = vrot.lane.b32.xlu0 %v3496_v37, %s3076_s30  ;;  %v2029_v34 = vor.u32 %v2028_v53, %v2024_v12  ;;  %v2042_v12 = vrot.slane %v2040_v42, 1  ;;  %v634_v53 = vshll.u32 %v3531_v23, 16  ;;  %v2036_v15 = vor.u32 %v2035_v57, %v2031_v10 }
  0x81   : > { %1978 = vrot.lane.b32.xlu1 %v3505_v50, %s3076_s30  ;;  %v629_v19 = vrot.slane %v627_v5, 1  ;;  %v2578_v41 = vcombine.low %v3266_v18, %v3266_v18  ;;  %v756_v27 = vshll.u32 %v3280_v24, 16  ;;  %v2580_v21 = vcombine.low %v3303_v45, %v3303_v45 }
  0x82   : > { %v636_v28 = vrot.slane %v634_v53, 1  ;;  %v754_v10 = vshrl.u32 %v3280_v24, 16  ;;  %v770_v57 = vshll.u32 %v3309_v47, 16  ;;  %v768_v45 = vshrl.u32 %v3309_v47, 16 }
  0x83   : > { %v630_v13 = vor.u32 %v629_v19, %v625_v54  ;;  %v2579_v19 = vcombine.low %v3316_v49, %v3316_v49  ;;  %v747_v54 = vshrl.u32 %v3289_v29, 16  ;;  %v758_v18 = vrot.slane %v756_v27, 1 }
  0x84   : > { %1980 = vrot.lane.b32.xlu0 %v3512_v2, %s3076_s30  ;;  %v637_v4 = vor.u32 %v636_v28, %v632_v3  ;;  %v772_v53 = vrot.slane %v770_v57, 1 }
  0x85   : > { %1982 = vrot.lane.b32.xlu1 %v3519_v8, %s3076_s30 }
  0x86   : > { %v3591_v3 = vor.u32 %v772_v53, %v768_v45 }
  0x88   : > { %2072 = vrot.lane.b32.xlu0 %v2022_v26, %s3077_s10  ;;  %v2043_v26 = vor.u32 %v2042_v12, %v2038_v9  ;;  %v3580_v12 = vor.u32 %v758_v18, %v754_v10  ;;  %v540_v10 = vld [vmem:[#allocation2 + $0x40] sm:$0xe] }
  0x89   : > { %2074 = vrot.lane.b32.xlu1 %v2029_v34, %s3077_s10  ;;  %v749_v34 = vshll.u32 %v3289_v29, 16 }
  0x8b   : > { %v751_v42 = vrot.slane %v749_v34, 1  ;;  %v539_v34 = vld [vmem:[#allocation2 + $0x38] sm:$0xe] }
  0x8c   : > { %646 = vrot.lane.b32.xlu0 %v616_v43, %s3075_s29  ;;  %v763_v43 = vshll.u32 %v3322_v60, 16 }
  0x8d   : > { %648 = vrot.lane.b32.xlu1 %v623_v52, %s3075_s29  ;;  %v3574_v5 = vor.u32 %v751_v42, %v747_v54  ;;  %v761_v52 = vshrl.u32 %v3322_v60, 16  ;;  %v3609_v42 = vld [vmem:[#allocation2 + $0x30] sm:$0xf] }
  0x8e   : > { %v765_v9 = vrot.slane %v763_v43, 1 }
  0x90   : > { %2076 = vrot.lane.b32.xlu0 %v2036_v15, %s3077_s10  ;;  %v3585_v15 = vor.u32 %v765_v9, %v761_v52  ;;  %v541_v52 = vld [vmem:[#allocation2 + $0x48] sm:$0xe]  ;;  %v532_v9 = vld [vmem:[#allocation2 + $0x44] sm:$0x1] }
  0x91   : > { %2078 = vrot.lane.b32.xlu1 %v2043_v26, %s3077_s10  ;;  %v3576_v49 = vpop.permute.xlu0 %1074 }
  0x94   : > { %650 = vrot.lane.b32.xlu0 %v630_v13, %s3075_s29 }
  0x95   : > { %652 = vrot.lane.b32.xlu1 %v637_v4, %s3075_s29  ;;  %v538_v4 = vld [vmem:[#allocation2 + $0x30] sm:$0xe] }
  0x98   : > { %686 = vrot.lane.b32.xlu0 %v2577_v7, %s3076_s30 }
  0x99   : > { %688 = vrot.lane.b32.xlu1 %v2578_v41, %s3076_s30  ;;  %v530_v41 = vld [vmem:[#allocation2 + $0x34] sm:$0x1] }
  0x9a   : > { %v2703_v27 = vcombine.low %v538_v4, %v530_v41  ;;  %v2705_v4 = vcombine.low %v540_v10, %v532_v9 }
  0x9c   : > { %690 = vrot.lane.b32.xlu0 %v2579_v19, %s3076_s30  ;;  %v531_v19 = vld [vmem:[#allocation2 + $0x3c] sm:$0x1]  ;;  %v2047_v57 = vshll.u32 %v2703_v27, 16  ;;  %v2061_v32 = vshll.u32 %v2705_v4, 16  ;;  %v2059_v6 = vshrl.u32 %v2705_v4, 16  ;;  %v1690_v4 = vshll.u32 %v3496_v37, 16 }
  0x9d   : > { %692 = vrot.lane.b32.xlu1 %v2580_v21, %s3076_s30  ;;  %v2704_v43 = vcombine.low %v539_v34, %v531_v19  ;;  %v3611_v21 = vld [vmem:[#allocation2 + $0x38] sm:$0xf]  ;;  %v3627_v34 = vld [vmem:[#allocation2 + $0x48] sm:$0xf] }
  0x9e   : > { %v3625_v45 = vcombine.low %v3611_v21, %v531_v19  ;;  %v2049_v24 = vrot.slane %v2047_v57, 1 }
  0x9f   : > { %v2054_v53 = vshll.u32 %v2704_v43, 16  ;;  %v2052_v10 = vshrl.u32 %v2704_v43, 16  ;;  %v1203_v43 = vsel %vm790_vm6, %v3368_v14, %v3576_v49 }
  0xa0   : > { %782 = vrot.lane.b32.xlu0 %v3574_v5, %s3077_s10  ;;  %v3589_v26 = vpop.permute.xlu1 %1092 }
  0xa1   : > { %784 = vrot.lane.b32.xlu1 %v3580_v12, %s3077_s10  ;;  %v3593_v28 = vpop.permute.xlu0 %1090  ;;  %v2056_v29 = vrot.slane %v2054_v53, 1 }
  0xa4   : > { %786 = vrot.lane.b32.xlu0 %v3585_v15, %s3077_s10  ;;  %v3599_v13 = vpop.permute.xlu1 %1096 }
  0xa5   : > { %788 = vrot.lane.b32.xlu1 %v3591_v3, %s3077_s10  ;;  %v3601_v7 = vpop.permute.xlu0 %1094 }
  0xa8   : > { %1968 = vrot.lane.b32.xlu0 %v3401_v0, %s3075_s29  ;;  %v3607_v54 = vpop.permute.xlu1 %1100  ;;  %v3618_v0 = vcombine.low %v3609_v42, %v530_v41 }
  0xa9   : > { %1970 = vrot.lane.b32.xlu1 %v3404_v46, %s3075_s29  ;;  %v3615_v18 = vpop.permute.xlu0 %1098  ;;  %v3622_v46 = vld [vmem:[#allocation2 + $0x40] sm:$0xf] }
  0xaa   : > { %v3634_v60 = vcombine.low %v3622_v46, %v532_v9 }
  0xac   : > { %1972 = vrot.lane.b32.xlu0 %v3414_v20, %s3075_s29  ;;  %v533_v20 = vld [vmem:[#allocation2 + $0x4c] sm:$0x1] }
  0xad   : > { %1974 = vrot.lane.b32.xlu1 %v3418_v11, %s3075_s29  ;;  %v2706_v41 = vcombine.low %v541_v52, %v533_v20  ;;  %v2045_v11 = vshrl.u32 %v2703_v27, 16  ;;  %v3639_v19 = vcombine.low %v3627_v34, %v533_v20  ;;  %v2057_v27 = vor.u32 %v2056_v29, %v2052_v10 }
  0xae   : > { %v2063_v20 = vrot.slane %v2061_v32, 1 }
  0xaf   : > { %v3629_v47 = vpop.permute.xlu1 %1104  ;;  %v2068_v63 = vshll.u32 %v2706_v41, 16  ;;  %v2050_v9 = vor.u32 %v2049_v24, %v2045_v11  ;;  %v2066_v51 = vshrl.u32 %v2706_v41, 16  ;;  %v2662_v24 = vcombine.low %v3481_v33, %v3481_v33 }
  0xb0   : > { %1984 = vrot.lane.b32.xlu0 %v3618_v0, %s3076_s30  ;;  %v2064_v49 = vor.u32 %v2063_v20, %v2059_v6 }
  0xb1   : > { %1986 = vrot.lane.b32.xlu1 %v3625_v45, %s3076_s30  ;;  %v2070_v58 = vrot.slane %v2068_v63, 1  ;;  %v1219_v63 = vsel %vm815_vm7, %v1203_v43, %v3593_v28 }
  0xb2   : > { %v3641_v35 = vpop.permute.xlu0 %1102 }
  0xb3   : > { %v1079_v52 = vpop.permute.xlu1 %1078 }
  0xb4   : > { %1988 = vrot.lane.b32.xlu0 %v3634_v60, %s3076_s30  ;;  %v1207_v11 = vsel %vm790_vm6, %v3394_v56, %v1079_v52  ;;  %v3682_v52 = vrot.slane %v1690_v4, 1 }
  0xb5   : > { %1990 = vrot.lane.b32.xlu1 %v3639_v19, %s3076_s30 }
  0xb6   : > { %v1077_v57 = vpop.permute.xlu0 %1076 }
  0xb7   : > { %v1081_v53 = vpop.permute.xlu1 %1080  ;;  %v1205_v40 = vsel %vm790_vm6, %v3372_v25, %v1077_v57  ;;  %v2071_v57 = vor.u32 %v2070_v58, %v2066_v51 }
  0xb8   : > { %2080 = vrot.lane.b32.xlu0 %v2050_v9, %s3077_s10  ;;  %v1209_v28 = vsel %vm790_vm6, %v3398_v62, %v1081_v53  ;;  %v1223_v62 = vsel %vm815_vm7, %v1207_v11, %v3601_v7 }
  0xb9   : > { %2082 = vrot.lane.b32.xlu1 %v2057_v27, %s3077_s10  ;;  %v1221_v27 = vsel %vm815_vm7, %v1205_v40, %v3589_v26 }
  0xba   : > { %v1187_v25 = vpop.permute.xlu0 %1186 }
  0xbb   : > { %v1235_v10 = vsel %vm832_vm8, %v1219_v63, %v1187_v25  ;;  %v1189_v9 = vpop.permute.xlu1 %1188  ;;  %v1225_v25 = vsel %vm815_vm7, %v1209_v28, %v3599_v13 }
  0xbc   : > { %v2618_v43 = vcombine.low %v1235_v10, %v1235_v10  ;;  %v2619_v6 = vcombine.high %v1235_v10, %v1235_v10  ;;  %1607 = vrot.lane.b32.xlu0 %v3456_v59, %s3075_s29  ;;  %v1237_v20 = vsel %vm832_vm8, %v1221_v27, %v1189_v9  ;;  %v3687_v59 = vld [vmem:[%s4022_s3 + $0x40] sm:$0xff]  }
  0xbd   : > { %v2620_v41 = vcombine.low %v1237_v20, %v1237_v20  ;;  %v2621_v29 = vcombine.high %v1237_v20, %v1237_v20  ;;  %1609 = vrot.lane.b32.xlu1 %v3460_v30, %s3075_s29  ;;  %2870 = vmatprep.subr.bf16.mxu0 %v3687_v59 }
  0xbe   : > { %v1294_v51 = vshrl.u32 %v2618_v43, 16  ;;  %v1297_v58 = vshll.u32 %v2618_v43, 16  ;;  %v1191_v26 = vpop.permute.xlu0 %1190  ;;  %v1303_v43 = vshll.u32 %v2619_v6, 16 }
  0xbf   : > { %v1308_v53 = vshrl.u32 %v2620_v41, 16  ;;  %v1311_v63 = vshll.u32 %v2620_v41, 16  ;;  %v1239_v30 = vsel %vm832_vm8, %v1223_v62, %v1191_v26  ;;  %v1193_v10 = vpop.permute.xlu1 %1192  ;;  %v1317_v20 = vshll.u32 %v2621_v29, 16 }
  0xc0   : > { %v1296_v9 = vrot.slane %v1294_v51, 4  ;;  %v1299_v27 = vrot.slane %v1297_v58, 5  ;;  %v2622_v7 = vcombine.low %v1239_v30, %v1239_v30  ;;  %2084 = vrot.lane.b32.xlu0 %v2064_v49, %s3077_s10  ;;  %v2623_v56 = vcombine.high %v1239_v30, %v1239_v30 }
  0xc1   : > { %v1310_v4 = vrot.slane %v1308_v53, 4  ;;  %v1313_v11 = vrot.slane %v1311_v63, 5  ;;  %2086 = vrot.lane.b32.xlu1 %v2071_v57, %s3077_s10  ;;  %v1241_v13 = vsel %vm832_vm8, %v1225_v25, %v1193_v10  ;;  %v1695_v49 = vshrl.u32 %v3505_v50, 16 }
  0xc2   : > { %v1300_v41 = vor.u32 %v1299_v27, %v1296_v9  ;;  %v1322_v62 = vshrl.u32 %v2622_v7, 16  ;;  %v1325_v26 = vshll.u32 %v2622_v7, 16  ;;  %v1083_v28 = vpop.permute.xlu0 %1082  ;;  %v2624_v6 = vcombine.low %v1241_v13, %v1241_v13 }
  0xc3   : > { %v1314_v51 = vor.u32 %v1313_v11, %v1310_v4  ;;  %v2625_v58 = vcombine.high %v1241_v13, %v1241_v13  ;;  %v1085_v40 = vpop.permute.xlu1 %1084  ;;  %v1697_v29 = vshll.u32 %v3505_v50, 16  ;;  %v1711_v57 = vshll.u32 %v3519_v8, 16 }
  0xc4   : > { %v1324_v32 = vrot.slane %v1322_v62, 4  ;;  %v1327_v14 = vrot.slane %v1325_v26, 5  ;;  %1611 = vrot.lane.b32.xlu0 %v3465_v16, %s3075_s29  ;;  %v1305_v53 = vrot.slane %v1303_v43, 5  ;;  %v1319_v63 = vrot.slane %v1317_v20, 5 }
  0xc5   : > { %v1336_v25 = vshrl.u32 %v2624_v6, 16  ;;  %v1339_v10 = vshll.u32 %v2624_v6, 16  ;;  %1613 = vrot.lane.b32.xlu1 %v3469_v17, %s3075_s29  ;;  %v1331_v27 = vshll.u32 %v2623_v56, 16  ;;  %v1301_v7 = vrot.slane %v1300_v41, 4 }
  0xc6   : > { %v1328_v9 = vor.u32 %v1327_v14, %v1324_v32  ;;  %v1087_v16 = vpop.permute.xlu0 %1086  ;;  %v1315_v50 = vrot.slane %v1314_v51, 4  ;;  %v1345_v43 = vshll.u32 %v2625_v58, 16  ;;  %v1211_v20 = vsel %vm790_vm6, %v3491_v61, %v1083_v28 }
  0xc7   : > { %v1338_v4 = vrot.slane %v1336_v25, 4  ;;  %v1341_v11 = vrot.slane %v1339_v10, 5  ;;  %v1089_v62 = vpop.permute.xlu1 %1088  ;;  %v1213_v26 = vsel %vm790_vm6, %v3500_v44, %v1085_v40  ;;  %v1306_v17 = vsel %vm3703_vm12, %v1301_v7, %v1305_v53 }
  0xc8   : > { %1647 = vrot.lane.b32.xlu0 %v2662_v24, %s3076_s30  ;;  %v1320_v14 = vsel %vm3703_vm12, %v1315_v50, %v1319_v63  ;;  %v1699_v32 = vrot.slane %v1697_v29, 1  ;;  %v1329_v56 = vrot.slane %v1328_v9, 4  ;;  %v4058_v61 = vcombine.low %v3485_v36, %v3485_v36 }
  0xc9   : > { %v1342_v41 = vor.u32 %v1341_v11, %v1338_v4  ;;  %v2642_v44 = vcombine.low %v1306_v17, %v1320_v14  ;;  %v1709_v40 = vshrl.u32 %v3519_v8, 16  ;;  %v1333_v13 = vrot.slane %v1331_v27, 5 }
  0xca   : > { %1649 = vrot.lane.b32.xlu1 %v4058_v61, %s3076_s30  ;;  %v1227_v33 = vsel %vm815_vm7, %v1211_v20, %v3615_v18  ;;  %v1195_v24 = vpop.permute.xlu0 %1194  ;;  %v4059_v28 = vshrl.u32 %v3496_v37, 16  ;;  %v4060_v6 = vshll.u32 %v3512_v2, 16  ;;  %v1347_v53 = vrot.slane %v1345_v43, 5 }
  0xcb   : > { %v1343_v29 = vrot.slane %v1342_v41, 4  ;;  %v1243_v36 = vsel %vm832_vm8, %v1227_v33, %v1195_v24  ;;  %2862 = vmatprep.mubr.msk.bf16.mxu1 %vm908_vm11, %v2642_v44  ;;  %v1229_v8 = vsel %vm815_vm7, %v1213_v26, %v3607_v54  ;;  %v1197_v63 = vpop.permute.xlu1 %1196  ;;  %v4061_v37 = vcombine.low %v3487_v38, %v3487_v38 }
  0xcc   : > { %v1693_v51 = vor.u32 %v3682_v52, %v4059_v28  ;;  %v1706_v58 = vrot.slane %v4060_v6, 1  ;;  %v2626_v25 = vcombine.low %v1243_v36, %v1243_v36  ;;  %v1245_v18 = vsel %vm832_vm8, %v1229_v8, %v1197_v63 }
  0xcd   : > { %1651 = vrot.lane.b32.xlu0 %v4061_v37, %s3076_s30  ;;  %v1700_v52 = vor.u32 %v1699_v32, %v1695_v49  ;;  %v1713_v10 = vrot.slane %v1711_v57, 1  ;;  %v1334_v9 = vsel %vm3703_vm12, %v1329_v56, %v1333_v13  ;;  %v1348_v27 = vsel %vm3703_vm12, %v1343_v29, %v1347_v53  ;;  %v2987_v57 = vld [vmem:[%s4022_s3 + $0x68] sm:$0xff]  }
  0xce   : > { %v2628_v7 = vcombine.low %v1245_v18, %v1245_v18  ;;  %v2629_v50 = vcombine.high %v1245_v18, %v1245_v18  ;;  %v4062_v54 = vcombine.low %v3507_v55, %v3507_v55  ;;  %v2627_v4 = vcombine.high %v1243_v36, %v1243_v36  ;;  %v3750_v43 = vpop.permute.xlu0 %638 }
  0xcf   : > { %v1350_v38 = vshrl.u32 %v2626_v25, 16  ;;  %v1353_v11 = vshll.u32 %v2626_v25, 16  ;;  %v2643_v49 = vcombine.low %v1334_v9, %v1348_v27  ;;  %v1215_v20 = vsel %vm790_vm6, %v3527_v22, %v1087_v16  ;;  %v3757_v14 = vpop.permute.xlu1 %640 }
  0xd0   : > { %1653 = vrot.lane.b32.xlu1 %v4062_v54, %s3076_s30  ;;  %v1364_v26 = vshrl.u32 %v2628_v7, 16  ;;  %v1367_v17 = vshll.u32 %v2628_v7, 16  ;;  %v1217_v55 = vsel %vm790_vm6, %v3531_v23, %v1089_v62  ;;  %v4063_v41 = vshrl.u32 %v3512_v2, 16  ;;  %v2988_v2 = vld [vmem:[%s4022_s3 + $0x70] sm:$0xff]  }
  0xd1   : > { %v1352_v32 = vrot.slane %v1350_v38, 4  ;;  %v1355_v56 = vrot.slane %v1353_v11, 5  ;;  %1743 = vrot.lane.b32.xlu0 %v1693_v51, %s3077_s10  ;;  %2863 = vmatmul.mubr.msk.bf16.vlgmr.msra.gmra.mrb[0].mxu1 %vm908_vm11, %v2643_v49  ;;  %v1373_v33 = vshll.u32 %v2629_v50, 16  ;;  %v1714_v22 = vor.u32 %v1713_v10, %v1709_v40 }
  0xd2   : > { %v1707_v61 = vor.u32 %v1706_v58, %v4063_v41  ;;  %v1366_v44 = vrot.slane %v1364_v26, 4  ;;  %v1369_v13 = vrot.slane %v1367_v17, 5  ;;  %2887 = vmatpush3.bf16.msra.mxu1 %v3542_v31  ;;  %v1359_v24 = vshll.u32 %v2627_v4, 16  ;;  %v1199_v62 = vpop.permute.xlu0 %1198 }
  0xd3   : > { %v1356_v16 = vor.u32 %v1355_v56, %v1352_v32  ;;  %v1231_v23 = vsel %vm815_vm7, %v1215_v20, %v3641_v35  ;;  %2888 = vmatprep.subr.bf16.mxu1 %v2987_v57  ;;  %v1233_v6 = vsel %vm815_vm7, %v1217_v55, %v3629_v47  ;;  %v1201_v40 = vpop.permute.xlu1 %1200  ;;  %v1375_v36 = vrot.slane %v1373_v33, 5  ;;  %v2989_v47 = vld [vmem:[%s4022_s3 + $0x78] sm:$0xff]  }
  0xd4   : > { %1745 = vrot.lane.b32.xlu1 %v1700_v52, %s3077_s10  ;;  %v1370_v28 = vor.u32 %v1369_v13, %v1366_v44  ;;  %v1247_v51 = vsel %vm832_vm8, %v1231_v23, %v1199_v62  ;;  %v1249_v35 = vsel %vm832_vm8, %v1233_v6, %v1201_v40  ;;  %v1361_v25 = vrot.slane %v1359_v24, 5 }
  0xd5   : > { %v1357_v58 = vrot.slane %v1356_v16, 4  ;;  %v2630_v31 = vcombine.low %v1247_v51, %v1247_v51  ;;  %v2631_v29 = vcombine.high %v1247_v51, %v1247_v51  ;;  %1747 = vrot.lane.b32.xlu0 %v1707_v61, %s3077_s10  ;;  %v2632_v8 = vcombine.low %v1249_v35, %v1249_v35 }
  0xd6   : > { %v1371_v53 = vrot.slane %v1370_v28, 4  ;;  %v2633_v63 = vcombine.high %v1249_v35, %v1249_v35  ;;  %2889 = vmatpush3.bf16.msra.mxu1 %v2987_v57  ;;  %v3778_v52 = vpop.permute.xlu0 %642  ;;  %v2667_v41 = vcombine.low %v3611_v21, %v3611_v21  ;;  %v1725_v33 = vshll.u32 %v3625_v45, 16 }
  0xd7   : > { %v1378_v37 = vshrl.u32 %v2630_v31, 16  ;;  %v1381_v18 = vshll.u32 %v2630_v31, 16  ;;  %2890 = vmatprep.subr.bf16.mxu1 %v2988_v2  ;;  %v1392_v9 = vshrl.u32 %v2632_v8, 16  ;;  %v1395_v27 = vshll.u32 %v2632_v8, 16  ;;  %v3785_v7 = vpop.permute.xlu1 %644 }
  0xd8   : > { %1749 = vrot.lane.b32.xlu1 %v1714_v22, %s3077_s10  ;;  %v1376_v10 = vsel %vm3703_vm12, %v1371_v53, %v1375_v36  ;;  %v1362_v50 = vsel %vm3703_vm12, %v1357_v58, %v1361_v25  ;;  %v1387_v38 = vshll.u32 %v2631_v29, 16  ;;  %v1401_v57 = vshll.u32 %v2633_v63, 16 }
  0xd9   : > { %v1380_v54 = vrot.slane %v1378_v37, 4  ;;  %v1383_v4 = vrot.slane %v1381_v18, 5  ;;  %1615 = vrot.lane.b32.xlu0 %v3574_v5, %s3075_s29  ;;  %v1394_v11 = vrot.slane %v1392_v9, 4  ;;  %v1397_v49 = vrot.slane %v1395_v27, 5  ;;  %v2991_v27 = vld [vmem:[%s4022_s3 + $0x48] sm:$0xff]  }
  0xda   : > { %v2644_v20 = vcombine.low %v1362_v50, %v1376_v10  ;;  %2891 = vmatpush3.bf16.msra.mxu1 %v2988_v2  ;;  %v679_v17 = vpop.permute.xlu0 %678  ;;  %v2666_v5 = vcombine.low %v3609_v42, %v3609_v42  ;;  %v1389_v61 = vrot.slane %v1387_v38, 5  ;;  %v1403_v13 = vrot.slane %v1401_v57, 5 }
  0xdb   : > { %v1384_v26 = vor.u32 %v1383_v4, %v1380_v54  ;;  %2892 = vmatprep.subr.bf16.mxu1 %v2989_v47  ;;  %v1398_v55 = vor.u32 %v1397_v49, %v1394_v11  ;;  %v681_v32 = vpop.permute.xlu1 %680  ;;  %v2668_v21 = vcombine.low %v3622_v46, %v3622_v46  ;;  %v1716_v23 = vshrl.u32 %v3618_v0, 16  ;;  %v2992_v54 = vld [vmem:[%s4022_s3 + $0x50] sm:$0xff]   ;;  %v2993_v11 = vld [vmem:[%s4022_s3 + $0x58] sm:$0xff]  }
  0xdc   : > { %1617 = vrot.lane.b32.xlu1 %v3580_v12, %s3075_s29  ;;  %2866 = vmatprep.mubr.msk.bf16.mxu1 %vm908_vm11, %v2644_v20  ;;  %v1718_v12 = vshll.u32 %v3618_v0, 16  ;;  %v1732_v62 = vshll.u32 %v3634_v60, 16  ;;  %v2669_v2 = vcombine.low %v3627_v34, %v3627_v34  ;;  %v1723_v28 = vshrl.u32 %v3625_v45, 16 }
  0xdd   : > { %v1385_v56 = vrot.slane %v1384_v26, 4  ;;  %1619 = vrot.lane.b32.xlu0 %v3585_v15, %s3075_s29  ;;  %v1399_v44 = vrot.slane %v1398_v55, 4  ;;  %v1727_v51 = vrot.slane %v1725_v33, 1  ;;  %v1739_v6 = vshll.u32 %v3639_v19, 16  ;;  %v4065_v26 = vld [vmem:[#allocation4_spill] sm:$0xff]  ;;  %v4066_v55 = vld [vmem:[#allocation3_spill] sm:$0xff] }
  0xde   : > { %2893 = vmatpush3.bf16.msra.mxu1 %v2989_v47  ;;  %v683_v22 = vpop.permute.xlu0 %682  ;;  %v793_v46 = vsel %vm790_vm6, %v3349_v1, %v3750_v43  ;;  %v796_v0 = vsel %vm790_vm6, %v3353_v48, %v3757_v14  ;;  %v1730_v45 = vshrl.u32 %v3634_v60, 16  ;;  %v1734_v35 = vrot.slane %v1732_v62, 1  ;;  %v4064_v60 = vld [vmem:[#allocation11_spill] sm:$0xff] }
  0xdf   : > { %v1390_v15 = vsel %vm3703_vm12, %v1385_v56, %v1389_v61  ;;  %v1404_v42 = vsel %vm3703_vm12, %v1399_v44, %v1403_v13  ;;  %v685_v16 = vpop.permute.xlu1 %684  ;;  %v817_v58 = vsel %vm815_vm7, %v793_v46, %v679_v17  ;;  %v819_v34 = vsel %vm815_vm7, %v796_v0, %v681_v32 }
  0xe0   : > { %1621 = vrot.lane.b32.xlu1 %v3591_v3, %s3075_s29  ;;  %v2645_v24 = vcombine.low %v1390_v15, %v1404_v42  ;;  %v1720_v3 = vrot.slane %v1718_v12, 1  ;;  %v1728_v14 = vor.u32 %v1727_v51, %v1723_v28  ;;  %v1737_v53 = vshrl.u32 %v3639_v19, 16  ;;  %v4067_v28 = vld [vmem:[#allocation6_spill] sm:$0xff] }
  0xe1   : > { %1655 = vrot.lane.b32.xlu0 %v2666_v5, %s3076_s30  ;;  %v1741_v36 = vrot.slane %v1739_v6, 1  ;;  %v799_v8 = vsel %vm790_vm6, %v3384_v39, %v3778_v52  ;;  %v802_v63 = vsel %vm790_vm6, %v4064_v60, %v3785_v7  ;;  %v1735_v9 = vor.u32 %v1734_v35, %v1730_v45 }
  0xe2   : > { %v775_v40 = vpop.permute.xlu0 %774  ;;  %2867 = vmatmul.mubr.msk.bf16.gmra.mrb[4].mxu1 %vm908_vm11, %v2645_v24  ;;  %v1721_v43 = vor.u32 %v1720_v3, %v1716_v23  ;;  %v821_v37 = vsel %vm815_vm7, %v799_v8, %v683_v22  ;;  %v823_v18 = vsel %vm815_vm7, %v802_v63, %v685_v16 }
  0xe3   : > { %v777_v31 = vpop.permute.xlu1 %776  ;;  %v834_v29 = vsel %vm832_vm8, %v817_v58, %v775_v40  ;;  %v1742_v52 = vor.u32 %v1741_v36, %v1737_v53  ;;  %v4068_v40 = vld [vmem:[#allocation5_spill] sm:$0xff] }
  0xe4   : > { %1657 = vrot.lane.b32.xlu1 %v2667_v41, %s3076_s30  ;;  %v836_v1 = vsel %vm832_vm8, %v819_v34, %v777_v31 }
  0xe5   : > { %1659 = vrot.lane.b32.xlu0 %v2668_v21, %s3076_s30  ;;  %v2590_v48 = vcombine.low %v834_v29, %v836_v1 }
  0xe6   : > { %v779_v25 = vpop.permute.xlu0 %778 }
  0xe7   : > { %2846 = vmatprep.mubr.msk.bf16.mxu0 %vm908_vm11, %v2590_v48  ;;  %v781_v47 = vpop.permute.xlu1 %780  ;;  %v838_v10 = vsel %vm832_vm8, %v821_v37, %v779_v25 }
  0xe8   : > { %1661 = vrot.lane.b32.xlu1 %v2669_v2, %s3076_s30  ;;  %v840_v19 = vsel %vm832_vm8, %v823_v18, %v781_v47 }
  0xe9   : > { %1751 = vrot.lane.b32.xlu0 %v1721_v43, %s3077_s10  ;;  %v2591_v39 = vcombine.low %v838_v10, %v840_v19 }
  0xea   : > { %v1961_v7 = vpop.permute.xlu0 %1960 }
  0xeb   : > { %2847 = vmatmul.mubr.msk.bf16.vlgmr.msra.gmra.mrb[0].mxu0 %vm908_vm11, %v2591_v39  ;;  %v1963_v50 = vpop.permute.xlu1 %1962  ;;  %v2089_v17 = vsel %vm790_vm6, %v4065_v26, %v1961_v7 }
  0xec   : > { %1753 = vrot.lane.b32.xlu1 %v1728_v14, %s3077_s10  ;;  %2871 = vmatpush3.bf16.msra.mxu0 %v3687_v59  ;;  %v2091_v32 = vsel %vm790_vm6, %v4066_v55, %v1963_v50 }
  0xed   : > { %1755 = vrot.lane.b32.xlu0 %v1735_v9, %s3077_s10  ;;  %2872 = vmatprep.subr.bf16.mxu0 %v2991_v27 }
  0xee   : > { %v1965_v4 = vpop.permute.xlu0 %1964 }
  0xef   : > { %v1967_v38 = vpop.permute.xlu1 %1966  ;;  %v2093_v51 = vsel %vm790_vm6, %v4067_v28, %v1965_v4 }
  0xf0   : > { %1757 = vrot.lane.b32.xlu1 %v1742_v52, %s3077_s10  ;;  %2873 = vmatpush3.bf16.msra.mxu0 %v2991_v27  ;;  %v2095_v58 = vsel %vm790_vm6, %v4068_v40, %v1967_v38 }
  0xf1   : > { %2874 = vmatprep.subr.bf16.mxu0 %v2992_v54 }
  0xf2   : > { %v1977_v49 = vpop.permute.xlu0 %1976 }
  0xf3   : > { %v1979_v57 = vpop.permute.xlu1 %1978  ;;  %v2105_v56 = vsel %vm815_vm7, %v2089_v17, %v1977_v49 }
  0xf4   : > { %2875 = vmatpush3.bf16.msra.mxu0 %v2992_v54  ;;  %v2107_v41 = vsel %vm815_vm7, %v2091_v32, %v1979_v57 }
  0xf5   : > { %2876 = vmatprep.subr.bf16.mxu0 %v2993_v11 }
  0xf6   : > { %v1981_v59 = vpop.permute.xlu0 %1980 }
  0xf7   : > { %v1983_v20 = vpop.permute.xlu1 %1982  ;;  %v2109_v34 = vsel %vm815_vm7, %v2093_v51, %v1981_v59 }
  0xf8   : > { %2877 = vmatpush3.bf16.msra.mxu0 %v2993_v11  ;;  %v2111_v1 = vsel %vm815_vm7, %v2095_v58, %v1983_v20 }
  0xfa   : > { %v2073_v5 = vpop.permute.xlu0 %2072 }
  0xfb   : > { %v2121_v12 = vsel %vm832_vm8, %v2105_v56, %v2073_v5  ;;  %v2075_v61 = vpop.permute.xlu1 %2074 }
  0xfc   : > { %v2707_v44 = vcombine.low %v2121_v12, %v2121_v12  ;;  %v2123_v13 = vsel %vm832_vm8, %v2107_v41, %v2075_v61  ;;  %v2708_v15 = vcombine.high %v2121_v12, %v2121_v12 }
  0xfd   : > { %v2709_v33 = vcombine.low %v2123_v13, %v2123_v13  ;;  %v2710_v22 = vcombine.high %v2123_v13, %v2123_v13 }
  0xfe   : > { %v2177_v42 = vshrl.u32 %v2707_v44, 16  ;;  %v2180_v16 = vshll.u32 %v2707_v44, 16  ;;  %v647_v21 = vpop.permute.xlu0 %646  ;;  %v2186_v45 = vshll.u32 %v2708_v15, 16  ;;  %v4070_v15 = vld [vmem:[#allocation13_spill] sm:$0xff] }
  0xff   : > { %v2191_v24 = vshrl.u32 %v2709_v33, 16  ;;  %v2194_v23 = vshll.u32 %v2709_v33, 16  ;;  %v649_v3 = vpop.permute.xlu1 %648  ;;  %v2200_v0 = vshll.u32 %v2710_v22, 16  ;;  %v4069_v33 = vld [vmem:[#allocation12_spill] sm:$0xff] }
 0x100   : > { %v2179_v62 = vrot.slane %v2177_v42, 4  ;;  %v2182_v2 = vrot.slane %v2180_v16, 5  ;;  %v2188_v18 = vrot.slane %v2186_v45, 5  ;;  %v805_v22 = vsel %vm790_vm6, %v4069_v33, %v647_v21  ;;  %v4072_v21 = vld [vmem:[#allocation15_spill] sm:$0xff] }
 0x101   : > { %v2193_v6 = vrot.slane %v2191_v24, 4  ;;  %v2196_v46 = vrot.slane %v2194_v23, 5  ;;  %v2202_v63 = vrot.slane %v2200_v0, 5  ;;  %v808_v42 = vsel %vm790_vm6, %v4070_v15, %v649_v3 }
 0x102   : > { %v2183_v31 = vor.u32 %v2182_v2, %v2179_v62  ;;  %v2077_v29 = vpop.permute.xlu0 %2076 }
 0x103   : > { %v2197_v43 = vor.u32 %v2196_v46, %v2193_v6  ;;  %v2125_v35 = vsel %vm832_vm8, %v2109_v34, %v2077_v29  ;;  %v2079_v48 = vpop.permute.xlu1 %2078  ;;  %v4071_v6 = vld [vmem:[#allocation14_spill] sm:$0xff] }
 0x104   : > { %v2184_v14 = vrot.slane %v2183_v31, 4  ;;  %v2711_v53 = vcombine.low %v2125_v35, %v2125_v35  ;;  %v2712_v36 = vcombine.high %v2125_v35, %v2125_v35  ;;  %v2127_v8 = vsel %vm832_vm8, %v2111_v1, %v2079_v48 }
 0x105   : > { %v2198_v60 = vrot.slane %v2197_v43, 4  ;;  %v2713_v25 = vcombine.low %v2127_v8, %v2127_v8  ;;  %v2714_v37 = vcombine.high %v2127_v8, %v2127_v8 }
 0x106   : > { %v2205_v47 = vshrl.u32 %v2711_v53, 16  ;;  %v2208_v10 = vshll.u32 %v2711_v53, 16  ;;  %v651_v19 = vpop.permute.xlu0 %650  ;;  %v2189_v7 = vsel %vm3703_vm12, %v2184_v14, %v2188_v18  ;;  %v2214_v4 = vshll.u32 %v2712_v36, 16 }
 0x107   : > { %v2203_v9 = vsel %vm3703_vm12, %v2198_v60, %v2202_v63  ;;  %v2219_v39 = vshrl.u32 %v2713_v25, 16  ;;  %v2222_v52 = vshll.u32 %v2713_v25, 16  ;;  %v653_v27 = vpop.permute.xlu1 %652  ;;  %v2228_v49 = vshll.u32 %v2714_v37, 16  ;;  %v4073_v60 = vld [vmem:[#allocation8_spill] sm:$0xff]  ;;  %v4074_v25 = vld [vmem:[#allocation7_spill] sm:$0xff] }
 0x108   : > { %v2207_v50 = vrot.slane %v2205_v47, 4  ;;  %v2210_v54 = vrot.slane %v2208_v10, 5  ;;  %v2731_v57 = vcombine.low %v2189_v7, %v2203_v9  ;;  %v2216_v32 = vrot.slane %v2214_v4, 5 }
 0x109   : > { %v2221_v38 = vrot.slane %v2219_v39, 4  ;;  %v2224_v11 = vrot.slane %v2222_v52, 5  ;;  %v2230_v5 = vrot.slane %v2228_v49, 5  ;;  %v811_v46 = vsel %vm790_vm6, %v4071_v6, %v651_v19 }
 0x10a   : > { %v2211_v59 = vor.u32 %v2210_v54, %v2207_v50  ;;  %v687_v20 = vpop.permute.xlu0 %686  ;;  %2894 = vmatprep.mubr.msk.bf16.mxu1 %vm908_vm11, %v2731_v57  ;;  %v814_v0 = vsel %vm790_vm6, %v4072_v21, %v653_v27 }
 0x10b   : > { %v2225_v26 = vor.u32 %v2224_v11, %v2221_v38  ;;  %v689_v17 = vpop.permute.xlu1 %688  ;;  %v825_v24 = vsel %vm815_vm7, %v805_v22, %v687_v20 }
 0x10c   : > { %v2212_v55 = vrot.slane %v2211_v59, 4  ;;  %v827_v23 = vsel %vm815_vm7, %v808_v42, %v689_v17 }
 0x10d   : > { %v2226_v56 = vrot.slane %v2225_v26, 4  ;;  %v4075_v26 = vld [vmem:[#allocation10_spill] sm:$0xff] }
 0x10e   : > { %v691_v41 = vpop.permute.xlu0 %690  ;;  %v2217_v12 = vsel %vm3703_vm12, %v2212_v55, %v2216_v32 }
 0x10f   : > { %v2231_v61 = vsel %vm3703_vm12, %v2226_v56, %v2230_v5  ;;  %v693_v44 = vpop.permute.xlu1 %692  ;;  %v829_v40 = vsel %vm815_vm7, %v811_v46, %v691_v41  ;;  %v4076_v5 = vld [vmem:[#allocation9_spill] sm:$0xff] }
 0x110   : > { %v2732_v13 = vcombine.low %v2217_v12, %v2231_v61  ;;  %v831_v58 = vsel %vm815_vm7, %v814_v0, %v693_v44 }
 0x112   : > { %v783_v16 = vpop.permute.xlu0 %782  ;;  %2895 = vmatmul.mubr.msk.bf16.vlgmr.msra.gmra.mrb[8].mxu1 %vm908_vm11, %v2732_v13 }
 0x113   : > { %v785_v62 = vpop.permute.xlu1 %784  ;;  %v842_v2 = vsel %vm832_vm8, %v825_v24, %v783_v16 }
 0x114   : > { %v844_v28 = vsel %vm832_vm8, %v827_v23, %v785_v62 }
 0x115   : > { %v2592_v51 = vcombine.low %v842_v2, %v844_v28 }
 0x116   : > { %v787_v3 = vpop.permute.xlu0 %786 }
 0x117   : > { %2850 = vmatprep.mubr.msk.bf16.mxu0 %vm908_vm11, %v2592_v51  ;;  %v789_v34 = vpop.permute.xlu1 %788  ;;  %v846_v31 = vsel %vm832_vm8, %v829_v40, %v787_v3 }
 0x118   : > { %v848_v45 = vsel %vm832_vm8, %v831_v58, %v789_v34 }
 0x119   : > { %v2593_v29 = vcombine.low %v846_v31, %v848_v45 }
 0x11a   : > { %v1969_v1 = vpop.permute.xlu0 %1968 }
 0x11b   : > { %2851 = vmatmul.mubr.msk.bf16.gmra.mrb[4].mxu0 %vm908_vm11, %v2593_v29  ;;  %v1971_v43 = vpop.permute.xlu1 %1970  ;;  %v2097_v63 = vsel %vm790_vm6, %v4073_v60, %v1969_v1 }
 0x11c   : > { %v2099_v37 = vsel %vm790_vm6, %v4074_v25, %v1971_v43 }
 0x11e   : > { %v1973_v35 = vpop.permute.xlu0 %1972 }
 0x11f   : > { %v1975_v48 = vpop.permute.xlu1 %1974  ;;  %v2101_v17 = vsel %vm790_vm6, %v4075_v26, %v1973_v35 }
 0x120   : > { %v2103_v41 = vsel %vm790_vm6, %v4076_v5, %v1975_v48 }
 0x122   : > { %v1985_v14 = vpop.permute.xlu0 %1984 }
 0x123   : > { %v1987_v53 = vpop.permute.xlu1 %1986  ;;  %v2113_v18 = vsel %vm815_vm7, %v2097_v63, %v1985_v14 }
 0x124   : > { %v2115_v10 = vsel %vm815_vm7, %v2099_v37, %v1987_v53 }
 0x126   : > { %v1989_v36 = vpop.permute.xlu0 %1988 }
 0x127   : > { %v1991_v8 = vpop.permute.xlu1 %1990  ;;  %v2117_v12 = vsel %vm815_vm7, %v2101_v17, %v1989_v36  ;;  %v3060_v17 = vld [vmem:[#allocation2 + $0x18] sm:$0xf] }
 0x128   : > { %v2119_v33 = vsel %vm815_vm7, %v2103_v41, %v1991_v8 }
 0x12a   : > { %v2081_v47 = vpop.permute.xlu0 %2080 }
 0x12b   : > { %v2129_v19 = vsel %vm832_vm8, %v2113_v18, %v2081_v47  ;;  %v2083_v9 = vpop.permute.xlu1 %2082 }
 0x12c   : > { %v2715_v39 = vcombine.low %v2129_v19, %v2129_v19  ;;  %v2131_v52 = vsel %vm832_vm8, %v2115_v10, %v2083_v9  ;;  %v2716_v50 = vcombine.high %v2129_v19, %v2129_v19 }
 0x12d   : > { %v2717_v27 = vcombine.low %v2131_v52, %v2131_v52  ;;  %v2718_v7 = vcombine.high %v2131_v52, %v2131_v52 }
 0x12e   : > { %v2233_v54 = vshrl.u32 %v2715_v39, 16  ;;  %v2236_v4 = vshll.u32 %v2715_v39, 16  ;;  %v1608_v38 = vpop.permute.xlu0 %1607  ;;  %v2242_v44 = vshll.u32 %v2716_v50, 16  ;;  %v3059_v50 = vld [vmem:[#allocation2 + $0x10] sm:$0xf] }
 0x12f   : > { %v2247_v11 = vshrl.u32 %v2717_v27, 16  ;;  %v2250_v49 = vshll.u32 %v2717_v27, 16  ;;  %v1610_v57 = vpop.permute.xlu1 %1609  ;;  %v2256_v56 = vshll.u32 %v2718_v7, 16  ;;  %v3058_v27 = vld [vmem:[#allocation2 + $0x8] sm:$0xf] }
 0x130   : > { %v2235_v59 = vrot.slane %v2233_v54, 4  ;;  %v2238_v20 = vrot.slane %v2236_v4, 5  ;;  %v2244_v46 = vrot.slane %v2242_v44, 5  ;;  %v1761_v7 = vsel %vm790_vm6, %v3058_v27, %v1608_v38  ;;  %v3061_v38 = vld [vmem:[#allocation2 + $0x20] sm:$0xf] }
 0x131   : > { %v2249_v55 = vrot.slane %v2247_v11, 4  ;;  %v2252_v32 = vrot.slane %v2250_v49, 5  ;;  %v2258_v28 = vrot.slane %v2256_v56, 5  ;;  %v1764_v54 = vsel %vm790_vm6, %v3059_v50, %v1610_v57 }
 0x132   : > { %v2239_v61 = vor.u32 %v2238_v20, %v2235_v59  ;;  %v2085_v13 = vpop.permute.xlu0 %2084 }
 0x133   : > { %v2253_v22 = vor.u32 %v2252_v32, %v2249_v55  ;;  %v2133_v15 = vsel %vm832_vm8, %v2117_v12, %v2085_v13  ;;  %v2087_v42 = vpop.permute.xlu1 %2086 }
 0x134   : > { %v2240_v16 = vrot.slane %v2239_v61, 4  ;;  %v2719_v24 = vcombine.low %v2133_v15, %v2133_v15  ;;  %v2720_v23 = vcombine.high %v2133_v15, %v2133_v15  ;;  %v2135_v62 = vsel %vm832_vm8, %v2119_v33, %v2087_v42 }
 0x135   : > { %v2254_v2 = vrot.slane %v2253_v22, 4  ;;  %v2721_v51 = vcombine.low %v2135_v62, %v2135_v62  ;;  %v2722_v6 = vcombine.high %v2135_v62, %v2135_v62  ;;  %v3062_v62 = vld [vmem:[#allocation2 + $0x28] sm:$0xf] }
 0x136   : > { %v2261_v21 = vshrl.u32 %v2719_v24, 16  ;;  %v2264_v0 = vshll.u32 %v2719_v24, 16  ;;  %v1612_v3 = vpop.permute.xlu0 %1611  ;;  %v2245_v45 = vsel %vm3703_vm12, %v2240_v16, %v2244_v46  ;;  %v2270_v43 = vshll.u32 %v2720_v23, 16 }
 0x137   : > { %v2259_v40 = vsel %vm3703_vm12, %v2254_v2, %v2258_v28  ;;  %v2275_v58 = vshrl.u32 %v2721_v51, 16  ;;  %v2278_v34 = vshll.u32 %v2721_v51, 16  ;;  %v1614_v31 = vpop.permute.xlu1 %1613  ;;  %v2284_v14 = vshll.u32 %v2722_v6, 16  ;;  %v3063_v28 = vld [vmem:[#allocation2 + $0x30] sm:$0xf] }
 0x138   : > { %v2263_v29 = vrot.slane %v2261_v21, 4  ;;  %v2266_v1 = vrot.slane %v2264_v0, 5  ;;  %v2733_v53 = vcombine.low %v2245_v45, %v2259_v40  ;;  %v2272_v37 = vrot.slane %v2270_v43, 5  ;;  %v3065_v45 = vld [vmem:[#allocation2 + $0x40] sm:$0xf] }
 0x139   : > { %v2277_v35 = vrot.slane %v2275_v58, 4  ;;  %v2280_v48 = vrot.slane %v2278_v34, 5  ;;  %v2286_v47 = vrot.slane %v2284_v14, 5  ;;  %v1767_v55 = vsel %vm790_vm6, %v3060_v17, %v1612_v3  ;;  %v3064_v34 = vld [vmem:[#allocation2 + $0x38] sm:$0xf] }
 0x13a   : > { %v2267_v36 = vor.u32 %v2266_v1, %v2263_v29  ;;  %v1648_v8 = vpop.permute.xlu0 %1647  ;;  %2898 = vmatprep.mubr.msk.bf16.mxu1 %vm908_vm11, %v2733_v53  ;;  %v1770_v32 = vsel %vm790_vm6, %v3061_v38, %v1614_v31 }
 0x13b   : > { %v2281_v60 = vor.u32 %v2280_v48, %v2277_v35  ;;  %v1784_v11 = vsel %vm815_vm7, %v1761_v7, %v1648_v8 }
 0x13c   : > { %v1650_v63 = vpop.permute.xlu1 %1649  ;;  %v2268_v25 = vrot.slane %v2267_v36, 4 }
 0x13d   : > { %v2282_v18 = vrot.slane %v2281_v60, 4  ;;  %v1786_v49 = vsel %vm815_vm7, %v1764_v54, %v1650_v63 }
 0x13e   : > { %v2273_v19 = vsel %vm3703_vm12, %v2268_v25, %v2272_v37 }
 0x13f   : > { %v1652_v10 = vpop.permute.xlu0 %1651  ;;  %v2287_v9 = vsel %vm3703_vm12, %v2282_v18, %v2286_v47  ;;  %v3960_v18 = vld [vmem:[%s4023_s4] ss:$0 sm:$0xff] }
 0x140   : > { %v2734_v52 = vcombine.low %v2273_v19, %v2287_v9  ;;  %v1788_v56 = vsel %vm815_vm7, %v1767_v55, %v1652_v10 }
 0x142   : > { %v1654_v39 = vpop.permute.xlu1 %1653  ;;  %2899 = vmatmul.mubr.msk.bf16.gmra.mrb[12].mxu1 %vm908_vm11, %v2734_v52 }
 0x143   : > { %v1744_v4 = vpop.permute.xlu0 %1743  ;;  %v1790_v5 = vsel %vm815_vm7, %v1770_v32, %v1654_v39 }
 0x144   : > { %v1800_v20 = vsel %vm832_vm8, %v1784_v11, %v1744_v4 }
 0x146   : > { %v1746_v59 = vpop.permute.xlu1 %1745 }
 0x147   : > { %v1802_v30 = vsel %vm832_vm8, %v1786_v49, %v1746_v59  ;;  %v1748_v57 = vpop.permute.xlu0 %1747 }
 0x148   : > { %v2687_v26 = vcombine.low %v1800_v20, %v1802_v30  ;;  %v1804_v12 = vsel %vm832_vm8, %v1788_v56, %v1748_v57 }
 0x14a   : > { %2878 = vmatprep.mubr.msk.bf16.mxu0 %vm908_vm11, %v2687_v26  ;;  %v1750_v41 = vpop.permute.xlu1 %1749 }
 0x14b   : > { %v1806_v61 = vsel %vm832_vm8, %v1790_v5, %v1750_v41  ;;  %v1616_v13 = vpop.permute.xlu0 %1615 }
 0x14c   : > { %v2688_v44 = vcombine.low %v1804_v12, %v1806_v61  ;;  %v1773_v2 = vsel %vm790_vm6, %v3062_v62, %v1616_v13 }
 0x14e   : > { %2879 = vmatmul.mubr.msk.bf16.vlgmr.msra.gmra.mrb[8].mxu0 %vm908_vm11, %v2688_v44  ;;  %v1618_v33 = vpop.permute.xlu1 %1617 }
 0x14f   : > { %v1620_v22 = vpop.permute.xlu0 %1619  ;;  %v1776_v51 = vsel %vm790_vm6, %v3063_v28, %v1618_v33 }
 0x150   : > { %v1779_v31 = vsel %vm790_vm6, %v3064_v34, %v1620_v22 }
 0x152   : > { %v1622_v15 = vpop.permute.xlu1 %1621 }
 0x153   : > { %v1656_v42 = vpop.permute.xlu0 %1655  ;;  %v1782_v29 = vsel %vm790_vm6, %v3065_v45, %v1622_v15 }
 0x154   : > { %v1792_v46 = vsel %vm815_vm7, %v1773_v2, %v1656_v42 }
 0x156   : > { %v1658_v16 = vpop.permute.xlu1 %1657 }
 0x157   : > { %v1660_v24 = vpop.permute.xlu0 %1659  ;;  %v1794_v21 = vsel %vm815_vm7, %v1776_v51, %v1658_v16 }
 0x158   : > { %v1796_v43 = vsel %vm815_vm7, %v1779_v31, %v1660_v24 }
 0x15a   : > { %v1662_v23 = vpop.permute.xlu1 %1661 }
 0x15b   : > { %v1752_v6 = vpop.permute.xlu0 %1751  ;;  %v1798_v35 = vsel %vm815_vm7, %v1782_v29, %v1662_v23 }
 0x15c   : > { %v1808_v3 = vsel %vm832_vm8, %v1792_v46, %v1752_v6 }
 0x15e   : > { %v1754_v0 = vpop.permute.xlu1 %1753 }
 0x15f   : > { %v1810_v40 = vsel %vm832_vm8, %v1794_v21, %v1754_v0  ;;  %v1756_v1 = vpop.permute.xlu0 %1755 }
 0x160   : > { %v2689_v58 = vcombine.low %v1808_v3, %v1810_v40  ;;  %v1812_v14 = vsel %vm832_vm8, %v1796_v43, %v1756_v1 }
 0x162   : > { %2882 = vmatprep.mubr.msk.bf16.mxu0 %vm908_vm11, %v2689_v58  ;;  %v1758_v48 = vpop.permute.xlu1 %1757 }
 0x163   : > { %v1814_v53 = vsel %vm832_vm8, %v1798_v35, %v1758_v48 }
 0x164   : > { %v2690_v36 = vcombine.low %v1812_v14, %v1814_v53 }
 0x166   : > { %2883 = vmatmul.mubr.msk.bf16.gmra.mrb[12].mxu0 %vm908_vm11, %v2690_v36 }
 0x1a4   : > { %v2864_v8 = vpop.f32.mrb[0].mxu1 }
 0x1a5   : > { %v1496_v60 = vpop.f32.mrb[1].mxu1  ;;  %v1505_v9 = vadd.f32 %v2864_v8, %v3960_v18 }
 0x1a6   : > { %v2865_v63 = vpop.f32.mrb[2].mxu1  ;;  %v1497_v39 = vadd.f32 %v3960_v18, %v1496_v60 }
 0x1a7   : > { %v1499_v25 = vpop.f32.mrb[3].mxu1  ;;  %v1508_v52 = vadd.f32 %v2865_v63, %v3960_v18  ;;  %2994 = vtanh.f32 %v1505_v9 }
 0x1a8   : > { %v1500_v27 = vadd.f32 %v3960_v18, %v1499_v25  ;;  %2996 = vtanh.f32 %v1497_v39 }
 0x1a9   : > { %2998 = vtanh.f32 %v1508_v52 }
 0x1aa   : > { %3000 = vtanh.f32 %v1500_v27 }
 0x1b1   : > { %v2995_v30 = vpop.eup %2994 }
 0x1b2   : > { %v2997_v26 = vpop.eup %2996 }
 0x1b3   : > { %v2999_v17 = vpop.eup %2998 }
 0x1b4   : > { %v3001_v55 = vpop.eup %3000 }
 0x1b5   : > { %v2868_v37 = vpop.f32.mrb[4].mxu1 }
 0x1b6   : > { %v1512_v47 = vpop.f32.mrb[5].mxu1  ;;  %v1521_v15 = vadd.f32 %v2868_v37, %v3960_v18 }
 0x1b7   : > { %v2869_v10 = vpop.f32.mrb[6].mxu1  ;;  %v1513_v42 = vadd.f32 %v3960_v18, %v1512_v47 }
 0x1b8   : > { %v1515_v19 = vpop.f32.mrb[7].mxu1  ;;  %v1524_v16 = vadd.f32 %v2869_v10, %v3960_v18 }
 0x1b9   : > { %v1516_v24 = vadd.f32 %v3960_v18, %v1515_v19 }
 0x1be   : > { %v2848_v7 = vpop.f32.mrb[0].mxu0 }
 0x1bf   : > { %v964_v50 = vadd.f32 %v2848_v7, %v3960_v18  ;;  %v955_v54 = vpop.f32.mrb[1].mxu0 }
 0x1c0   : > { %v956_v4 = vadd.f32 %v3960_v18, %v955_v54  ;;  %v2849_v11 = vpop.f32.mrb[2].mxu0 }
 0x1c1   : > { %3002 = vtanh.f32 %v964_v50  ;;  %v967_v49 = vadd.f32 %v2849_v11, %v3960_v18  ;;  %v958_v59 = vpop.f32.mrb[3].mxu0 }
 0x1c2   : > { %3004 = vtanh.f32 %v956_v4  ;;  %v959_v20 = vadd.f32 %v3960_v18, %v958_v59 }
 0x1c3   : > { %3006 = vtanh.f32 %v967_v49 }
 0x1c4   : > { %3008 = vtanh.f32 %v959_v20 }
 0x1c5   : > { %3010 = vtanh.f32 %v1521_v15 }
 0x1c6   : > { %3012 = vtanh.f32 %v1513_v42 }
 0x1c7   : > { %3014 = vtanh.f32 %v1524_v16 }
 0x1c8   : > { %3016 = vtanh.f32 %v1516_v24 }
 0x1cb   : > { %v3003_v38 = vpop.eup %3002 }
 0x1cc   : > { %v3005_v32 = vpop.eup %3004  ;;  %v2773_v57 = vpack.c.bf16 %v2995_v30, %v3003_v38 }
 0x1cd   : > { %v3007_v56 = vpop.eup %3006  ;;  %v2771_v5 = vpack.c.bf16 %v2997_v26, %v3005_v32 }
 0x1ce   : > { %v3009_v41 = vpop.eup %3008  ;;  %1601 = vst [vmem:[%s3974_s23 + $0x20] sm:$0xff] %v2773_v57  ;;  %v2774_v12 = vpack.c.bf16 %v2999_v17, %v3007_v56 }
 0x1cf   : > { %1599 = vst [vmem:[%s3974_s23] sm:$0xff] %v2771_v5  ;;  %v2772_v61 = vpack.c.bf16 %v3001_v55, %v3009_v41  ;;  %v3011_v0 = vpop.eup %3010 }
 0x1d0   : > { %1602 = vst [vmem:[%s3974_s23 + $0x30] sm:$0xff] %v2774_v12  ;;  %v3013_v3 = vpop.eup %3012 }
 0x1d1   : > { %1600 = vst [vmem:[%s3974_s23 + $0x10] sm:$0xff] %v2772_v61  ;;  %v3015_v40 = vpop.eup %3014 }
 0x1d2   : > { %v3017_v58 = vpop.eup %3016 }
 0x1e5   : > { %v2896_v44 = vpop.f32.mrb[8].mxu1 }
 0x1e6   : > { %v2379_v13 = vpop.f32.mrb[9].mxu1  ;;  %v2388_v60 = vadd.f32 %v2896_v44, %v3960_v18 }
 0x1e7   : > { %v2897_v33 = vpop.f32.mrb[10].mxu1  ;;  %v2380_v63 = vadd.f32 %v3960_v18, %v2379_v13 }
 0x1e8   : > { %v2382_v22 = vpop.f32.mrb[11].mxu1  ;;  %v2391_v25 = vadd.f32 %v2897_v33, %v3960_v18 }
 0x1e9   : > { %v2383_v37 = vadd.f32 %v3960_v18, %v2382_v22 }
 0x1ee   : > { %v2852_v23 = vpop.f32.mrb[4].mxu0 }
 0x1ef   : > { %v980_v62 = vadd.f32 %v2852_v23, %v3960_v18  ;;  %v971_v2 = vpop.f32.mrb[5].mxu0 }
 0x1f0   : > { %v972_v28 = vadd.f32 %v3960_v18, %v971_v2  ;;  %v2853_v51 = vpop.f32.mrb[6].mxu0 }
 0x1f1   : > { %3018 = vtanh.f32 %v980_v62  ;;  %v983_v6 = vadd.f32 %v2853_v51, %v3960_v18  ;;  %v974_v46 = vpop.f32.mrb[7].mxu0 }
 0x1f2   : > { %3020 = vtanh.f32 %v972_v28  ;;  %v975_v21 = vadd.f32 %v3960_v18, %v974_v46 }
 0x1f3   : > { %3022 = vtanh.f32 %v983_v6 }
 0x1f4   : > { %3024 = vtanh.f32 %v975_v21 }
 0x1f5   : > { %3026 = vtanh.f32 %v2388_v60 }
 0x1f6   : > { %3028 = vtanh.f32 %v2380_v63 }
 0x1f7   : > { %3030 = vtanh.f32 %v2391_v25 }
 0x1f8   : > { %3032 = vtanh.f32 %v2383_v37 }
 0x1fb   : > { %v3019_v34 = vpop.eup %3018 }
 0x1fc   : > { %v3021_v31 = vpop.eup %3020  ;;  %v2777_v45 = vpack.c.bf16 %v3011_v0, %v3019_v34 }
 0x1fd   : > { %v3023_v29 = vpop.eup %3022  ;;  %v2775_v1 = vpack.c.bf16 %v3013_v3, %v3021_v31 }
 0x1fe   : > { %v3025_v43 = vpop.eup %3024  ;;  %1605 = vst [vmem:[%s3974_s23 + $0x60] sm:$0xff] %v2777_v45  ;;  %v2778_v35 = vpack.c.bf16 %v3015_v40, %v3023_v29 }
 0x1ff   : > { %1603 = vst [vmem:[%s3974_s23 + $0x40] sm:$0xff] %v2775_v1  ;;  %v2776_v48 = vpack.c.bf16 %v3017_v58, %v3025_v43  ;;  %v3027_v50 = vpop.eup %3026 }
 0x200   : > { %1606 = vst [vmem:[%s3974_s23 + $0x70] sm:$0xff] %v2778_v35  ;;  %v3029_v54 = vpop.eup %3028 }
 0x201   : > { %1604 = vst [vmem:[%s3974_s23 + $0x50] sm:$0xff] %v2776_v48  ;;  %v3031_v4 = vpop.eup %3030 }
 0x202   : > { %v3033_v11 = vpop.eup %3032 }
 0x215   : > { %v2900_v14 = vpop.f32.mrb[12].mxu1 }
 0x216   : > { %v2395_v53 = vpop.f32.mrb[13].mxu1  ;;  %v2404_v32 = vadd.f32 %v2900_v14, %v3960_v18 }
 0x217   : > { %v2901_v36 = vpop.f32.mrb[14].mxu1  ;;  %v2396_v57 = vadd.f32 %v3960_v18, %v2395_v53 }
 0x218   : > { %v2398_v8 = vpop.f32.mrb[15].mxu1  ;;  %v2407_v56 = vadd.f32 %v2901_v36, %v3960_v18 }
 0x219   : > { %v2399_v5 = vadd.f32 %v3960_v18, %v2398_v8 }
 0x221   : > { %v2880_v47 = vpop.f32.mrb[8].mxu0 }
 0x222   : > { %v1930_v10 = vadd.f32 %v2880_v47, %v3960_v18  ;;  %v1921_v19 = vpop.f32.mrb[9].mxu0 }
 0x223   : > { %v1922_v9 = vadd.f32 %v3960_v18, %v1921_v19  ;;  %v2881_v39 = vpop.f32.mrb[10].mxu0 }
 0x224   : > { %3034 = vtanh.f32 %v1930_v10  ;;  %v1933_v52 = vadd.f32 %v2881_v39, %v3960_v18  ;;  %v1924_v27 = vpop.f32.mrb[11].mxu0 }
 0x225   : > { %3036 = vtanh.f32 %v1922_v9  ;;  %v1925_v7 = vadd.f32 %v3960_v18, %v1924_v27 }
 0x226   : > { %3038 = vtanh.f32 %v1933_v52 }
 0x227   : > { %3040 = vtanh.f32 %v1925_v7 }
 0x228   : > { %3042 = vtanh.f32 %v2404_v32 }
 0x229   : > { %3044 = vtanh.f32 %v2396_v57 }
 0x22a   : > { %3046 = vtanh.f32 %v2407_v56 }
 0x22b   : > { %3048 = vtanh.f32 %v2399_v5 }
 0x22e   : > { %v3035_v49 = vpop.eup %3034 }
 0x22f   : > { %v3037_v59 = vpop.eup %3036  ;;  %v2781_v20 = vpack.c.bf16 %v3027_v50, %v3035_v49 }
 0x230   : > { %v3039_v30 = vpop.eup %3038  ;;  %v2779_v26 = vpack.c.bf16 %v3029_v54, %v3037_v59 }
 0x231   : > { %v3041_v17 = vpop.eup %3040  ;;  %2753 = vst [vmem:[%s3974_s23 + $0x28] sm:$0xff] %v2781_v20  ;;  %v2782_v55 = vpack.c.bf16 %v3031_v4, %v3039_v30 }
 0x232   : > { %2751 = vst [vmem:[%s3974_s23 + $0x8] sm:$0xff] %v2779_v26  ;;  %v2780_v38 = vpack.c.bf16 %v3033_v11, %v3041_v17  ;;  %v3043_v42 = vpop.eup %3042 }
 0x233   : > { %2754 = vst [vmem:[%s3974_s23 + $0x38] sm:$0xff] %v2782_v55  ;;  %v3045_v16 = vpop.eup %3044 }
 0x234   : > { %2752 = vst [vmem:[%s3974_s23 + $0x18] sm:$0xff] %v2780_v38  ;;  %v3047_v24 = vpop.eup %3046 }
 0x235   : > { %v3049_v23 = vpop.eup %3048 }
 0x239   : > { %v2884_v41 = vpop.f32.mrb[12].mxu0 }
 0x23a   : > { %v1946_v12 = vadd.f32 %v2884_v41, %v3960_v18  ;;  %v1937_v61 = vpop.f32.mrb[13].mxu0 }
 0x23b   : > { %v1938_v44 = vadd.f32 %v3960_v18, %v1937_v61  ;;  %v2885_v13 = vpop.f32.mrb[14].mxu0 }
 0x23c   : > { %3050 = vtanh.f32 %v1946_v12  ;;  %v1949_v33 = vadd.f32 %v2885_v13, %v3960_v18  ;;  %v1940_v22 = vpop.f32.mrb[15].mxu0 }
 0x23d   : > { %3052 = vtanh.f32 %v1938_v44  ;;  %v1941_v15 = vadd.f32 %v3960_v18, %v1940_v22 }
 0x23e   : > { %3054 = vtanh.f32 %v1949_v33 }
 0x23f   : > { %3056 = vtanh.f32 %v1941_v15 }
 0x246   : > { %v3051_v62 = vpop.eup %3050 }
 0x247   : > { %v3053_v2 = vpop.eup %3052  ;;  %v2785_v28 = vpack.c.bf16 %v3043_v42, %v3051_v62 }
 0x248   : > { %v3055_v51 = vpop.eup %3054  ;;  %v2783_v6 = vpack.c.bf16 %v3045_v16, %v3053_v2 }
 0x249   : > { %v3057_v46 = vpop.eup %3056  ;;  %2757 = vst [vmem:[%s3974_s23 + $0x68] sm:$0xff] %v2785_v28  ;;  %v2786_v21 = vpack.c.bf16 %v3047_v24, %v3055_v51 }
 0x24a   : > { %2755 = vst [vmem:[%s3974_s23 + $0x48] sm:$0xff] %v2783_v6  ;;  %v2784_v0 = vpack.c.bf16 %v3049_v23, %v3057_v46 }
 0x24b   : > { %2758 = vst [vmem:[%s3974_s23 + $0x78] sm:$0xff] %v2786_v21 }
 0x24c   : > { %2756 = vst [vmem:[%s3974_s23 + $0x58] sm:$0xff] %v2784_v0 }
 0x24d PF: > { %s15_s18 = sadd.s32 1, %s3072_s18  }
 0x24e   : > { %p12_p4 = scmp.ge.s32.totalorder %s15_s18, 4  }
 0x250   :  { %14 = sbr.rel (!%p12_p4) target bundleno = 1 (0x1), region = 76 }

</bundles_post_ra>
